<compile_context>
chip_gen: v7x
topology: tpu7x:2x2x1
jax: 0.10.0
libtpu: 0.0.40
codegen_flags: <defaults>
</compile_context>

<pallas_src>
import functools

import jax
import jax.numpy as jnp
from jax.experimental import pallas as pl
from jax.experimental.pallas import tpu as pltpu

IN_DIM = 3 * 32 * 32   # 3072
HID = 1024
OUT = 512
EPS = 1e-5
TK = 1024              # K tile for linear1 (3072 / 1024 = 3 reduction steps)


def _mlp_kernel(x_ref, w1_ref, b1_ref, mask_ref, w2_ref, b2_ref,
                out_ref, acc_ref):
    k = pl.program_id(1)

    @pl.when(k == 0)
    def _():
        acc_ref[...] = jnp.zeros_like(acc_ref)

    # Partial product of linear1 (BN scale already folded into w1).
    acc_ref[...] += jnp.dot(x_ref[...], w1_ref[...],
                            preferred_element_type=jnp.float32)

    @pl.when(k == pl.num_programs(1) - 1)
    def _():
        h = acc_ref[...] + b1_ref[...]      # fused (linear1 bias + BN) in f32
        h = jnp.maximum(h, 0.0)             # relu
        h = h * mask_ref[...]               # dropout; mask already has 1/keep_prob
        out = jnp.dot(h.astype(jnp.bfloat16), w2_ref[...],
                      preferred_element_type=jnp.float32)
        out_ref[...] = out + b2_ref[...]


def _round_up(x, m):
    return (x + m - 1) // m * m


def mlp_logits(x, params, dropout_key, drop_rate=0.5):
    B = x.shape[0]
    keep_prob = 1.0 - drop_rate

    # Fold BatchNorm (module normalizes with the constant rm=1 / rv=0 buffers,
    # NOT the batch statistics) into linear1 on the host.
    s = params["gamma"] * jax.lax.rsqrt(params["rv"] + EPS)            # (1, HID)
    w1 = (params["w1"].astype(jnp.float32) * s).astype(jnp.bfloat16)
    b1 = ((params["b1"] - params["rm"]) * s + params["beta"]).astype(jnp.float32)
    w2 = params["w2"].astype(jnp.bfloat16)
    b2 = params["b2"].astype(jnp.float32)

    # Dropout mask with the 1/keep_prob rescale folded in.
    # TODO(synk): torch's RNG stream is not bit-matched (same distribution).
    mask = (jax.random.bernoulli(dropout_key, keep_prob, (B, HID))
            .astype(jnp.float32) * (1.0 / keep_prob))

    # Batch tiling: multiples of 8 sublanes; 128-row tiles once B is large.
    TM = 128 if B >= 128 else _round_up(B, 8)
    Bp = _round_up(B, TM)
    x_bf = x.astype(jnp.bfloat16)
    if Bp != B:
        x_bf = jnp.pad(x_bf, ((0, Bp - B), (0, 0)))
        mask = jnp.pad(mask, ((0, Bp - B), (0, 0)))

    grid = (Bp // TM, IN_DIM // TK)

    logits = pl.pallas_call(
        _mlp_kernel,
        out_shape=jax.ShapeDtypeStruct((Bp, OUT), jnp.float32),
        grid_spec=pltpu.PrefetchScalarGridSpec(
            num_scalar_prefetch=0,
            grid=grid,
            in_specs=[
                pl.BlockSpec((TM, TK), lambda i, k: (i, k)),    # x
                pl.BlockSpec((TK, HID), lambda i, k: (k, 0)),   # w1 (BN folded)
                pl.BlockSpec((1, HID), lambda i, k: (0, 0)),    # b1 (BN folded)
                pl.BlockSpec((TM, HID), lambda i, k: (i, 0)),   # dropout mask
                pl.BlockSpec((HID, OUT), lambda i, k: (0, 0)),  # w2
                pl.BlockSpec((1, OUT), lambda i, k: (0, 0)),    # b2
            ],
            out_specs=pl.BlockSpec((TM, OUT), lambda i, k: (i, 0)),
            scratch_shapes=[pltpu.VMEM((TM, HID), jnp.float32)],
        ),
        compiler_params=pltpu.CompilerParams(
            dimension_semantics=("parallel", "arbitrary"),
            vmem_limit_bytes=32 * 1024 * 1024),
    )(x_bf, w1, b1, mask, w2, b2)

    return logits[:B]


def model_forward(x, params, dropout_key, y=None, drop_rate=0.5):
    logits = mlp_logits(x, params, dropout_key, drop_rate)
    pred = jnp.argmax(logits, axis=1)
    if y is None:
        return pred
    # CrossEntropyLoss + accuracy (cheap glue over the kernel's logits).
    logp = jax.nn.log_softmax(logits, axis=1)
    loss = -jnp.mean(jnp.take_along_axis(logp, y[:, None], axis=1))
    acc = jnp.mean((pred.astype(jnp.int32) == y.astype(jnp.int32))
                   .astype(jnp.float32))
    return loss, acc


def make_params(key):
    # TODO(synk): BatchNorm1d's running_mean/running_var update is a
    # training-time buffer side effect that never affects the returned value;
    # it is not reproduced here.
    kw1, kb1, kw2, kb2 = jax.random.split(key, 4)
    return {
        "w1": jax.random.normal(kw1, (IN_DIM, HID), jnp.float32) * 0.02,
        "b1": jax.random.normal(kb1, (1, HID), jnp.float32) * 0.01,
        "gamma": jnp.ones((1, HID), jnp.float32),   # BatchNorm1d.weight
        "beta": jnp.zeros((1, HID), jnp.float32),   # BatchNorm1d.bias
        "rm": jnp.ones((1, HID), jnp.float32),      # self.rm = torch.ones
        "rv": jnp.zeros((1, HID), jnp.float32),     # self.rv = torch.zeros
        "w2": jax.random.normal(kw2, (HID, OUT), jnp.float32) * 0.02,
        "b2": jax.random.normal(kb2, (1, OUT), jnp.float32) * 0.01,
    }


if __name__ == "__main__":
    key = jax.random.PRNGKey(0)
    kp, kx, ky, kd = jax.random.split(key, 4)

    B = 8
    x = jax.random.normal(kx, (B, IN_DIM), dtype=jnp.float32)
    y = jax.random.randint(ky, (B,), 0, OUT, dtype=jnp.int32)
    params = make_params(kp)

    pred = model_forward(x, params, dropout_key=kd)            # y=None -> pred
    loss, acc = model_forward(x, params, dropout_key=kd, y=y)  # (loss, acc)
    jax.block_until_ready((pred, loss, acc))
    assert pred.shape == (B,)
    assert loss.shape == () and acc.shape == ()
    print("KERNEL_OK")
</pallas_src>

<mosaic_0001>
module attributes {stable_mosaic.version = 11 : i64} {
  func.func @_mlp_kernel(%arg0: i32, %arg1: i32, %arg2: memref<8x1024xbf16, #tpu.memory_space<vmem>>, %arg3: memref<1024x1024xbf16, #tpu.memory_space<vmem>>, %arg4: memref<1x1024xf32, #tpu.memory_space<vmem>>, %arg5: memref<8x1024xf32, #tpu.memory_space<vmem>>, %arg6: memref<1024x512xbf16, #tpu.memory_space<vmem>>, %arg7: memref<1x512xf32, #tpu.memory_space<vmem>>, %arg8: memref<8x512xf32, #tpu.memory_space<vmem>>, %arg9: memref<8x1024xf32, #tpu.memory_space<vmem>>) attributes {dimension_semantics = [#tpu.dimension_semantics<parallel>, #tpu.dimension_semantics<arbitrary>], iteration_bounds = array<i64: 1, 3>, scalar_prefetch = 0 : i64, scratch_operands = 1 : i64, tpu.core_type = #tpu.core_type<tc>, window_params = [{transform_indices = @transform_0, window_bounds = array<i64: 8, 1024>}, {transform_indices = @transform_1, window_bounds = array<i64: 1024, 1024>}, {pipeline_mode = #tpu.pipeline_mode<synchronous>, transform_indices = @transform_2, window_bounds = array<i64: 1, 1024>}, {transform_indices = @transform_3, window_bounds = array<i64: 8, 1024>}, {pipeline_mode = #tpu.pipeline_mode<synchronous>, transform_indices = @transform_4, window_bounds = array<i64: 1024, 512>}, {pipeline_mode = #tpu.pipeline_mode<synchronous>, transform_indices = @transform_5, window_bounds = array<i64: 1, 512>}, {transform_indices = @transform_6, window_bounds = array<i64: 8, 512>}]} {
    %c0_i32 = arith.constant 0 : i32
    %0 = arith.cmpi eq, %arg1, %c0_i32 : i32
    %1 = arith.extui %0 : i1 to i32
    %c0_i32_0 = arith.constant 0 : i32
    %2 = arith.cmpi ne, %1, %c0_i32_0 : i32
    scf.if %2 {
      %cst_9 = arith.constant 0.000000e+00 : f32
      %12 = vector.broadcast %cst_9 : f32 to vector<8x1024xf32>
      %c0_10 = arith.constant 0 : index
      %c0_11 = arith.constant 0 : index
      %13 = vector.load %arg9[%c0_10, %c0_11] : memref<8x1024xf32, #tpu.memory_space<vmem>>, vector<8x1024xf32>
      tpu.vector_store %arg9[%c0_10, %c0_11], %12 {strides = array<i32>} : memref<8x1024xf32, #tpu.memory_space<vmem>>, vector<8x1024xf32>,
    } else {
    }
    %c0 = arith.constant 0 : index
    %c0_1 = arith.constant 0 : index
    %3 = vector.load %arg9[%c0, %c0_1] : memref<8x1024xf32, #tpu.memory_space<vmem>>, vector<8x1024xf32>
    %c0_2 = arith.constant 0 : index
    %c0_3 = arith.constant 0 : index
    %4 = vector.load %arg2[%c0_2, %c0_3] : memref<8x1024xbf16, #tpu.memory_space<vmem>>, vector<8x1024xbf16>
    %c0_4 = arith.constant 0 : index
    %c0_5 = arith.constant 0 : index
    %5 = vector.load %arg3[%c0_4, %c0_5] : memref<1024x1024xbf16, #tpu.memory_space<vmem>>, vector<1024x1024xbf16>
    %cst = arith.constant dense<0.000000e+00> : vector<8x1024xf32>
    %6 = tpu.matmul %4, %5, %cst {dimension_numbers = #tpu.dot_dimension_numbers<[1], [0], [0], [1], [0, 0, 1, 1], [], []>} : vector<8x1024xbf16>, vector<1024x1024xbf16>, vector<8x1024xf32> -> vector<8x1024xf32>
    %7 = arith.addf %3, %6 : vector<8x1024xf32>
    %c0_6 = arith.constant 0 : index
    %c0_7 = arith.constant 0 : index
    %8 = vector.load %arg9[%c0_6, %c0_7] : memref<8x1024xf32, #tpu.memory_space<vmem>>, vector<8x1024xf32>
    tpu.vector_store %arg9[%c0_6, %c0_7], %7 {strides = array<i32>} : memref<8x1024xf32, #tpu.memory_space<vmem>>, vector<8x1024xf32>,
    %c2_i32 = arith.constant 2 : i32
    %9 = arith.cmpi eq, %arg1, %c2_i32 : i32
    %10 = arith.extui %9 : i1 to i32
    %c0_i32_8 = arith.constant 0 : i32
    %11 = arith.cmpi ne, %10, %c0_i32_8 : i32
    scf.if %11 {
      %c0_9 = arith.constant 0 : index
      %c0_10 = arith.constant 0 : index
      %12 = vector.load %arg9[%c0_9, %c0_10] : memref<8x1024xf32, #tpu.memory_space<vmem>>, vector<8x1024xf32>
      %c0_11 = arith.constant 0 : index
      %c0_12 = arith.constant 0 : index
      %13 = vector.load %arg4[%c0_11, %c0_12] : memref<1x1024xf32, #tpu.memory_space<vmem>>, vector<1x1024xf32>
      %14 = vector.broadcast %13 : vector<1x1024xf32> to vector<8x1024xf32>
      %15 = arith.addf %12, %14 : vector<8x1024xf32>
      %cst_13 = arith.constant 0.000000e+00 : f32
      %16 = vector.broadcast %cst_13 : f32 to vector<8x1024xf32>
      %17 = arith.maximumf %15, %16 : vector<8x1024xf32>
      %c0_14 = arith.constant 0 : index
      %c0_15 = arith.constant 0 : index
      %18 = vector.load %arg5[%c0_14, %c0_15] : memref<8x1024xf32, #tpu.memory_space<vmem>>, vector<8x1024xf32>
      %19 = arith.mulf %17, %18 : vector<8x1024xf32>
      %20 = arith.truncf %19 : vector<8x1024xf32> to vector<8x1024xbf16>
      %c0_16 = arith.constant 0 : index
      %c0_17 = arith.constant 0 : index
      %21 = vector.load %arg6[%c0_16, %c0_17] : memref<1024x512xbf16, #tpu.memory_space<vmem>>, vector<1024x512xbf16>
      %cst_18 = arith.constant dense<0.000000e+00> : vector<8x512xf32>
      %22 = tpu.matmul %20, %21, %cst_18 {dimension_numbers = #tpu.dot_dimension_numbers<[1], [0], [0], [1], [0, 0, 1, 1], [], []>} : vector<8x1024xbf16>, vector<1024x512xbf16>, vector<8x512xf32> -> vector<8x512xf32>
      %c0_19 = arith.constant 0 : index
      %c0_20 = arith.constant 0 : index
      %23 = vector.load %arg7[%c0_19, %c0_20] : memref<1x512xf32, #tpu.memory_space<vmem>>, vector<1x512xf32>
      %24 = vector.broadcast %23 : vector<1x512xf32> to vector<8x512xf32>
      %25 = arith.addf %22, %24 : vector<8x512xf32>
      %c0_21 = arith.constant 0 : index
      %c0_22 = arith.constant 0 : index
      %26 = vector.load %arg8[%c0_21, %c0_22] : memref<8x512xf32, #tpu.memory_space<vmem>>, vector<8x512xf32>
      tpu.vector_store %arg8[%c0_21, %c0_22], %25 {strides = array<i32>} : memref<8x512xf32, #tpu.memory_space<vmem>>, vector<8x512xf32>,
    } else {
    }
    return
  }
  func.func @transform_0(%arg0: i32, %arg1: i32) -> (i32, i32) {
    %c0_i32 = arith.constant 0 : i32
    return %arg0, %arg1 : i32, i32
  }
  func.func @transform_1(%arg0: i32, %arg1: i32) -> (i32, i32) {
    %c0_i32 = arith.constant 0 : i32
    %c0_i32_0 = arith.constant 0 : i32
    return %arg1, %c0_i32 : i32, i32
  }
  func.func @transform_2(%arg0: i32, %arg1: i32) -> (i32, i32) {
    %c0_i32 = arith.constant 0 : i32
    %c0_i32_0 = arith.constant 0 : i32
    %c0_i32_1 = arith.constant 0 : i32
    return %c0_i32, %c0_i32_0 : i32, i32
  }
  func.func @transform_3(%arg0: i32, %arg1: i32) -> (i32, i32) {
    %c0_i32 = arith.constant 0 : i32
    %c0_i32_0 = arith.constant 0 : i32
    return %arg0, %c0_i32 : i32, i32
  }
  func.func @transform_4(%arg0: i32, %arg1: i32) -> (i32, i32) {
    %c0_i32 = arith.constant 0 : i32
    %c0_i32_0 = arith.constant 0 : i32
    %c0_i32_1 = arith.constant 0 : i32
    return %c0_i32, %c0_i32_0 : i32, i32
  }
  func.func @transform_5(%arg0: i32, %arg1: i32) -> (i32, i32) {
    %c0_i32 = arith.constant 0 : i32
    %c0_i32_0 = arith.constant 0 : i32
    %c0_i32_1 = arith.constant 0 : i32
    return %c0_i32, %c0_i32_0 : i32, i32
  }
  func.func @transform_6(%arg0: i32, %arg1: i32) -> (i32, i32) {
    %c0_i32 = arith.constant 0 : i32
    %c0_i32_0 = arith.constant 0 : i32
    return %arg0, %c0_i32 : i32, i32
  }
}

</mosaic_0001>

<bundles_post_ra>
// kernel: tpu_custom_call.1
= control target key start
LH: loop header
LB: loop body
LE: loop exit
PB: predicated region body
PF: predicated region fallthrough
CT: control target
= control target key end

     0   :  { %s8912_s0 = inlined_call_operand.hbm [shape: bf16[8,3072], index: 0, kind: input, shape index: {}]   ;;  %s8913_s1 = inlined_call_operand.hbm [shape: bf16[3072,1024], index: 1, kind: input, shape index: {}]   ;;  %s8914_s2 = inlined_call_operand.hbm [shape: f32[1,1024], index: 2, kind: input, shape index: {}]   ;;  %s8915_s3 = inlined_call_operand.hbm [shape: f32[8,1024], index: 3, kind: input, shape index: {}]   ;;  %s8916_s4 = inlined_call_operand.hbm [shape: bf16[1024,512], index: 4, kind: input, shape index: {}]   ;;  %s8917_s5 = inlined_call_operand.hbm [shape: f32[1,512], index: 5, kind: input, shape index: {}]   ;;  %s8918_s6 = inlined_call_operand.hbm [shape: f32[8,512], index: 6, kind: output, shape index: {}]  }
   0x1   :  { %8921 = sst [smem:[#allocation21_spill]] %s8912_s0 }
   0x2   :  { %11 = vsyncpa [#allocation4], 0 }
   0x3   :  { %13 = vsyncpa [#allocation4 + $0x1], 0 }
   0x4   :  { %14 = vsyncpa [#allocation7], 0 }
   0x5   :  { %16 = vsyncpa [#allocation7 + $0x1], 0 }
   0x6   :  { %17 = vsyncpa [#allocation10], 0 }
   0x7   :  { %18 = vsyncpa [#allocation13], 0 }
   0x8   :  { %19 = vsyncpa [#allocation5], 0  ;;  %s7954_s21 = smov 0   ;;  %s7956_s22 = smov 0  }
   0x9   :  { %s7958_s23 = smov 0   ;;  %s7960_s24 = smov 0  }
   0xa   :  { %s7962_s25 = smov 0   ;;  %s7964_s26 = smov 0  }
   0xb LB: > { %s7985_s27 = sadd.s32 4294967295, %s7905_s26   ;;  %p6298_p0 = scmp.ge.s32.totalorder %s7905_s26, 1  ;;  %s7905_s26 = sphi %s7964_s26, %s25_s26   ;;  %s7901_s25 = sphi %s7962_s25, %s8941_s25   ;;  %s7897_s24 = sphi %s7960_s24, %s8940_s24   ;;  %s7893_s23 = sphi %s7958_s23, %s8939_s23   ;;  %s7889_s22 = sphi %s7956_s22, %s8938_s22   ;;  %s7885_s21 = sphi %s7954_s21, %s8937_s21  }
   0xc   : > { %p8919_p1 = scmp.eq.s32.totalorder %s7985_s27, 0  ;;  %p211_p2 = scmp.lt.s32.totalorder %s7905_s26, 4 }
   0xd   : > { %s7907_s29 = smov [#allocation8]   ;;  %s7908_s7 = smov [#allocation9]  }
   0xe   : > { %p7990_p3 = pnand %p6298_p0, %p211_p2  ;;  %s224_s30 = sshll.u32 %s7907_s29, 4  ;;  %s225_s30 = int_to_ptr.vmem [resolvable:$true] %s224_s30 }
   0xf   : > { %s238_s8 = sshll.u32 %s7908_s7, 4  ;;  %s7909_s10 = smov [#allocation11]   ;;  %s8002_s8 = int_to_ptr.vmem [resolvable:$true] %s238_s8 }
  0x10   : > { %s8922_s28 = scalar_select %p7990_p3, 1, 0 }
  0x11   : > { %p7155_p4 = pneg %p7990_p3  ;;  %s248_s11 = sshll.u32 %s7909_s10, 4  ;;  %s8004_s11 = int_to_ptr.vmem [resolvable:$true] %s248_s11 }
  0x12   : > { %s7637_s14 = scalar_lea.hbm %s8914_s2, 128 }
  0x13   : > { %p7998_p5 = pnand %p7155_p4, %p8919_p1  ;;  %p7638_p6 = scmp.ne.s32.totalorder %s8914_s2, %s7637_s14 }
  0x14   : > { %p7644_p10 = scmp.lt.u32.totalorder %s7637_s14, %s8914_s2 }
  0x15   : > { %p8014_p7 = pneg %p7998_p5 }
  0x17   : > { %p7640_p8 = pnand %p8014_p7, %p7638_p6 }
  0x19   : > { %p7641_p9 = pneg %p7640_p8 }
  0x1b   : > { %p7646_p11 = pnand %p7644_p10, %p7641_p9 }
  0x1d   : > { %7649 = shalt.err (!%p7646_p11)
}
  0x1e   : > { %s7650_s20 = scalar_lea.vmem %s225_s30, 128  ;;  %p7658_p2 = scmp.lt.s32.totalorder %s225_s30, %s225_s30 }
  0x1f   : > { %p7651_p12 = scmp.ne.s32.totalorder %s225_s30, %s7650_s20  ;;  %p7659_p4 = scmp.lt.s32.totalorder %s7650_s20, %s7650_s20 }
  0x21   : > { %p7653_p13 = pnand %p7651_p12, %p8014_p7  ;;  %p7660_p1 = por %p7659_p4, %p7658_p2 }
  0x23   : > { %p7654_p0 = pneg %p7653_p13 }
  0x25   : > { %p7661_p3 = pnand %p7660_p1, %p7654_p0 }
  0x27   : > { %7664 = shalt.err (!%p7661_p3)
}
  0x28   : > { %7158 = dma.hbm_to_vmem [thread:$0]  (!%p7998_p5), %s8914_s2, 128, %s225_s30, [#allocation7]  }
  0x29   : > { %s7665_s13 = scalar_lea.hbm %s8915_s3, 1024 }
  0x2a   : > { %p7666_p6 = scmp.ne.s32.totalorder %s8915_s3, %s7665_s13  ;;  %p7672_p1 = scmp.lt.u32.totalorder %s7665_s13, %s8915_s3 }
  0x2c   : > { %p7668_p8 = pnand %p7666_p6, %p8014_p7 }
  0x2e   : > { %p7669_p9 = pneg %p7668_p8 }
  0x30   : > { %p7674_p3 = pnand %p7672_p1, %p7669_p9 }
  0x32   : > { %7677 = shalt.err (!%p7674_p3)
}
  0x33   : > { %s7678_s30 = scalar_lea.vmem %s8002_s8, 1024  ;;  %p7686_p13 = scmp.lt.s32.totalorder %s8002_s8, %s8002_s8 }
  0x34   : > { %p7679_p10 = scmp.ne.s32.totalorder %s8002_s8, %s7678_s30  ;;  %p7687_p0 = scmp.lt.s32.totalorder %s7678_s30, %s7678_s30 }
  0x36   : > { %p7681_p11 = pnand %p7679_p10, %p8014_p7  ;;  %p7688_p2 = por %p7687_p0, %p7686_p13 }
  0x38   : > { %p7682_p12 = pneg %p7681_p11 }
  0x3a   : > { %p7689_p4 = pnand %p7688_p2, %p7682_p12 }
  0x3c   : > { %7692 = shalt.err (!%p7689_p4)
}
  0x3d   : > { %7161 = dma.hbm_to_vmem [thread:$0]  (!%p7998_p5), %s8915_s3, 1024, %s8002_s8, [#allocation10]  }
  0x3e   : > { %s7693_s10 = scalar_lea.hbm %s8916_s4, 32768 }
  0x3f   : > { %p7694_p6 = scmp.ne.s32.totalorder %s8916_s4, %s7693_s10  ;;  %p7700_p1 = scmp.lt.u32.totalorder %s7693_s10, %s8916_s4 }
  0x41   : > { %p7696_p8 = pnand %p7694_p6, %p8014_p7 }
  0x43   : > { %p7697_p9 = pneg %p7696_p8 }
  0x45   : > { %p7702_p3 = pnand %p7700_p1, %p7697_p9 }
  0x47   : > { %7705 = shalt.err (!%p7702_p3)
}
  0x48   : > { %s7706_s8 = scalar_lea.vmem %s8004_s11, 32768  ;;  %p7714_p13 = scmp.lt.s32.totalorder %s8004_s11, %s8004_s11 }
  0x49   : > { %p7707_p10 = scmp.ne.s32.totalorder %s8004_s11, %s7706_s8  ;;  %p7715_p0 = scmp.lt.s32.totalorder %s7706_s8, %s7706_s8 }
  0x4b   : > { %p7709_p11 = pnand %p7707_p10, %p8014_p7  ;;  %p7716_p2 = por %p7715_p0, %p7714_p13 }
  0x4d   : > { %p7710_p12 = pneg %p7709_p11 }
  0x4f   : > { %p7717_p4 = pnand %p7716_p2, %p7710_p12 }
  0x51   : > { %7720 = shalt.err (!%p7717_p4)
}
  0x52   : > { %s7910_s16 = smov 256   ;;  %s7911_s18 = smov 16  }
  0x53   : > { %7164 = dma.hbm_to_vmem [thread:$0]  (!%p7998_p5), %s8916_s4, 32768, %s8004_s11, [#allocation10], %s7910_s16, %s7910_s16, %s7911_s18  }
  0x54   : > { %s7912_s20 = smov [#allocation12]   ;;  %s7721_s12 = scalar_lea.hbm %s8917_s5, 64 }
  0x55   : > { %s262_s29 = sshll.u32 %s7912_s20, 4  ;;  %p7722_p6 = scmp.ne.s32.totalorder %s8917_s5, %s7721_s12  ;;  %s263_s29 = int_to_ptr.vmem [resolvable:$true] %s262_s29 }
  0x56   : > { %p7728_p1 = scmp.lt.u32.totalorder %s7721_s12, %s8917_s5 }
  0x57   : > { %p7724_p8 = pnand %p7722_p6, %p8014_p7 }
  0x59   : > { %p7725_p9 = pneg %p7724_p8 }
  0x5b   : > { %p7730_p3 = pnand %p7728_p1, %p7725_p9 }
  0x5d   : > { %7733 = shalt.err (!%p7730_p3)
}
  0x5e   : > { %s7734_s11 = scalar_lea.vmem %s263_s29, 64  ;;  %p7742_p13 = scmp.lt.s32.totalorder %s263_s29, %s263_s29 }
  0x5f   : > { %p7735_p10 = scmp.ne.s32.totalorder %s263_s29, %s7734_s11  ;;  %p7743_p0 = scmp.lt.s32.totalorder %s7734_s11, %s7734_s11 }
  0x61   : > { %p7737_p11 = pnand %p7735_p10, %p8014_p7  ;;  %p7744_p2 = por %p7743_p0, %p7742_p13 }
  0x63   : > { %p7738_p12 = pneg %p7737_p11 }
  0x65   : > { %p7745_p4 = pnand %p7744_p2, %p7738_p12 }
  0x67   : > { %7748 = shalt.err (!%p7745_p4)
}
  0x68   : > { %7167 = dma.hbm_to_vmem [thread:$0]  (!%p7998_p5), %s8917_s5, 64, %s263_s29, [#allocation13]  }
  0x69   : > { %s34_s17 = sadd.s32 1, %s7901_s25  ;;  %s46_s30 = sadd.s32 1, %s7893_s23 }
  0x6a   : > { %p35_p7 = scmp.ge.s32.totalorder %s34_s17, 3  ;;  %p53_p6 = scmp.ne.s32.totalorder %s7893_s23, %s7889_s22 }
  0x6b   : > { %p54_p8 = scmp.eq.s32.totalorder %s7905_s26, 0  ;;  %p59_p9 = scmp.ne.s32.totalorder %s7889_s22, %s7885_s21 }
  0x6c   : > { %s8943_s17 = smov (%p35_p7, %s34_s17), 0  ;;  %p8926_p3 = scmp.eq.s32.totalorder %s7985_s27, 0 }
  0x6d   : > { %p8103_p1 = por %p54_p8, %p53_p6  ;;  %s42_s20 = ssub.s32 %s7901_s25, %s8943_s17 }
  0x6e   : > { %p8109_p10 = por %p8926_p3, %p59_p9  ;;  %p7179_p5 = scmp.lt.s32.totalorder %s7905_s26, 3 }
  0x6f   : > { %p44_p11 = scmp.eq.s32.totalorder %s42_s20, 0  ;;  %s8117_s29 = sand.u32 1, %s7893_s23  }
  0x70   : > { %s6304_s21 = sshll.u32 %s8117_s29, 5  ;;  %s7100_s10 = sshll.u32 %s7901_s25, 9 }
  0x71   : > { %s8121_s7 = scalar_select %p44_p11, %s7893_s23, %s46_s30  }
  0x72   : > { %s8928_s0 = sld [smem:[#allocation21_spill]]  ;;  %s277_s15 = scalar_lea.vmem [#allocation3], %s6304_s21 }
  0x73   : > { %s287_s8 = sshll.u32 %s277_s15, 4  ;;  %p8133_p12 = pnand %p7179_p5, %p8103_p1  ;;  %s8129_s8 = int_to_ptr.vmem [resolvable:$true] %s287_s8 }
  0x74   : > { %s6307_s16 = sshll.u32 %s8117_s29, 12  ;;  %s7102_s18 = sshll.u32 %s7901_s25, 16 }
  0x75   : > { %s274_s30 = scalar_lea.sflag [#allocation4], %s8117_s29  ;;  %p7751_p0 = pneg %p8133_p12 }
  0x78   : > { %s8127_s14 = scalar_lea.hbm %s8928_s0, %s7100_s10  ;;  %s7754_s9 = scalar_lea.hbm %s8928_s0, 1536 }
  0x79   : > { %s7749_s20 = scalar_lea.hbm %s8127_s14, 512  ;;  %p7755_p7 = scmp.lt.u32.totalorder %s8127_s14, %s8928_s0 }
  0x7a   : > { %p7750_p13 = scmp.ne.s32.totalorder %s8127_s14, %s7749_s20  ;;  %p7756_p6 = scmp.lt.u32.totalorder %s7754_s9, %s7749_s20 }
  0x7b   : > { %p7758_p9 = scmp.lt.u32.totalorder %s7749_s20, %s8127_s14 }
  0x7c   : > { %p7752_p2 = pnand %p7751_p0, %p7750_p13  ;;  %p7757_p8 = por %p7756_p6, %p7755_p7 }
  0x7e   : > { %p7753_p4 = pneg %p7752_p2  ;;  %p7759_p1 = por %p7758_p9, %p7757_p8 }
  0x80   : > { %p7760_p3 = pnand %p7759_p1, %p7753_p4 }
  0x82   : > { %7763 = shalt.err (!%p7760_p3)
}
  0x83   : > { %s7764_s15 = scalar_lea.vmem %s8129_s8, 512  ;;  %s7913_s21 = smov [#allocation3]  }
  0x84   : > { %p7765_p5 = scmp.ne.s32.totalorder %s8129_s8, %s7764_s15  ;;  %s7769_s10 = sshll.u32 %s7913_s21, 4  ;;  %s7770_s10 = int_to_ptr.vmem [resolvable:$false] %s7769_s10 }
  0x85   : > { %s7771_s12 = scalar_lea.vmem %s7770_s10, 1024  ;;  %p7772_p2 = scmp.lt.s32.totalorder %s8129_s8, %s7770_s10 }
  0x86   : > { %p7767_p11 = pnand %p7765_p5, %p7751_p0  ;;  %p7773_p7 = scmp.lt.s32.totalorder %s7771_s12, %s7764_s15 }
  0x88   : > { %p7768_p13 = pneg %p7767_p11  ;;  %p7774_p6 = por %p7773_p7, %p7772_p2 }
  0x8a   : > { %p7775_p8 = pnand %p7774_p6, %p7768_p13 }
  0x8c   : > { %7778 = shalt.err (!%p7775_p8)
}
  0x8d   : > { %7171 = dma.hbm_to_vmem [thread:$0]  (!%p8133_p12), %s8127_s14, 512, %s8129_s8, %s274_s30  }
  0x8e   : > { %s298_s20 = scalar_lea.vmem [#allocation6], %s6307_s16  ;;  %s294_s13 = sand.u32 1, %s7905_s26  }
  0x8f   : > { %s306_s9 = sshll.u32 %s298_s20, 4  ;;  %s8175_s10 = scalar_lea.hbm %s8913_s1, %s7102_s18  ;;  %s8168_s9 = int_to_ptr.vmem [resolvable:$true] %s306_s9 }
  0x90   : > { %s8177_s12 = scalar_lea.sflag [#allocation7], %s294_s13  ;;  %s7779_s0 = scalar_lea.hbm %s8175_s10, 65536 }
  0x91   : > { %p7780_p4 = scmp.ne.s32.totalorder %s8175_s10, %s7779_s0  ;;  %s7784_s8 = scalar_lea.hbm %s8913_s1, 196608 }
  0x92   : > { %p7785_p3 = scmp.lt.u32.totalorder %s8175_s10, %s8913_s1  ;;  %p7786_p5 = scmp.lt.u32.totalorder %s7784_s8, %s7779_s0 }
  0x93   : > { %p7782_p9 = pnand %p7780_p4, %p7751_p0  ;;  %p7788_p13 = scmp.lt.u32.totalorder %s7779_s0, %s8175_s10 }
  0x94   : > { %p7787_p11 = por %p7786_p5, %p7785_p3 }
  0x95   : > { %p7783_p1 = pneg %p7782_p9 }
  0x96   : > { %p7789_p2 = por %p7788_p13, %p7787_p11 }
  0x98   : > { %p7790_p7 = pnand %p7789_p2, %p7783_p1 }
  0x9a   : > { %7793 = shalt.err (!%p7790_p7)
}
  0x9b   : > { %s7794_s18 = scalar_lea.vmem %s8168_s9, 65536  ;;  %s7914_s20 = smov [#allocation6]  }
  0x9c   : > { %p7795_p6 = scmp.ne.s32.totalorder %s8168_s9, %s7794_s18  ;;  %s7799_s13 = sshll.u32 %s7914_s20, 4  ;;  %s7800_s13 = int_to_ptr.vmem [resolvable:$false] %s7799_s13 }
  0x9d   : > { %s7801_s15 = scalar_lea.vmem %s7800_s13, 131072  ;;  %p7802_p9 = scmp.lt.s32.totalorder %s8168_s9, %s7800_s13 }
  0x9e   : > { %p7797_p8 = pnand %p7795_p6, %p7751_p0  ;;  %p7803_p3 = scmp.lt.s32.totalorder %s7801_s15, %s7794_s18 }
  0xa0   : > { %p7798_p4 = pneg %p7797_p8  ;;  %p7804_p5 = por %p7803_p3, %p7802_p9 }
  0xa2   : > { %p7805_p11 = pnand %p7804_p5, %p7798_p4 }
  0xa4   : > { %7808 = shalt.err (!%p7805_p11)
}
  0xa5   : > { %s7915_s0 = smov 512   ;;  %s7916_s21 = smov 32  }
  0xa6   : > { %7174 = dma.hbm_to_vmem [thread:$0]  (!%p8133_p12), %s8175_s10, 65536, %s8168_s9, %s8177_s12, %s7915_s0, %s7915_s0, %s7916_s21  }
  0xa7   : > { %p8930_p0 = scmp.ne.s32.totalorder %s8922_s28, 0 }
  0xa8   : > { %s320_s29 = sand.u32 (!%p8930_p0), 1, %s7889_s22  }
  0xa9   : > { %318 = sbr.rel (%p8930_p0) target bundleno = 1386 (0x56a), region = 44  ;;  %s6312_s14 = sshll.u32 (!%p8930_p0), %s320_s29, 5 }
  0xaa   : > { %s321_s8 = scalar_lea.sflag (!%p8930_p0), [#allocation4], %s320_s29  ;;  %s8206_s16 = scalar_lea.vmem (!%p8930_p0), [#allocation3], %s6312_s14 }
  0xb0   : > { %7860 = dma.done.wait (%p8109_p10), %s321_s8, 512  }
  0xb1   : > { %7862 = vsyncadd (%p8109_p10), %s321_s8, 4294966784  ;;  %s329_s30 = sand.u32 1, %s7985_s27   ;;  %s6313_s11 = sshll.u32 %s320_s29, 12 }
  0xb2   : > { %s330_s9 = scalar_lea.sflag [#allocation7], %s329_s30  ;;  %s8213_s10 = scalar_lea.vmem [#allocation6], %s6313_s11 }
  0xb3   : > { %7864 = dma.done.wait (%p8109_p10), %s330_s9, 65536  }
  0xb4   : > { %7866 = vsyncadd (%p8109_p10), %s330_s9, 4294901760  ;;  %p8931_p12 = scmp.eq.s32.totalorder %s7985_s27, 0 }
  0xb6   : > { %7868 = dma.done.wait (%p8931_p12), [#allocation7], 128   ;;  %p8932_p1 = pmov %p8931_p12 }
  0xb8   : > { %7870 = vsyncadd (%p8932_p1), [#allocation7], 4294967168  ;;  %p8933_p13 = pmov %p8932_p1 }
  0xb9   : > { %p8934_p2 = pmov %p8932_p1 }
  0xba   : > { %7872 = dma.done.wait (%p8933_p13), [#allocation10], 33792  }
  0xbb   : > { %7874 = vsyncadd (%p8934_p2), [#allocation10], 4294933504  ;;  %p8935_p7 = pmov %p8932_p1 }
  0xbc   : > { %p8936_p6 = pmov %p8932_p1 }
  0xbd   : > { %7876 = dma.done.wait (%p8935_p7), [#allocation13], 64  }
  0xbe   : > { %7878 = vsyncadd (%p8936_p6), [#allocation13], 4294967232  ;;  %p6318_p10 = scmp.ne.s32.totalorder %s7897_s24, 0 }
  0xbf   : > { %v7917_v0 = vmov (!%p6318_p10), 0.0  }
  0xc0   : > { %383 = sbr.rel (%p6318_p10) target bundleno = 199 (0xc7), region = 72  ;;  %384 = vst [vmem:[#allocation2] sm:$0xff] (!%p6318_p10), %v7917_v0  ;;  %385 = vst [vmem:[#allocation2 + $0x8] sm:$0xff] (!%p6318_p10), %v7917_v0 }
  0xc1   : > { %386 = vst [vmem:[#allocation2 + $0x10] sm:$0xff] (!%p6318_p10), %v7917_v0  ;;  %387 = vst [vmem:[#allocation2 + $0x18] sm:$0xff] (!%p6318_p10), %v7917_v0 }
  0xc2   : > { %388 = vst [vmem:[#allocation2 + $0x20] sm:$0xff] (!%p6318_p10), %v7917_v0  ;;  %389 = vst [vmem:[#allocation2 + $0x28] sm:$0xff] (!%p6318_p10), %v7917_v0 }
  0xc3   : > { %390 = vst [vmem:[#allocation2 + $0x30] sm:$0xff] (!%p6318_p10), %v7917_v0  ;;  %391 = vst [vmem:[#allocation2 + $0x38] sm:$0xff] (!%p6318_p10), %v7917_v0 }
  0xc7 PF: > { %v404_v1 = vld [vmem:[%s8213_s10] sm:$0xff]  ;;  %v8264_v55 = vld [vmem:[%s8206_s16 + $0x8] sm:$0xff]  ;;  %p6839_p8 = scmp.ne.s32.totalorder %s7897_s24, 2 }
  0xc8   : > { %v408_v2 = vld [vmem:[%s8213_s10 + $0x20] sm:$0xff]  ;;  %v8274_v60 = vcombine.high %v8264_v55, %v8264_v55 }
  0xc9   : > { %v532_v3 = vld [vmem:[%s8213_s10 + $0x400] sm:$0xff]  ;;  %v6328_v4 = vcombine.high %v404_v1, %v408_v2  ;;  %v6327_v6 = vcombine.low %v404_v1, %v408_v2 }
  0xca   : > { %v536_v5 = vld [vmem:[%s8213_s10 + $0x420] sm:$0xff]  ;;  %3577 = vmatprep.mubr.bf16.mxu1 %v8274_v60 }
  0xcb   : > { %v412_v7 = vld [vmem:[%s8213_s10 + $0x40] sm:$0xff]  ;;  %v6456_v9 = vcombine.high %v532_v3, %v536_v5  ;;  %v6455_v10 = vcombine.low %v532_v3, %v536_v5  ;;  %3504 = vmatprep.subr.bf16.mxu0 %v6328_v4 }
  0xcc   : > { %v416_v8 = vld [vmem:[%s8213_s10 + $0x60] sm:$0xff]  ;;  %3505 = vmatpush1.bf16.msra.mxu0 %v6327_v6 }
  0xcd   : > { %v6336_v11 = vcombine.high %v412_v7, %v416_v8  ;;  %v540_v12 = vld [vmem:[%s8213_s10 + $0x440] sm:$0xff]  ;;  %3545 = vmatprep.subr.bf16.mxu1 %v6456_v9  ;;  %v6335_v19 = vcombine.low %v412_v7, %v416_v8 }
  0xce   : > { %v544_v13 = vld [vmem:[%s8213_s10 + $0x460] sm:$0xff]  ;;  %3546 = vmatpush1.bf16.msra.mxu1 %v6455_v10 }
  0xcf   : > { %v420_v14 = vld [vmem:[%s8213_s10 + $0x80] sm:$0xff]  ;;  %v6464_v15 = vcombine.high %v540_v12, %v544_v13  ;;  %3506 = vmatprep.subr.bf16.mxu0 %v6336_v11  ;;  %v6463_v20 = vcombine.low %v540_v12, %v544_v13 }
  0xd0   : > { %v424_v16 = vld [vmem:[%s8213_s10 + $0xa0] sm:$0xff]  ;;  %3507 = vmatpush1.bf16.msra.mxu0 %v6335_v19 }
  0xd1   : > { %v548_v17 = vld [vmem:[%s8213_s10 + $0x480] sm:$0xff]  ;;  %v6344_v21 = vcombine.high %v420_v14, %v424_v16  ;;  %3547 = vmatprep.subr.bf16.mxu1 %v6464_v15  ;;  %v6343_v27 = vcombine.low %v420_v14, %v424_v16 }
  0xd2   : > { %v552_v18 = vld [vmem:[%s8213_s10 + $0x4a0] sm:$0xff]  ;;  %3548 = vmatpush1.bf16.msra.mxu1 %v6463_v20 }
  0xd3   : > { %v6472_v22 = vcombine.high %v548_v17, %v552_v18  ;;  %v428_v23 = vld [vmem:[%s8213_s10 + $0xc0] sm:$0xff]  ;;  %3508 = vmatprep.subr.bf16.mxu0 %v6344_v21  ;;  %v6471_v28 = vcombine.low %v548_v17, %v552_v18 }
  0xd4   : > { %v432_v24 = vld [vmem:[%s8213_s10 + $0xe0] sm:$0xff]  ;;  %3509 = vmatpush1.bf16.msra.mxu0 %v6343_v27 }
  0xd5   : > { %v556_v25 = vld [vmem:[%s8213_s10 + $0x4c0] sm:$0xff]  ;;  %v6352_v29 = vcombine.high %v428_v23, %v432_v24  ;;  %3549 = vmatprep.subr.bf16.mxu1 %v6472_v22  ;;  %v6351_v35 = vcombine.low %v428_v23, %v432_v24 }
  0xd6   : > { %v560_v26 = vld [vmem:[%s8213_s10 + $0x4e0] sm:$0xff]  ;;  %3550 = vmatpush1.bf16.msra.mxu1 %v6471_v28 }
  0xd7   : > { %v6480_v30 = vcombine.high %v556_v25, %v560_v26  ;;  %v436_v31 = vld [vmem:[%s8213_s10 + $0x100] sm:$0xff]  ;;  %3510 = vmatprep.subr.bf16.mxu0 %v6352_v29  ;;  %v6479_v36 = vcombine.low %v556_v25, %v560_v26 }
  0xd8   : > { %v440_v32 = vld [vmem:[%s8213_s10 + $0x120] sm:$0xff]  ;;  %3511 = vmatpush1.bf16.msra.mxu0 %v6351_v35 }
  0xd9   : > { %v564_v33 = vld [vmem:[%s8213_s10 + $0x500] sm:$0xff]  ;;  %v6360_v37 = vcombine.high %v436_v31, %v440_v32  ;;  %3551 = vmatprep.subr.bf16.mxu1 %v6480_v30  ;;  %v6359_v43 = vcombine.low %v436_v31, %v440_v32 }
  0xda   : > { %v568_v34 = vld [vmem:[%s8213_s10 + $0x520] sm:$0xff]  ;;  %3552 = vmatpush1.bf16.msra.mxu1 %v6479_v36 }
  0xdb   : > { %v6488_v38 = vcombine.high %v564_v33, %v568_v34  ;;  %v444_v39 = vld [vmem:[%s8213_s10 + $0x140] sm:$0xff]  ;;  %3512 = vmatprep.subr.bf16.mxu0 %v6360_v37  ;;  %v6487_v44 = vcombine.low %v564_v33, %v568_v34 }
  0xdc   : > { %v448_v40 = vld [vmem:[%s8213_s10 + $0x160] sm:$0xff]  ;;  %3513 = vmatpush1.bf16.msra.mxu0 %v6359_v43 }
  0xdd   : > { %v572_v41 = vld [vmem:[%s8213_s10 + $0x540] sm:$0xff]  ;;  %v6368_v45 = vcombine.high %v444_v39, %v448_v40  ;;  %3553 = vmatprep.subr.bf16.mxu1 %v6488_v38  ;;  %v6367_v51 = vcombine.low %v444_v39, %v448_v40 }
  0xde   : > { %v576_v42 = vld [vmem:[%s8213_s10 + $0x560] sm:$0xff]  ;;  %3554 = vmatpush1.bf16.msra.mxu1 %v6487_v44 }
  0xdf   : > { %v6496_v46 = vcombine.high %v572_v41, %v576_v42  ;;  %v452_v47 = vld [vmem:[%s8213_s10 + $0x180] sm:$0xff]  ;;  %3514 = vmatprep.subr.bf16.mxu0 %v6368_v45  ;;  %v6495_v52 = vcombine.low %v572_v41, %v576_v42 }
  0xe0   : > { %v456_v48 = vld [vmem:[%s8213_s10 + $0x1a0] sm:$0xff]  ;;  %3515 = vmatpush1.bf16.msra.mxu0 %v6367_v51 }
  0xe1   : > { %v580_v49 = vld [vmem:[%s8213_s10 + $0x580] sm:$0xff]  ;;  %v6376_v53 = vcombine.high %v452_v47, %v456_v48  ;;  %3555 = vmatprep.subr.bf16.mxu1 %v6496_v46  ;;  %v6375_v63 = vcombine.low %v452_v47, %v456_v48 }
  0xe2   : > { %v584_v50 = vld [vmem:[%s8213_s10 + $0x5a0] sm:$0xff]  ;;  %3556 = vmatpush1.bf16.msra.mxu1 %v6495_v52 }
  0xe3   : > { %v8261_v54 = vld [vmem:[%s8206_s16] sm:$0xff]  ;;  %v6504_v56 = vcombine.high %v580_v49, %v584_v50  ;;  %3516 = vmatprep.subr.bf16.mxu0 %v6376_v53  ;;  %v6503_v0 = vcombine.low %v580_v49, %v584_v50 }
  0xe4   : > { %v460_v57 = vld [vmem:[%s8213_s10 + $0x1c0] sm:$0xff]  ;;  %v8270_v59 = vcombine.high %v8261_v54, %v8261_v54  ;;  %3517 = vmatpush1.bf16.msra.mxu0 %v6375_v63 }
  0xe5   : > { %v464_v58 = vld [vmem:[%s8213_s10 + $0x1e0] sm:$0xff]  ;;  %3557 = vmatprep.subr.bf16.mxu1 %v6504_v56 }
  0xe6   : > { %v588_v61 = vld [vmem:[%s8213_s10 + $0x5c0] sm:$0xff]  ;;  %3536 = vmatprep.mubr.bf16.mxu0 %v8270_v59  ;;  %v6384_v1 = vcombine.high %v460_v57, %v464_v58  ;;  %v6383_v7 = vcombine.low %v460_v57, %v464_v58  ;;  %3558 = vmatpush1.bf16.msra.mxu1 %v6503_v0 }
  0xe7   : > { %v592_v62 = vld [vmem:[%s8213_s10 + $0x5e0] sm:$0xff] }
  0xe8   : > { %v6512_v2 = vcombine.high %v588_v61, %v592_v62  ;;  %v468_v3 = vld [vmem:[%s8213_s10 + $0x200] sm:$0xff]  ;;  %3518 = vmatprep.subr.bf16.mxu0 %v6384_v1  ;;  %v6511_v8 = vcombine.low %v588_v61, %v592_v62 }
  0xe9   : > { %v472_v4 = vld [vmem:[%s8213_s10 + $0x220] sm:$0xff]  ;;  %3519 = vmatpush1.bf16.msra.mxu0 %v6383_v7 }
  0xea   : > { %v596_v5 = vld [vmem:[%s8213_s10 + $0x600] sm:$0xff]  ;;  %v6392_v9 = vcombine.high %v468_v3, %v472_v4  ;;  %3559 = vmatprep.subr.bf16.mxu1 %v6512_v2  ;;  %v6391_v15 = vcombine.low %v468_v3, %v472_v4 }
  0xeb   : > { %v600_v6 = vld [vmem:[%s8213_s10 + $0x620] sm:$0xff]  ;;  %3560 = vmatpush1.bf16.msra.mxu1 %v6511_v8 }
  0xec   : > { %v6520_v10 = vcombine.high %v596_v5, %v600_v6  ;;  %v476_v11 = vld [vmem:[%s8213_s10 + $0x240] sm:$0xff]  ;;  %3520 = vmatprep.subr.bf16.mxu0 %v6392_v9  ;;  %v6519_v16 = vcombine.low %v596_v5, %v600_v6 }
  0xed   : > { %v480_v12 = vld [vmem:[%s8213_s10 + $0x260] sm:$0xff]  ;;  %3521 = vmatpush1.bf16.msra.mxu0 %v6391_v15 }
  0xee   : > { %v604_v13 = vld [vmem:[%s8213_s10 + $0x640] sm:$0xff]  ;;  %v6400_v17 = vcombine.high %v476_v11, %v480_v12  ;;  %3561 = vmatprep.subr.bf16.mxu1 %v6520_v10  ;;  %v6399_v23 = vcombine.low %v476_v11, %v480_v12 }
  0xef   : > { %v608_v14 = vld [vmem:[%s8213_s10 + $0x660] sm:$0xff]  ;;  %3562 = vmatpush1.bf16.msra.mxu1 %v6519_v16 }
  0xf0   : > { %v6528_v18 = vcombine.high %v604_v13, %v608_v14  ;;  %v484_v19 = vld [vmem:[%s8213_s10 + $0x280] sm:$0xff]  ;;  %3522 = vmatprep.subr.bf16.mxu0 %v6400_v17  ;;  %v6527_v24 = vcombine.low %v604_v13, %v608_v14  ;;  %v8320_v17 = vcombine.low %v8261_v54, %v8261_v54 }
  0xf1   : > { %v488_v20 = vld [vmem:[%s8213_s10 + $0x2a0] sm:$0xff]  ;;  %3523 = vmatpush1.bf16.msra.mxu0 %v6399_v23  ;;  %v8332_v23 = vld [vmem:[%s8206_s16 + $0x18] sm:$0xff] }
  0xf2   : > { %v612_v21 = vld [vmem:[%s8213_s10 + $0x680] sm:$0xff]  ;;  %v6408_v25 = vcombine.high %v484_v19, %v488_v20  ;;  %3563 = vmatprep.subr.bf16.mxu1 %v6528_v18  ;;  %v6407_v31 = vcombine.low %v484_v19, %v488_v20  ;;  %v8325_v20 = vld [vmem:[%s8206_s16 + $0x10] sm:$0xff] }
  0xf3   : > { %v616_v22 = vld [vmem:[%s8213_s10 + $0x6a0] sm:$0xff]  ;;  %3564 = vmatpush1.bf16.msra.mxu1 %v6527_v24 }
  0xf4   : > { %v6536_v26 = vcombine.high %v612_v21, %v616_v22  ;;  %v492_v27 = vld [vmem:[%s8213_s10 + $0x2c0] sm:$0xff]  ;;  %3524 = vmatprep.subr.bf16.mxu0 %v6408_v25  ;;  %v6535_v32 = vcombine.low %v612_v21, %v616_v22  ;;  %v8329_v21 = vcombine.low %v8264_v55, %v8264_v55 }
  0xf5   : > { %v496_v28 = vld [vmem:[%s8213_s10 + $0x2e0] sm:$0xff]  ;;  %3525 = vmatpush1.bf16.msra.mxu0 %v6407_v31 }
  0xf6   : > { %v620_v29 = vld [vmem:[%s8213_s10 + $0x6c0] sm:$0xff]  ;;  %v6416_v33 = vcombine.high %v492_v27, %v496_v28  ;;  %3565 = vmatprep.subr.bf16.mxu1 %v6536_v26  ;;  %v6415_v39 = vcombine.low %v492_v27, %v496_v28  ;;  %v8338_v28 = vcombine.high %v8325_v20, %v8325_v20 }
  0xf7   : > { %v624_v30 = vld [vmem:[%s8213_s10 + $0x6e0] sm:$0xff]  ;;  %3566 = vmatpush1.bf16.msra.mxu1 %v6535_v32 }
  0xf8   : > { %v6544_v34 = vcombine.high %v620_v29, %v624_v30  ;;  %v500_v35 = vld [vmem:[%s8213_s10 + $0x300] sm:$0xff]  ;;  %3526 = vmatprep.subr.bf16.mxu0 %v6416_v33  ;;  %v6543_v40 = vcombine.low %v620_v29, %v624_v30  ;;  %v8345_v30 = vcombine.high %v8332_v23, %v8332_v23 }
  0xf9   : > { %v504_v36 = vld [vmem:[%s8213_s10 + $0x320] sm:$0xff]  ;;  %3527 = vmatpush1.bf16.msra.mxu0 %v6415_v39 }
  0xfa   : > { %v628_v37 = vld [vmem:[%s8213_s10 + $0x700] sm:$0xff]  ;;  %v6424_v41 = vcombine.high %v500_v35, %v504_v36  ;;  %3567 = vmatprep.subr.bf16.mxu1 %v6544_v34  ;;  %v6423_v47 = vcombine.low %v500_v35, %v504_v36 }
  0xfb   : > { %v632_v38 = vld [vmem:[%s8213_s10 + $0x720] sm:$0xff]  ;;  %3568 = vmatpush1.bf16.msra.mxu1 %v6543_v40 }
  0xfc   : > { %v6552_v42 = vcombine.high %v628_v37, %v632_v38  ;;  %v508_v43 = vld [vmem:[%s8213_s10 + $0x340] sm:$0xff]  ;;  %3528 = vmatprep.subr.bf16.mxu0 %v6424_v41  ;;  %v6551_v48 = vcombine.low %v628_v37, %v632_v38 }
  0xfd   : > { %v512_v44 = vld [vmem:[%s8213_s10 + $0x360] sm:$0xff]  ;;  %3529 = vmatpush1.bf16.msra.mxu0 %v6423_v47 }
  0xfe   : > { %v636_v45 = vld [vmem:[%s8213_s10 + $0x740] sm:$0xff]  ;;  %v6432_v49 = vcombine.high %v508_v43, %v512_v44  ;;  %3569 = vmatprep.subr.bf16.mxu1 %v6552_v42  ;;  %v6431_v57 = vcombine.low %v508_v43, %v512_v44 }
  0xff   : > { %v640_v46 = vld [vmem:[%s8213_s10 + $0x760] sm:$0xff]  ;;  %3570 = vmatpush1.bf16.msra.mxu1 %v6551_v48 }
 0x100   : > { %v6560_v50 = vcombine.high %v636_v45, %v640_v46  ;;  %v516_v51 = vld [vmem:[%s8213_s10 + $0x380] sm:$0xff]  ;;  %3530 = vmatprep.subr.bf16.mxu0 %v6432_v49  ;;  %v6559_v58 = vcombine.low %v636_v45, %v640_v46 }
 0x101   : > { %v520_v52 = vld [vmem:[%s8213_s10 + $0x3a0] sm:$0xff]  ;;  %3531 = vmatpush1.bf16.msra.mxu0 %v6431_v57 }
 0x102   : > { %v644_v53 = vld [vmem:[%s8213_s10 + $0x780] sm:$0xff]  ;;  %v6440_v61 = vcombine.high %v516_v51, %v520_v52  ;;  %3571 = vmatprep.subr.bf16.mxu1 %v6560_v50  ;;  %v6439_v3 = vcombine.low %v516_v51, %v520_v52 }
 0x103   : > { %v648_v56 = vld [vmem:[%s8213_s10 + $0x7a0] sm:$0xff]  ;;  %3572 = vmatpush1.bf16.msra.mxu1 %v6559_v58 }
 0x104   : > { %v6568_v62 = vcombine.high %v644_v53, %v648_v56  ;;  %v524_v63 = vld [vmem:[%s8213_s10 + $0x3c0] sm:$0xff]  ;;  %3532 = vmatprep.subr.bf16.mxu0 %v6440_v61  ;;  %v6567_v4 = vcombine.low %v644_v53, %v648_v56 }
 0x105   : > { %v528_v0 = vld [vmem:[%s8213_s10 + $0x3e0] sm:$0xff]  ;;  %3533 = vmatpush1.bf16.msra.mxu0 %v6439_v3 }
 0x106   : > { %v652_v1 = vld [vmem:[%s8213_s10 + $0x7c0] sm:$0xff]  ;;  %v6448_v5 = vcombine.high %v524_v63, %v528_v0  ;;  %3573 = vmatprep.subr.bf16.mxu1 %v6568_v62  ;;  %v6447_v11 = vcombine.low %v524_v63, %v528_v0 }
 0x107   : > { %v656_v2 = vld [vmem:[%s8213_s10 + $0x7e0] sm:$0xff]  ;;  %3574 = vmatpush1.bf16.msra.mxu1 %v6567_v4 }
 0x108   : > { %v6576_v6 = vcombine.high %v652_v1, %v656_v2  ;;  %v660_v7 = vld [vmem:[%s8213_s10 + $0x800] sm:$0xff]  ;;  %3534 = vmatprep.subr.bf16.mxu0 %v6448_v5  ;;  %v6575_v12 = vcombine.low %v652_v1, %v656_v2 }
 0x109   : > { %v664_v8 = vld [vmem:[%s8213_s10 + $0x820] sm:$0xff]  ;;  %3535 = vmatpush1.bf16.msra.mxu0 %v6447_v11 }
 0x10a   : > { %v788_v9 = vld [vmem:[%s8213_s10 + $0xc00] sm:$0xff]  ;;  %v6584_v13 = vcombine.high %v660_v7, %v664_v8  ;;  %3575 = vmatprep.subr.bf16.mxu1 %v6576_v6  ;;  %v6583_v22 = vcombine.low %v660_v7, %v664_v8 }
 0x10b   : > { %v792_v10 = vld [vmem:[%s8213_s10 + $0xc20] sm:$0xff]  ;;  %3576 = vmatpush1.bf16.msra.mxu1 %v6575_v12 }
 0x10c   : > { %v6712_v14 = vcombine.high %v788_v9, %v792_v10  ;;  %v668_v15 = vld [vmem:[%s8213_s10 + $0x840] sm:$0xff]  ;;  %3586 = vmatprep.subr.bf16.mxu0 %v6584_v13  ;;  %v6711_v24 = vcombine.low %v788_v9, %v792_v10  ;;  %3537 = vmatmul.mubr.bf16.vlgmr.msra.gmra.mrb[0].mxu0 %v8320_v17 }
 0x10d   : > { %v672_v16 = vld [vmem:[%s8213_s10 + $0x860] sm:$0xff]  ;;  %3587 = vmatpush1.bf16.msra.mxu0 %v6583_v22  ;;  %3618 = vmatprep.mubr.bf16.mxu0 %v8338_v28 }
 0x10e   : > { %v796_v18 = vld [vmem:[%s8213_s10 + $0xc40] sm:$0xff]  ;;  %v6592_v25 = vcombine.high %v668_v15, %v672_v16  ;;  %3627 = vmatprep.subr.bf16.mxu1 %v6712_v14  ;;  %3578 = vmatmul.mubr.bf16.vlgmr.msra.gmra.mrb[0].mxu1 %v8329_v21  ;;  %v6591_v31 = vcombine.low %v668_v15, %v672_v16 }
 0x10f   : > { %v800_v19 = vld [vmem:[%s8213_s10 + $0xc60] sm:$0xff]  ;;  %3628 = vmatpush1.bf16.msra.mxu1 %v6711_v24  ;;  %3659 = vmatprep.mubr.bf16.mxu1 %v8345_v30 }
 0x110   : > { %v6720_v54 = vcombine.high %v796_v18, %v800_v19  ;;  %v676_v26 = vld [vmem:[%s8213_s10 + $0x880] sm:$0xff]  ;;  %3588 = vmatprep.subr.bf16.mxu0 %v6592_v25  ;;  %v6719_v32 = vcombine.low %v796_v18, %v800_v19 }
 0x111   : > { %v680_v27 = vld [vmem:[%s8213_s10 + $0x8a0] sm:$0xff]  ;;  %3589 = vmatpush1.bf16.msra.mxu0 %v6591_v31 }
 0x112   : > { %v804_v55 = vld [vmem:[%s8213_s10 + $0xc80] sm:$0xff]  ;;  %v6600_v33 = vcombine.high %v676_v26, %v680_v27  ;;  %3629 = vmatprep.subr.bf16.mxu1 %v6720_v54  ;;  %v6599_v39 = vcombine.low %v676_v26, %v680_v27 }
 0x113   : > { %v808_v29 = vld [vmem:[%s8213_s10 + $0xca0] sm:$0xff]  ;;  %3630 = vmatpush1.bf16.msra.mxu1 %v6719_v32 }
 0x114   : > { %v6728_v34 = vcombine.high %v804_v55, %v808_v29  ;;  %v684_v35 = vld [vmem:[%s8213_s10 + $0x8c0] sm:$0xff]  ;;  %3590 = vmatprep.subr.bf16.mxu0 %v6600_v33  ;;  %v6727_v40 = vcombine.low %v804_v55, %v808_v29 }
 0x115   : > { %v688_v36 = vld [vmem:[%s8213_s10 + $0x8e0] sm:$0xff]  ;;  %3591 = vmatpush1.bf16.msra.mxu0 %v6599_v39 }
 0x116   : > { %v812_v37 = vld [vmem:[%s8213_s10 + $0xcc0] sm:$0xff]  ;;  %v6608_v41 = vcombine.high %v684_v35, %v688_v36  ;;  %3631 = vmatprep.subr.bf16.mxu1 %v6728_v34  ;;  %v6607_v47 = vcombine.low %v684_v35, %v688_v36 }
 0x117   : > { %v816_v38 = vld [vmem:[%s8213_s10 + $0xce0] sm:$0xff]  ;;  %3632 = vmatpush1.bf16.msra.mxu1 %v6727_v40 }
 0x118   : > { %v6736_v42 = vcombine.high %v812_v37, %v816_v38  ;;  %v692_v43 = vld [vmem:[%s8213_s10 + $0x900] sm:$0xff]  ;;  %3592 = vmatprep.subr.bf16.mxu0 %v6608_v41  ;;  %v6735_v48 = vcombine.low %v812_v37, %v816_v38 }
 0x119   : > { %v696_v44 = vld [vmem:[%s8213_s10 + $0x920] sm:$0xff]  ;;  %3593 = vmatpush1.bf16.msra.mxu0 %v6607_v47 }
 0x11a   : > { %v820_v45 = vld [vmem:[%s8213_s10 + $0xd00] sm:$0xff]  ;;  %v6616_v49 = vcombine.high %v692_v43, %v696_v44  ;;  %3633 = vmatprep.subr.bf16.mxu1 %v6736_v42  ;;  %v6615_v57 = vcombine.low %v692_v43, %v696_v44 }
 0x11b   : > { %v824_v46 = vld [vmem:[%s8213_s10 + $0xd20] sm:$0xff]  ;;  %3634 = vmatpush1.bf16.msra.mxu1 %v6735_v48 }
 0x11c   : > { %v6744_v50 = vcombine.high %v820_v45, %v824_v46  ;;  %v700_v51 = vld [vmem:[%s8213_s10 + $0x940] sm:$0xff]  ;;  %3594 = vmatprep.subr.bf16.mxu0 %v6616_v49  ;;  %v6743_v58 = vcombine.low %v820_v45, %v824_v46 }
 0x11d   : > { %v704_v52 = vld [vmem:[%s8213_s10 + $0x960] sm:$0xff]  ;;  %3595 = vmatpush1.bf16.msra.mxu0 %v6615_v57 }
 0x11e   : > { %v828_v53 = vld [vmem:[%s8213_s10 + $0xd40] sm:$0xff]  ;;  %v6624_v61 = vcombine.high %v700_v51, %v704_v52  ;;  %3635 = vmatprep.subr.bf16.mxu1 %v6744_v50  ;;  %v6623_v3 = vcombine.low %v700_v51, %v704_v52 }
 0x11f   : > { %v832_v56 = vld [vmem:[%s8213_s10 + $0xd60] sm:$0xff]  ;;  %3636 = vmatpush1.bf16.msra.mxu1 %v6743_v58 }
 0x120   : > { %v6752_v62 = vcombine.high %v828_v53, %v832_v56  ;;  %v708_v63 = vld [vmem:[%s8213_s10 + $0x980] sm:$0xff]  ;;  %3596 = vmatprep.subr.bf16.mxu0 %v6624_v61  ;;  %v6751_v4 = vcombine.low %v828_v53, %v832_v56 }
 0x121   : > { %v712_v0 = vld [vmem:[%s8213_s10 + $0x9a0] sm:$0xff]  ;;  %3597 = vmatpush1.bf16.msra.mxu0 %v6623_v3 }
 0x122   : > { %v836_v1 = vld [vmem:[%s8213_s10 + $0xd80] sm:$0xff]  ;;  %v6632_v5 = vcombine.high %v708_v63, %v712_v0  ;;  %3637 = vmatprep.subr.bf16.mxu1 %v6752_v62  ;;  %v6631_v11 = vcombine.low %v708_v63, %v712_v0 }
 0x123   : > { %v840_v2 = vld [vmem:[%s8213_s10 + $0xda0] sm:$0xff]  ;;  %3638 = vmatpush1.bf16.msra.mxu1 %v6751_v4 }
 0x124   : > { %v6760_v6 = vcombine.high %v836_v1, %v840_v2  ;;  %v716_v7 = vld [vmem:[%s8213_s10 + $0x9c0] sm:$0xff]  ;;  %3598 = vmatprep.subr.bf16.mxu0 %v6632_v5  ;;  %v6759_v12 = vcombine.low %v836_v1, %v840_v2 }
 0x125   : > { %v720_v8 = vld [vmem:[%s8213_s10 + $0x9e0] sm:$0xff]  ;;  %3599 = vmatpush1.bf16.msra.mxu0 %v6631_v11 }
 0x126   : > { %v844_v9 = vld [vmem:[%s8213_s10 + $0xdc0] sm:$0xff]  ;;  %v6640_v13 = vcombine.high %v716_v7, %v720_v8  ;;  %3639 = vmatprep.subr.bf16.mxu1 %v6760_v6  ;;  %v6639_v22 = vcombine.low %v716_v7, %v720_v8 }
 0x127   : > { %v848_v10 = vld [vmem:[%s8213_s10 + $0xde0] sm:$0xff]  ;;  %3640 = vmatpush1.bf16.msra.mxu1 %v6759_v12 }
 0x128   : > { %v6768_v14 = vcombine.high %v844_v9, %v848_v10  ;;  %v724_v15 = vld [vmem:[%s8213_s10 + $0xa00] sm:$0xff]  ;;  %3600 = vmatprep.subr.bf16.mxu0 %v6640_v13  ;;  %v6767_v24 = vcombine.low %v844_v9, %v848_v10 }
 0x129   : > { %v728_v16 = vld [vmem:[%s8213_s10 + $0xa20] sm:$0xff]  ;;  %3601 = vmatpush1.bf16.msra.mxu0 %v6639_v22 }
 0x12a   : > { %v852_v18 = vld [vmem:[%s8213_s10 + $0xe00] sm:$0xff]  ;;  %v6648_v25 = vcombine.high %v724_v15, %v728_v16  ;;  %3641 = vmatprep.subr.bf16.mxu1 %v6768_v14  ;;  %v6647_v31 = vcombine.low %v724_v15, %v728_v16 }
 0x12b   : > { %v856_v19 = vld [vmem:[%s8213_s10 + $0xe20] sm:$0xff]  ;;  %3642 = vmatpush1.bf16.msra.mxu1 %v6767_v24 }
 0x12c   : > { %v6776_v54 = vcombine.high %v852_v18, %v856_v19  ;;  %v732_v26 = vld [vmem:[%s8213_s10 + $0xa40] sm:$0xff]  ;;  %3602 = vmatprep.subr.bf16.mxu0 %v6648_v25  ;;  %v6775_v32 = vcombine.low %v852_v18, %v856_v19 }
 0x12d   : > { %v736_v27 = vld [vmem:[%s8213_s10 + $0xa60] sm:$0xff]  ;;  %3603 = vmatpush1.bf16.msra.mxu0 %v6647_v31 }
 0x12e   : > { %v860_v55 = vld [vmem:[%s8213_s10 + $0xe40] sm:$0xff]  ;;  %v6656_v33 = vcombine.high %v732_v26, %v736_v27  ;;  %3643 = vmatprep.subr.bf16.mxu1 %v6776_v54  ;;  %v6655_v39 = vcombine.low %v732_v26, %v736_v27  ;;  %v405_v26 = vld [vmem:[%s8213_s10 + $0x8] sm:$0xff] }
 0x12f   : > { %v864_v29 = vld [vmem:[%s8213_s10 + $0xe60] sm:$0xff]  ;;  %3644 = vmatpush1.bf16.msra.mxu1 %v6775_v32  ;;  %v409_v27 = vld [vmem:[%s8213_s10 + $0x28] sm:$0xff] }
 0x130   : > { %v6784_v34 = vcombine.high %v860_v55, %v864_v29  ;;  %v740_v35 = vld [vmem:[%s8213_s10 + $0xa80] sm:$0xff]  ;;  %3604 = vmatprep.subr.bf16.mxu0 %v6656_v33  ;;  %v6783_v40 = vcombine.low %v860_v55, %v864_v29  ;;  %v533_v55 = vld [vmem:[%s8213_s10 + $0x408] sm:$0xff]  ;;  %v6330_v33 = vcombine.high %v405_v26, %v409_v27 }
 0x131   : > { %v744_v36 = vld [vmem:[%s8213_s10 + $0xaa0] sm:$0xff]  ;;  %3605 = vmatpush1.bf16.msra.mxu0 %v6655_v39  ;;  %v537_v29 = vld [vmem:[%s8213_s10 + $0x428] sm:$0xff] }
 0x132   : > { %v868_v37 = vld [vmem:[%s8213_s10 + $0xe80] sm:$0xff]  ;;  %v6664_v41 = vcombine.high %v740_v35, %v744_v36  ;;  %3645 = vmatprep.subr.bf16.mxu1 %v6784_v34  ;;  %v6663_v47 = vcombine.low %v740_v35, %v744_v36  ;;  %v6458_v34 = vcombine.high %v533_v55, %v537_v29  ;;  %v413_v35 = vld [vmem:[%s8213_s10 + $0x48] sm:$0xff] }
 0x133   : > { %v872_v38 = vld [vmem:[%s8213_s10 + $0xea0] sm:$0xff]  ;;  %3646 = vmatpush1.bf16.msra.mxu1 %v6783_v40  ;;  %v417_v36 = vld [vmem:[%s8213_s10 + $0x68] sm:$0xff]  ;;  %v8416_v40 = vcombine.low %v8332_v23, %v8332_v23 }
 0x134   : > { %v6792_v42 = vcombine.high %v868_v37, %v872_v38  ;;  %v748_v43 = vld [vmem:[%s8213_s10 + $0xac0] sm:$0xff]  ;;  %3606 = vmatprep.subr.bf16.mxu0 %v6664_v41  ;;  %v6791_v48 = vcombine.low %v868_v37, %v872_v38  ;;  %v8410_v37 = vcombine.low %v8325_v20, %v8325_v20  ;;  %v541_v38 = vld [vmem:[%s8213_s10 + $0x448] sm:$0xff]  ;;  %v6329_v41 = vcombine.low %v405_v26, %v409_v27 }
 0x135   : > { %v752_v44 = vld [vmem:[%s8213_s10 + $0xae0] sm:$0xff]  ;;  %3607 = vmatpush1.bf16.msra.mxu0 %v6663_v47  ;;  %v545_v39 = vld [vmem:[%s8213_s10 + $0x468] sm:$0xff]  ;;  %v6337_v23 = vcombine.low %v413_v35, %v417_v36 }
 0x136   : > { %v876_v45 = vld [vmem:[%s8213_s10 + $0xec0] sm:$0xff]  ;;  %v6672_v49 = vcombine.high %v748_v43, %v752_v44  ;;  %3647 = vmatprep.subr.bf16.mxu1 %v6792_v42  ;;  %v6671_v57 = vcombine.low %v748_v43, %v752_v44  ;;  %v6457_v42 = vcombine.low %v533_v55, %v537_v29  ;;  %v6338_v43 = vcombine.high %v413_v35, %v417_v36  ;;  %v425_v20 = vld [vmem:[%s8213_s10 + $0xa8] sm:$0xff] }
 0x137   : > { %v880_v46 = vld [vmem:[%s8213_s10 + $0xee0] sm:$0xff]  ;;  %3648 = vmatpush1.bf16.msra.mxu1 %v6791_v48  ;;  %v6466_v44 = vcombine.high %v541_v38, %v545_v39  ;;  %v553_v47 = vld [vmem:[%s8213_s10 + $0x4a8] sm:$0xff]  ;;  %v6465_v48 = vcombine.low %v541_v38, %v545_v39 }
 0x138   : > { %v6800_v50 = vcombine.high %v876_v45, %v880_v46  ;;  %v756_v51 = vld [vmem:[%s8213_s10 + $0xb00] sm:$0xff]  ;;  %3608 = vmatprep.subr.bf16.mxu0 %v6672_v49  ;;  %v6799_v58 = vcombine.low %v876_v45, %v880_v46  ;;  %v421_v45 = vld [vmem:[%s8213_s10 + $0x88] sm:$0xff] }
 0x139   : > { %v760_v52 = vld [vmem:[%s8213_s10 + $0xb20] sm:$0xff]  ;;  %3609 = vmatpush1.bf16.msra.mxu0 %v6671_v57  ;;  %v549_v46 = vld [vmem:[%s8213_s10 + $0x488] sm:$0xff]  ;;  %v6346_v49 = vcombine.high %v421_v45, %v425_v20  ;;  %v6345_v57 = vcombine.low %v421_v45, %v425_v20 }
 0x13a   : > { %v884_v53 = vld [vmem:[%s8213_s10 + $0xf00] sm:$0xff]  ;;  %v6680_v61 = vcombine.high %v756_v51, %v760_v52  ;;  %3649 = vmatprep.subr.bf16.mxu1 %v6800_v50  ;;  %v6679_v3 = vcombine.low %v756_v51, %v760_v52  ;;  %v6474_v50 = vcombine.high %v549_v46, %v553_v47  ;;  %v429_v51 = vld [vmem:[%s8213_s10 + $0xc8] sm:$0xff] }
 0x13b   : > { %v888_v56 = vld [vmem:[%s8213_s10 + $0xf20] sm:$0xff]  ;;  %3650 = vmatpush1.bf16.msra.mxu1 %v6799_v58  ;;  %v433_v52 = vld [vmem:[%s8213_s10 + $0xe8] sm:$0xff]  ;;  %v6473_v58 = vcombine.low %v549_v46, %v553_v47 }
 0x13c   : > { %v6808_v62 = vcombine.high %v884_v53, %v888_v56  ;;  %v764_v63 = vld [vmem:[%s8213_s10 + $0xb40] sm:$0xff]  ;;  %3610 = vmatprep.subr.bf16.mxu0 %v6680_v61  ;;  %v6807_v4 = vcombine.low %v884_v53, %v888_v56  ;;  %v557_v53 = vld [vmem:[%s8213_s10 + $0x4c8] sm:$0xff]  ;;  %v6354_v61 = vcombine.high %v429_v51, %v433_v52 }
 0x13d   : > { %v768_v0 = vld [vmem:[%s8213_s10 + $0xb60] sm:$0xff]  ;;  %3611 = vmatpush1.bf16.msra.mxu0 %v6679_v3  ;;  %v561_v56 = vld [vmem:[%s8213_s10 + $0x4e8] sm:$0xff]  ;;  %v6353_v3 = vcombine.low %v429_v51, %v433_v52 }
 0x13e   : > { %v892_v1 = vld [vmem:[%s8213_s10 + $0xf40] sm:$0xff]  ;;  %v6688_v5 = vcombine.high %v764_v63, %v768_v0  ;;  %3651 = vmatprep.subr.bf16.mxu1 %v6808_v62  ;;  %v6687_v11 = vcombine.low %v764_v63, %v768_v0  ;;  %v6482_v62 = vcombine.high %v557_v53, %v561_v56  ;;  %v437_v63 = vld [vmem:[%s8213_s10 + $0x108] sm:$0xff] }
 0x13f   : > { %v896_v2 = vld [vmem:[%s8213_s10 + $0xf60] sm:$0xff]  ;;  %3652 = vmatpush1.bf16.msra.mxu1 %v6807_v4  ;;  %v441_v0 = vld [vmem:[%s8213_s10 + $0x128] sm:$0xff]  ;;  %v6481_v4 = vcombine.low %v557_v53, %v561_v56 }
 0x140   : > { %v6816_v6 = vcombine.high %v892_v1, %v896_v2  ;;  %v772_v7 = vld [vmem:[%s8213_s10 + $0xb80] sm:$0xff]  ;;  %3612 = vmatprep.subr.bf16.mxu0 %v6688_v5  ;;  %v6815_v12 = vcombine.low %v892_v1, %v896_v2  ;;  %v565_v1 = vld [vmem:[%s8213_s10 + $0x508] sm:$0xff]  ;;  %v6362_v5 = vcombine.high %v437_v63, %v441_v0 }
 0x141   : > { %v776_v8 = vld [vmem:[%s8213_s10 + $0xba0] sm:$0xff]  ;;  %3613 = vmatpush1.bf16.msra.mxu0 %v6687_v11  ;;  %v569_v2 = vld [vmem:[%s8213_s10 + $0x528] sm:$0xff]  ;;  %v6361_v11 = vcombine.low %v437_v63, %v441_v0 }
 0x142   : > { %v900_v9 = vld [vmem:[%s8213_s10 + $0xf80] sm:$0xff]  ;;  %v6696_v13 = vcombine.high %v772_v7, %v776_v8  ;;  %3653 = vmatprep.subr.bf16.mxu1 %v6816_v6  ;;  %v6695_v22 = vcombine.low %v772_v7, %v776_v8  ;;  %v6490_v6 = vcombine.high %v565_v1, %v569_v2  ;;  %v445_v7 = vld [vmem:[%s8213_s10 + $0x148] sm:$0xff] }
 0x143   : > { %v904_v10 = vld [vmem:[%s8213_s10 + $0xfa0] sm:$0xff]  ;;  %3654 = vmatpush1.bf16.msra.mxu1 %v6815_v12  ;;  %v449_v8 = vld [vmem:[%s8213_s10 + $0x168] sm:$0xff]  ;;  %v6489_v12 = vcombine.low %v565_v1, %v569_v2 }
 0x144   : > { %v6824_v14 = vcombine.high %v900_v9, %v904_v10  ;;  %v780_v15 = vld [vmem:[%s8213_s10 + $0xbc0] sm:$0xff]  ;;  %3614 = vmatprep.subr.bf16.mxu0 %v6696_v13  ;;  %v6823_v24 = vcombine.low %v900_v9, %v904_v10  ;;  %v573_v9 = vld [vmem:[%s8213_s10 + $0x548] sm:$0xff]  ;;  %v6370_v13 = vcombine.high %v445_v7, %v449_v8 }
 0x145   : > { %v784_v16 = vld [vmem:[%s8213_s10 + $0xbe0] sm:$0xff]  ;;  %3615 = vmatpush1.bf16.msra.mxu0 %v6695_v22  ;;  %v577_v10 = vld [vmem:[%s8213_s10 + $0x568] sm:$0xff]  ;;  %v6369_v22 = vcombine.low %v445_v7, %v449_v8 }
 0x146   : > { %v908_v18 = vld [vmem:[%s8213_s10 + $0xfc0] sm:$0xff]  ;;  %v6704_v25 = vcombine.high %v780_v15, %v784_v16  ;;  %3655 = vmatprep.subr.bf16.mxu1 %v6824_v14  ;;  %v6703_v31 = vcombine.low %v780_v15, %v784_v16  ;;  %v6498_v14 = vcombine.high %v573_v9, %v577_v10  ;;  %v453_v15 = vld [vmem:[%s8213_s10 + $0x188] sm:$0xff] }
 0x147   : > { %v912_v19 = vld [vmem:[%s8213_s10 + $0xfe0] sm:$0xff]  ;;  %3656 = vmatpush1.bf16.msra.mxu1 %v6823_v24  ;;  %v457_v16 = vld [vmem:[%s8213_s10 + $0x1a8] sm:$0xff]  ;;  %v6497_v24 = vcombine.low %v573_v9, %v577_v10 }
 0x148   : > { %v6832_v54 = vcombine.high %v908_v18, %v912_v19  ;;  %3616 = vmatprep.subr.bf16.mxu0 %v6704_v25  ;;  %v6831_v32 = vcombine.low %v908_v18, %v912_v19  ;;  %v581_v18 = vld [vmem:[%s8213_s10 + $0x588] sm:$0xff]  ;;  %v6378_v25 = vcombine.high %v453_v15, %v457_v16 }
 0x149   : > { %3617 = vmatpush1.bf16.msra.mxu0 %v6703_v31  ;;  %v585_v19 = vld [vmem:[%s8213_s10 + $0x5a8] sm:$0xff]  ;;  %v6377_v31 = vcombine.low %v453_v15, %v457_v16 }
 0x14a   : > { %3657 = vmatprep.subr.bf16.mxu1 %v6832_v54  ;;  %3668 = vmatprep.subr.bf16.mxu0 %v6330_v33  ;;  %v6506_v54 = vcombine.high %v581_v18, %v585_v19  ;;  %v461_v26 = vld [vmem:[%s8213_s10 + $0x1c8] sm:$0xff] }
 0x14b   : > { %3658 = vmatpush1.bf16.msra.mxu1 %v6831_v32  ;;  %v465_v27 = vld [vmem:[%s8213_s10 + $0x1e8] sm:$0xff]  ;;  %v6505_v32 = vcombine.low %v581_v18, %v585_v19 }
 0x14c   : > { %3709 = vmatprep.subr.bf16.mxu1 %v6458_v34  ;;  %3619 = vmatmul.mubr.bf16.vlgmr.msra.gmra.mrb[4].mxu0 %v8410_v37  ;;  %v589_v55 = vld [vmem:[%s8213_s10 + $0x5c8] sm:$0xff]  ;;  %v6386_v33 = vcombine.high %v461_v26, %v465_v27 }
 0x14d   : > { %3669 = vmatpush1.bf16.msra.mxu0 %v6329_v41  ;;  %3700 = vmatprep.mubr.bf16.mxu0 %v8270_v59  ;;  %v593_v29 = vld [vmem:[%s8213_s10 + $0x5e8] sm:$0xff]  ;;  %v6385_v41 = vcombine.low %v461_v26, %v465_v27 }
 0x14e   : > { %3660 = vmatmul.mubr.bf16.vlgmr.msra.gmra.mrb[4].mxu1 %v8416_v40  ;;  %3670 = vmatprep.subr.bf16.mxu0 %v6338_v43  ;;  %v6514_v34 = vcombine.high %v589_v55, %v593_v29  ;;  %v469_v35 = vld [vmem:[%s8213_s10 + $0x208] sm:$0xff] }
 0x14f   : > { %3710 = vmatpush1.bf16.msra.mxu1 %v6457_v42  ;;  %3741 = vmatprep.mubr.bf16.mxu1 %v8274_v60  ;;  %v473_v36 = vld [vmem:[%s8213_s10 + $0x228] sm:$0xff]  ;;  %v6513_v42 = vcombine.low %v589_v55, %v593_v29 }
 0x150   : > { %3711 = vmatprep.subr.bf16.mxu1 %v6466_v44  ;;  %v597_v38 = vld [vmem:[%s8213_s10 + $0x608] sm:$0xff]  ;;  %v6394_v43 = vcombine.high %v469_v35, %v473_v36 }
 0x151   : > { %3671 = vmatpush1.bf16.msra.mxu0 %v6337_v23  ;;  %v601_v39 = vld [vmem:[%s8213_s10 + $0x628] sm:$0xff]  ;;  %v6393_v23 = vcombine.low %v469_v35, %v473_v36 }
 0x152   : > { %3672 = vmatprep.subr.bf16.mxu0 %v6346_v49  ;;  %v6522_v44 = vcombine.high %v597_v38, %v601_v39  ;;  %v477_v45 = vld [vmem:[%s8213_s10 + $0x248] sm:$0xff] }
 0x153   : > { %3712 = vmatpush1.bf16.msra.mxu1 %v6465_v48  ;;  %v481_v20 = vld [vmem:[%s8213_s10 + $0x268] sm:$0xff]  ;;  %v6521_v48 = vcombine.low %v597_v38, %v601_v39 }
 0x154   : > { %3713 = vmatprep.subr.bf16.mxu1 %v6474_v50  ;;  %v605_v46 = vld [vmem:[%s8213_s10 + $0x648] sm:$0xff]  ;;  %v6402_v49 = vcombine.high %v477_v45, %v481_v20 }
 0x155   : > { %3673 = vmatpush1.bf16.msra.mxu0 %v6345_v57  ;;  %v609_v47 = vld [vmem:[%s8213_s10 + $0x668] sm:$0xff]  ;;  %v6401_v57 = vcombine.low %v477_v45, %v481_v20 }
 0x156   : > { %3674 = vmatprep.subr.bf16.mxu0 %v6354_v61  ;;  %v6530_v50 = vcombine.high %v605_v46, %v609_v47  ;;  %v485_v51 = vld [vmem:[%s8213_s10 + $0x288] sm:$0xff] }
 0x157   : > { %3714 = vmatpush1.bf16.msra.mxu1 %v6473_v58  ;;  %v489_v52 = vld [vmem:[%s8213_s10 + $0x2a8] sm:$0xff]  ;;  %v6529_v58 = vcombine.low %v605_v46, %v609_v47 }
 0x158   : > { %3715 = vmatprep.subr.bf16.mxu1 %v6482_v62  ;;  %v613_v53 = vld [vmem:[%s8213_s10 + $0x688] sm:$0xff]  ;;  %v6410_v61 = vcombine.high %v485_v51, %v489_v52 }
 0x159   : > { %3675 = vmatpush1.bf16.msra.mxu0 %v6353_v3  ;;  %v617_v56 = vld [vmem:[%s8213_s10 + $0x6a8] sm:$0xff]  ;;  %v6409_v3 = vcombine.low %v485_v51, %v489_v52 }
 0x15a   : > { %3676 = vmatprep.subr.bf16.mxu0 %v6362_v5  ;;  %v6538_v62 = vcombine.high %v613_v53, %v617_v56  ;;  %v493_v63 = vld [vmem:[%s8213_s10 + $0x2c8] sm:$0xff] }
 0x15b   : > { %3716 = vmatpush1.bf16.msra.mxu1 %v6481_v4  ;;  %v497_v0 = vld [vmem:[%s8213_s10 + $0x2e8] sm:$0xff]  ;;  %v6537_v4 = vcombine.low %v613_v53, %v617_v56 }
 0x15c   : > { %3717 = vmatprep.subr.bf16.mxu1 %v6490_v6  ;;  %v621_v1 = vld [vmem:[%s8213_s10 + $0x6c8] sm:$0xff]  ;;  %v6418_v5 = vcombine.high %v493_v63, %v497_v0 }
 0x15d   : > { %3677 = vmatpush1.bf16.msra.mxu0 %v6361_v11  ;;  %v625_v2 = vld [vmem:[%s8213_s10 + $0x6e8] sm:$0xff]  ;;  %v6417_v11 = vcombine.low %v493_v63, %v497_v0 }
 0x15e   : > { %3678 = vmatprep.subr.bf16.mxu0 %v6370_v13  ;;  %v6546_v6 = vcombine.high %v621_v1, %v625_v2  ;;  %v501_v7 = vld [vmem:[%s8213_s10 + $0x308] sm:$0xff] }
 0x15f   : > { %3718 = vmatpush1.bf16.msra.mxu1 %v6489_v12  ;;  %v505_v8 = vld [vmem:[%s8213_s10 + $0x328] sm:$0xff]  ;;  %v6545_v12 = vcombine.low %v621_v1, %v625_v2 }
 0x160   : > { %3719 = vmatprep.subr.bf16.mxu1 %v6498_v14  ;;  %v629_v9 = vld [vmem:[%s8213_s10 + $0x708] sm:$0xff]  ;;  %v6426_v13 = vcombine.high %v501_v7, %v505_v8 }
 0x161   : > { %3679 = vmatpush1.bf16.msra.mxu0 %v6369_v22  ;;  %v633_v10 = vld [vmem:[%s8213_s10 + $0x728] sm:$0xff]  ;;  %v6425_v22 = vcombine.low %v501_v7, %v505_v8 }
 0x162   : > { %3680 = vmatprep.subr.bf16.mxu0 %v6378_v25  ;;  %v6554_v14 = vcombine.high %v629_v9, %v633_v10  ;;  %v509_v15 = vld [vmem:[%s8213_s10 + $0x348] sm:$0xff] }
 0x163   : > { %3720 = vmatpush1.bf16.msra.mxu1 %v6497_v24  ;;  %v513_v16 = vld [vmem:[%s8213_s10 + $0x368] sm:$0xff]  ;;  %v6553_v24 = vcombine.low %v629_v9, %v633_v10 }
 0x164   : > { %3721 = vmatprep.subr.bf16.mxu1 %v6506_v54  ;;  %v637_v18 = vld [vmem:[%s8213_s10 + $0x748] sm:$0xff]  ;;  %v6434_v25 = vcombine.high %v509_v15, %v513_v16 }
 0x165   : > { %3681 = vmatpush1.bf16.msra.mxu0 %v6377_v31  ;;  %v641_v19 = vld [vmem:[%s8213_s10 + $0x768] sm:$0xff]  ;;  %v6433_v31 = vcombine.low %v509_v15, %v513_v16 }
 0x166   : > { %3682 = vmatprep.subr.bf16.mxu0 %v6386_v33  ;;  %v6562_v54 = vcombine.high %v637_v18, %v641_v19  ;;  %v517_v26 = vld [vmem:[%s8213_s10 + $0x388] sm:$0xff] }
 0x167   : > { %3722 = vmatpush1.bf16.msra.mxu1 %v6505_v32  ;;  %v521_v27 = vld [vmem:[%s8213_s10 + $0x3a8] sm:$0xff]  ;;  %v6561_v32 = vcombine.low %v637_v18, %v641_v19 }
 0x168   : > { %3723 = vmatprep.subr.bf16.mxu1 %v6514_v34  ;;  %v645_v55 = vld [vmem:[%s8213_s10 + $0x788] sm:$0xff]  ;;  %v6442_v33 = vcombine.high %v517_v26, %v521_v27 }
 0x169   : > { %3683 = vmatpush1.bf16.msra.mxu0 %v6385_v41  ;;  %v649_v29 = vld [vmem:[%s8213_s10 + $0x7a8] sm:$0xff]  ;;  %v6441_v41 = vcombine.low %v517_v26, %v521_v27 }
 0x16a   : > { %3684 = vmatprep.subr.bf16.mxu0 %v6394_v43  ;;  %v6570_v34 = vcombine.high %v645_v55, %v649_v29  ;;  %v525_v35 = vld [vmem:[%s8213_s10 + $0x3c8] sm:$0xff] }
 0x16b   : > { %3724 = vmatpush1.bf16.msra.mxu1 %v6513_v42  ;;  %v529_v36 = vld [vmem:[%s8213_s10 + $0x3e8] sm:$0xff]  ;;  %v6569_v42 = vcombine.low %v645_v55, %v649_v29 }
 0x16c   : > { %3725 = vmatprep.subr.bf16.mxu1 %v6522_v44  ;;  %v653_v38 = vld [vmem:[%s8213_s10 + $0x7c8] sm:$0xff]  ;;  %v6450_v43 = vcombine.high %v525_v35, %v529_v36 }
 0x16d   : > { %3685 = vmatpush1.bf16.msra.mxu0 %v6393_v23  ;;  %v657_v39 = vld [vmem:[%s8213_s10 + $0x7e8] sm:$0xff]  ;;  %v6449_v23 = vcombine.low %v525_v35, %v529_v36 }
 0x16e   : > { %3686 = vmatprep.subr.bf16.mxu0 %v6402_v49  ;;  %v6578_v44 = vcombine.high %v653_v38, %v657_v39  ;;  %v661_v45 = vld [vmem:[%s8213_s10 + $0x808] sm:$0xff] }
 0x16f   : > { %3726 = vmatpush1.bf16.msra.mxu1 %v6521_v48  ;;  %v665_v20 = vld [vmem:[%s8213_s10 + $0x828] sm:$0xff]  ;;  %v6577_v48 = vcombine.low %v653_v38, %v657_v39 }
 0x170   : > { %3727 = vmatprep.subr.bf16.mxu1 %v6530_v50  ;;  %v789_v46 = vld [vmem:[%s8213_s10 + $0xc08] sm:$0xff]  ;;  %v6586_v49 = vcombine.high %v661_v45, %v665_v20 }
 0x171   : > { %3687 = vmatpush1.bf16.msra.mxu0 %v6401_v57  ;;  %v793_v47 = vld [vmem:[%s8213_s10 + $0xc28] sm:$0xff]  ;;  %v6585_v57 = vcombine.low %v661_v45, %v665_v20 }
 0x172   : > { %3688 = vmatprep.subr.bf16.mxu0 %v6410_v61  ;;  %v6714_v50 = vcombine.high %v789_v46, %v793_v47  ;;  %v669_v51 = vld [vmem:[%s8213_s10 + $0x848] sm:$0xff] }
 0x173   : > { %3728 = vmatpush1.bf16.msra.mxu1 %v6529_v58  ;;  %v673_v52 = vld [vmem:[%s8213_s10 + $0x868] sm:$0xff]  ;;  %v6713_v58 = vcombine.low %v789_v46, %v793_v47 }
 0x174   : > { %3729 = vmatprep.subr.bf16.mxu1 %v6538_v62  ;;  %v797_v53 = vld [vmem:[%s8213_s10 + $0xc48] sm:$0xff]  ;;  %v6594_v61 = vcombine.high %v669_v51, %v673_v52 }
 0x175   : > { %3689 = vmatpush1.bf16.msra.mxu0 %v6409_v3  ;;  %v801_v56 = vld [vmem:[%s8213_s10 + $0xc68] sm:$0xff]  ;;  %v6593_v3 = vcombine.low %v669_v51, %v673_v52 }
 0x176   : > { %3690 = vmatprep.subr.bf16.mxu0 %v6418_v5  ;;  %v6722_v62 = vcombine.high %v797_v53, %v801_v56  ;;  %v677_v63 = vld [vmem:[%s8213_s10 + $0x888] sm:$0xff] }
 0x177   : > { %3730 = vmatpush1.bf16.msra.mxu1 %v6537_v4  ;;  %v681_v0 = vld [vmem:[%s8213_s10 + $0x8a8] sm:$0xff]  ;;  %v6721_v4 = vcombine.low %v797_v53, %v801_v56 }
 0x178   : > { %3731 = vmatprep.subr.bf16.mxu1 %v6546_v6  ;;  %v805_v1 = vld [vmem:[%s8213_s10 + $0xc88] sm:$0xff]  ;;  %v6602_v5 = vcombine.high %v677_v63, %v681_v0 }
 0x179   : > { %3691 = vmatpush1.bf16.msra.mxu0 %v6417_v11  ;;  %v809_v2 = vld [vmem:[%s8213_s10 + $0xca8] sm:$0xff]  ;;  %v6601_v11 = vcombine.low %v677_v63, %v681_v0 }
 0x17a   : > { %3692 = vmatprep.subr.bf16.mxu0 %v6426_v13  ;;  %v6730_v6 = vcombine.high %v805_v1, %v809_v2  ;;  %v685_v7 = vld [vmem:[%s8213_s10 + $0x8c8] sm:$0xff] }
 0x17b   : > { %3732 = vmatpush1.bf16.msra.mxu1 %v6545_v12  ;;  %v689_v8 = vld [vmem:[%s8213_s10 + $0x8e8] sm:$0xff]  ;;  %v6729_v12 = vcombine.low %v805_v1, %v809_v2 }
 0x17c   : > { %3733 = vmatprep.subr.bf16.mxu1 %v6554_v14  ;;  %v813_v9 = vld [vmem:[%s8213_s10 + $0xcc8] sm:$0xff]  ;;  %v6610_v13 = vcombine.high %v685_v7, %v689_v8 }
 0x17d   : > { %3693 = vmatpush1.bf16.msra.mxu0 %v6425_v22  ;;  %v817_v10 = vld [vmem:[%s8213_s10 + $0xce8] sm:$0xff]  ;;  %v6609_v22 = vcombine.low %v685_v7, %v689_v8 }
 0x17e   : > { %3694 = vmatprep.subr.bf16.mxu0 %v6434_v25  ;;  %v6738_v14 = vcombine.high %v813_v9, %v817_v10  ;;  %v693_v15 = vld [vmem:[%s8213_s10 + $0x908] sm:$0xff] }
 0x17f   : > { %3734 = vmatpush1.bf16.msra.mxu1 %v6553_v24  ;;  %v697_v16 = vld [vmem:[%s8213_s10 + $0x928] sm:$0xff]  ;;  %v6737_v24 = vcombine.low %v813_v9, %v817_v10 }
 0x180   : > { %3735 = vmatprep.subr.bf16.mxu1 %v6562_v54  ;;  %v821_v18 = vld [vmem:[%s8213_s10 + $0xd08] sm:$0xff]  ;;  %v6618_v25 = vcombine.high %v693_v15, %v697_v16 }
 0x181   : > { %3695 = vmatpush1.bf16.msra.mxu0 %v6433_v31  ;;  %v825_v19 = vld [vmem:[%s8213_s10 + $0xd28] sm:$0xff]  ;;  %v6617_v31 = vcombine.low %v693_v15, %v697_v16 }
 0x182   : > { %3696 = vmatprep.subr.bf16.mxu0 %v6442_v33  ;;  %v6746_v54 = vcombine.high %v821_v18, %v825_v19  ;;  %v701_v26 = vld [vmem:[%s8213_s10 + $0x948] sm:$0xff] }
 0x183   : > { %3736 = vmatpush1.bf16.msra.mxu1 %v6561_v32  ;;  %v705_v27 = vld [vmem:[%s8213_s10 + $0x968] sm:$0xff]  ;;  %v6745_v32 = vcombine.low %v821_v18, %v825_v19 }
 0x184   : > { %3737 = vmatprep.subr.bf16.mxu1 %v6570_v34  ;;  %v829_v55 = vld [vmem:[%s8213_s10 + $0xd48] sm:$0xff]  ;;  %v6626_v33 = vcombine.high %v701_v26, %v705_v27 }
 0x185   : > { %3697 = vmatpush1.bf16.msra.mxu0 %v6441_v41  ;;  %v833_v29 = vld [vmem:[%s8213_s10 + $0xd68] sm:$0xff]  ;;  %v6625_v41 = vcombine.low %v701_v26, %v705_v27 }
 0x186   : > { %3698 = vmatprep.subr.bf16.mxu0 %v6450_v43  ;;  %v6754_v34 = vcombine.high %v829_v55, %v833_v29  ;;  %v709_v35 = vld [vmem:[%s8213_s10 + $0x988] sm:$0xff] }
 0x187   : > { %3738 = vmatpush1.bf16.msra.mxu1 %v6569_v42  ;;  %v713_v36 = vld [vmem:[%s8213_s10 + $0x9a8] sm:$0xff]  ;;  %v6753_v42 = vcombine.low %v829_v55, %v833_v29 }
 0x188   : > { %3739 = vmatprep.subr.bf16.mxu1 %v6578_v44  ;;  %v837_v38 = vld [vmem:[%s8213_s10 + $0xd88] sm:$0xff]  ;;  %v6634_v43 = vcombine.high %v709_v35, %v713_v36 }
 0x189   : > { %3699 = vmatpush1.bf16.msra.mxu0 %v6449_v23  ;;  %v841_v39 = vld [vmem:[%s8213_s10 + $0xda8] sm:$0xff]  ;;  %v6633_v23 = vcombine.low %v709_v35, %v713_v36 }
 0x18a   : > { %3750 = vmatprep.subr.bf16.mxu0 %v6586_v49  ;;  %v6762_v44 = vcombine.high %v837_v38, %v841_v39  ;;  %v717_v45 = vld [vmem:[%s8213_s10 + $0x9c8] sm:$0xff] }
 0x18b   : > { %3740 = vmatpush1.bf16.msra.mxu1 %v6577_v48  ;;  %v721_v20 = vld [vmem:[%s8213_s10 + $0x9e8] sm:$0xff]  ;;  %v6761_v48 = vcombine.low %v837_v38, %v841_v39 }
 0x18c   : > { %3791 = vmatprep.subr.bf16.mxu1 %v6714_v50  ;;  %3701 = vmatmul.mubr.bf16.vlgmr.msra.gmra.mrb[8].mxu0 %v8320_v17  ;;  %v845_v46 = vld [vmem:[%s8213_s10 + $0xdc8] sm:$0xff]  ;;  %v6642_v49 = vcombine.high %v717_v45, %v721_v20 }
 0x18d   : > { %3751 = vmatpush1.bf16.msra.mxu0 %v6585_v57  ;;  %3782 = vmatprep.mubr.bf16.mxu0 %v8338_v28  ;;  %v849_v47 = vld [vmem:[%s8213_s10 + $0xde8] sm:$0xff]  ;;  %v6641_v57 = vcombine.low %v717_v45, %v721_v20 }
 0x18e   : > { %3742 = vmatmul.mubr.bf16.vlgmr.msra.gmra.mrb[8].mxu1 %v8329_v21  ;;  %3752 = vmatprep.subr.bf16.mxu0 %v6594_v61  ;;  %v6770_v50 = vcombine.high %v845_v46, %v849_v47  ;;  %v725_v51 = vld [vmem:[%s8213_s10 + $0xa08] sm:$0xff] }
 0x18f   : > { %3792 = vmatpush1.bf16.msra.mxu1 %v6713_v58  ;;  %3823 = vmatprep.mubr.bf16.mxu1 %v8345_v30  ;;  %v729_v52 = vld [vmem:[%s8213_s10 + $0xa28] sm:$0xff]  ;;  %v6769_v58 = vcombine.low %v845_v46, %v849_v47 }
 0x190   : > { %3793 = vmatprep.subr.bf16.mxu1 %v6722_v62  ;;  %v853_v53 = vld [vmem:[%s8213_s10 + $0xe08] sm:$0xff]  ;;  %v6650_v61 = vcombine.high %v725_v51, %v729_v52 }
 0x191   : > { %3753 = vmatpush1.bf16.msra.mxu0 %v6593_v3  ;;  %v857_v56 = vld [vmem:[%s8213_s10 + $0xe28] sm:$0xff]  ;;  %v6649_v3 = vcombine.low %v725_v51, %v729_v52 }
 0x192   : > { %3754 = vmatprep.subr.bf16.mxu0 %v6602_v5  ;;  %v6778_v62 = vcombine.high %v853_v53, %v857_v56  ;;  %v733_v63 = vld [vmem:[%s8213_s10 + $0xa48] sm:$0xff] }
 0x193   : > { %3794 = vmatpush1.bf16.msra.mxu1 %v6721_v4  ;;  %v737_v0 = vld [vmem:[%s8213_s10 + $0xa68] sm:$0xff]  ;;  %v6777_v4 = vcombine.low %v853_v53, %v857_v56 }
 0x194   : > { %3795 = vmatprep.subr.bf16.mxu1 %v6730_v6  ;;  %v861_v1 = vld [vmem:[%s8213_s10 + $0xe48] sm:$0xff]  ;;  %v6658_v5 = vcombine.high %v733_v63, %v737_v0 }
 0x195   : > { %3755 = vmatpush1.bf16.msra.mxu0 %v6601_v11  ;;  %v865_v2 = vld [vmem:[%s8213_s10 + $0xe68] sm:$0xff]  ;;  %v6657_v11 = vcombine.low %v733_v63, %v737_v0  ;;  %v406_v63 = vld [vmem:[%s8213_s10 + $0x10] sm:$0xff] }
 0x196   : > { %3756 = vmatprep.subr.bf16.mxu0 %v6610_v13  ;;  %v6786_v6 = vcombine.high %v861_v1, %v865_v2  ;;  %v741_v7 = vld [vmem:[%s8213_s10 + $0xa88] sm:$0xff]  ;;  %v410_v0 = vld [vmem:[%s8213_s10 + $0x30] sm:$0xff] }
 0x197   : > { %3796 = vmatpush1.bf16.msra.mxu1 %v6729_v12  ;;  %v745_v8 = vld [vmem:[%s8213_s10 + $0xaa8] sm:$0xff]  ;;  %v6785_v12 = vcombine.low %v861_v1, %v865_v2  ;;  %v534_v1 = vld [vmem:[%s8213_s10 + $0x410] sm:$0xff] }
 0x198   : > { %3797 = vmatprep.subr.bf16.mxu1 %v6738_v14  ;;  %v869_v9 = vld [vmem:[%s8213_s10 + $0xe88] sm:$0xff]  ;;  %v6666_v13 = vcombine.high %v741_v7, %v745_v8  ;;  %v538_v2 = vld [vmem:[%s8213_s10 + $0x430] sm:$0xff] }
 0x199   : > { %3757 = vmatpush1.bf16.msra.mxu0 %v6609_v22  ;;  %v873_v10 = vld [vmem:[%s8213_s10 + $0xea8] sm:$0xff]  ;;  %v6665_v22 = vcombine.low %v741_v7, %v745_v8  ;;  %v414_v7 = vld [vmem:[%s8213_s10 + $0x50] sm:$0xff] }
 0x19a   : > { %3758 = vmatprep.subr.bf16.mxu0 %v6618_v25  ;;  %v6794_v14 = vcombine.high %v869_v9, %v873_v10  ;;  %v749_v15 = vld [vmem:[%s8213_s10 + $0xac8] sm:$0xff]  ;;  %v418_v8 = vld [vmem:[%s8213_s10 + $0x70] sm:$0xff] }
 0x19b   : > { %3798 = vmatpush1.bf16.msra.mxu1 %v6737_v24  ;;  %v753_v16 = vld [vmem:[%s8213_s10 + $0xae8] sm:$0xff]  ;;  %v6793_v24 = vcombine.low %v869_v9, %v873_v10  ;;  %v542_v9 = vld [vmem:[%s8213_s10 + $0x450] sm:$0xff] }
 0x19c   : > { %3799 = vmatprep.subr.bf16.mxu1 %v6746_v54  ;;  %v877_v18 = vld [vmem:[%s8213_s10 + $0xec8] sm:$0xff]  ;;  %v6674_v25 = vcombine.high %v749_v15, %v753_v16  ;;  %v546_v10 = vld [vmem:[%s8213_s10 + $0x470] sm:$0xff] }
 0x19d   : > { %3759 = vmatpush1.bf16.msra.mxu0 %v6617_v31  ;;  %v881_v19 = vld [vmem:[%s8213_s10 + $0xee8] sm:$0xff]  ;;  %v6673_v31 = vcombine.low %v749_v15, %v753_v16  ;;  %v422_v15 = vld [vmem:[%s8213_s10 + $0x90] sm:$0xff] }
 0x19e   : > { %3760 = vmatprep.subr.bf16.mxu0 %v6626_v33  ;;  %v6802_v54 = vcombine.high %v877_v18, %v881_v19  ;;  %v757_v26 = vld [vmem:[%s8213_s10 + $0xb08] sm:$0xff]  ;;  %v426_v16 = vld [vmem:[%s8213_s10 + $0xb0] sm:$0xff] }
 0x19f   : > { %3800 = vmatpush1.bf16.msra.mxu1 %v6745_v32  ;;  %v761_v27 = vld [vmem:[%s8213_s10 + $0xb28] sm:$0xff]  ;;  %v6801_v32 = vcombine.low %v877_v18, %v881_v19  ;;  %v550_v18 = vld [vmem:[%s8213_s10 + $0x490] sm:$0xff] }
 0x1a0   : > { %3801 = vmatprep.subr.bf16.mxu1 %v6754_v34  ;;  %v885_v55 = vld [vmem:[%s8213_s10 + $0xf08] sm:$0xff]  ;;  %v6682_v33 = vcombine.high %v757_v26, %v761_v27  ;;  %v554_v19 = vld [vmem:[%s8213_s10 + $0x4b0] sm:$0xff] }
 0x1a1   : > { %3761 = vmatpush1.bf16.msra.mxu0 %v6625_v41  ;;  %v889_v29 = vld [vmem:[%s8213_s10 + $0xf28] sm:$0xff]  ;;  %v6681_v41 = vcombine.low %v757_v26, %v761_v27  ;;  %v430_v26 = vld [vmem:[%s8213_s10 + $0xd0] sm:$0xff] }
 0x1a2   : > { %3762 = vmatprep.subr.bf16.mxu0 %v6634_v43  ;;  %v6810_v34 = vcombine.high %v885_v55, %v889_v29  ;;  %v765_v35 = vld [vmem:[%s8213_s10 + $0xb48] sm:$0xff]  ;;  %v434_v27 = vld [vmem:[%s8213_s10 + $0xf0] sm:$0xff] }
 0x1a3   : > { %3802 = vmatpush1.bf16.msra.mxu1 %v6753_v42  ;;  %v769_v36 = vld [vmem:[%s8213_s10 + $0xb68] sm:$0xff]  ;;  %v6809_v42 = vcombine.low %v885_v55, %v889_v29  ;;  %v558_v55 = vld [vmem:[%s8213_s10 + $0x4d0] sm:$0xff] }
 0x1a4   : > { %3803 = vmatprep.subr.bf16.mxu1 %v6762_v44  ;;  %v893_v38 = vld [vmem:[%s8213_s10 + $0xf48] sm:$0xff]  ;;  %v6690_v43 = vcombine.high %v765_v35, %v769_v36  ;;  %v562_v29 = vld [vmem:[%s8213_s10 + $0x4f0] sm:$0xff] }
 0x1a5   : > { %3763 = vmatpush1.bf16.msra.mxu0 %v6633_v23  ;;  %v897_v39 = vld [vmem:[%s8213_s10 + $0xf68] sm:$0xff]  ;;  %v6689_v23 = vcombine.low %v765_v35, %v769_v36  ;;  %v438_v35 = vld [vmem:[%s8213_s10 + $0x110] sm:$0xff] }
 0x1a6   : > { %3764 = vmatprep.subr.bf16.mxu0 %v6642_v49  ;;  %v6818_v44 = vcombine.high %v893_v38, %v897_v39  ;;  %v773_v45 = vld [vmem:[%s8213_s10 + $0xb88] sm:$0xff]  ;;  %v442_v36 = vld [vmem:[%s8213_s10 + $0x130] sm:$0xff] }
 0x1a7   : > { %3804 = vmatpush1.bf16.msra.mxu1 %v6761_v48  ;;  %v777_v20 = vld [vmem:[%s8213_s10 + $0xba8] sm:$0xff]  ;;  %v6817_v48 = vcombine.low %v893_v38, %v897_v39  ;;  %v566_v38 = vld [vmem:[%s8213_s10 + $0x510] sm:$0xff] }
 0x1a8   : > { %3805 = vmatprep.subr.bf16.mxu1 %v6770_v50  ;;  %v901_v46 = vld [vmem:[%s8213_s10 + $0xf88] sm:$0xff]  ;;  %v6698_v49 = vcombine.high %v773_v45, %v777_v20  ;;  %v570_v39 = vld [vmem:[%s8213_s10 + $0x530] sm:$0xff] }
 0x1a9   : > { %3765 = vmatpush1.bf16.msra.mxu0 %v6641_v57  ;;  %v905_v47 = vld [vmem:[%s8213_s10 + $0xfa8] sm:$0xff]  ;;  %v6697_v57 = vcombine.low %v773_v45, %v777_v20  ;;  %v446_v45 = vld [vmem:[%s8213_s10 + $0x150] sm:$0xff] }
 0x1aa   : > { %3766 = vmatprep.subr.bf16.mxu0 %v6650_v61  ;;  %v6826_v50 = vcombine.high %v901_v46, %v905_v47  ;;  %v781_v51 = vld [vmem:[%s8213_s10 + $0xbc8] sm:$0xff]  ;;  %v450_v20 = vld [vmem:[%s8213_s10 + $0x170] sm:$0xff] }
 0x1ab   : > { %3806 = vmatpush1.bf16.msra.mxu1 %v6769_v58  ;;  %v785_v52 = vld [vmem:[%s8213_s10 + $0xbe8] sm:$0xff]  ;;  %v6825_v58 = vcombine.low %v901_v46, %v905_v47  ;;  %v574_v46 = vld [vmem:[%s8213_s10 + $0x550] sm:$0xff] }
 0x1ac   : > { %3807 = vmatprep.subr.bf16.mxu1 %v6778_v62  ;;  %v909_v53 = vld [vmem:[%s8213_s10 + $0xfc8] sm:$0xff]  ;;  %v6706_v61 = vcombine.high %v781_v51, %v785_v52  ;;  %v578_v47 = vld [vmem:[%s8213_s10 + $0x570] sm:$0xff] }
 0x1ad   : > { %3767 = vmatpush1.bf16.msra.mxu0 %v6649_v3  ;;  %v913_v56 = vld [vmem:[%s8213_s10 + $0xfe8] sm:$0xff]  ;;  %v6705_v3 = vcombine.low %v781_v51, %v785_v52  ;;  %v454_v51 = vld [vmem:[%s8213_s10 + $0x190] sm:$0xff] }
 0x1ae   : > { %3768 = vmatprep.subr.bf16.mxu0 %v6658_v5  ;;  %v6834_v62 = vcombine.high %v909_v53, %v913_v56  ;;  %v6332_v5 = vcombine.high %v406_v63, %v410_v0  ;;  %v458_v52 = vld [vmem:[%s8213_s10 + $0x1b0] sm:$0xff] }
 0x1af   : > { %3808 = vmatpush1.bf16.msra.mxu1 %v6777_v4  ;;  %v6833_v4 = vcombine.low %v909_v53, %v913_v56  ;;  %v582_v53 = vld [vmem:[%s8213_s10 + $0x590] sm:$0xff] }
 0x1b0   : > { %3809 = vmatprep.subr.bf16.mxu1 %v6786_v6  ;;  %v6460_v6 = vcombine.high %v534_v1, %v538_v2  ;;  %v586_v56 = vld [vmem:[%s8213_s10 + $0x5b0] sm:$0xff] }
 0x1b1   : > { %3769 = vmatpush1.bf16.msra.mxu0 %v6657_v11  ;;  %v6331_v11 = vcombine.low %v406_v63, %v410_v0  ;;  %v6508_v63 = vcombine.high %v582_v53, %v586_v56  ;;  %v462_v0 = vld [vmem:[%s8213_s10 + $0x1d0] sm:$0xff] }
 0x1b2   : > { %3770 = vmatprep.subr.bf16.mxu0 %v6666_v13  ;;  %v6340_v13 = vcombine.high %v414_v7, %v418_v8 }
 0x1b3   : > { %3810 = vmatpush1.bf16.msra.mxu1 %v6785_v12  ;;  %v6459_v12 = vcombine.low %v534_v1, %v538_v2  ;;  %v466_v1 = vld [vmem:[%s8213_s10 + $0x1f0] sm:$0xff] }
 0x1b4   : > { %3811 = vmatprep.subr.bf16.mxu1 %v6794_v14  ;;  %v6468_v14 = vcombine.high %v542_v9, %v546_v10 }
 0x1b5   : > { %3771 = vmatpush1.bf16.msra.mxu0 %v6665_v22  ;;  %v6339_v22 = vcombine.low %v414_v7, %v418_v8 }
 0x1b6   : > { %3772 = vmatprep.subr.bf16.mxu0 %v6674_v25  ;;  %v6348_v25 = vcombine.high %v422_v15, %v426_v16 }
 0x1b7   : > { %3812 = vmatpush1.bf16.msra.mxu1 %v6793_v24  ;;  %v6467_v24 = vcombine.low %v542_v9, %v546_v10  ;;  %v6379_v9 = vcombine.low %v454_v51, %v458_v52 }
 0x1b8   : > { %3813 = vmatprep.subr.bf16.mxu1 %v6802_v54  ;;  %v6476_v54 = vcombine.high %v550_v18, %v554_v19 }
 0x1b9   : > { %3773 = vmatpush1.bf16.msra.mxu0 %v6673_v31  ;;  %v6347_v31 = vcombine.low %v422_v15, %v426_v16 }
 0x1ba   : > { %3774 = vmatprep.subr.bf16.mxu0 %v6682_v33  ;;  %v6356_v33 = vcombine.high %v430_v26, %v434_v27 }
 0x1bb   : > { %3814 = vmatpush1.bf16.msra.mxu1 %v6801_v32  ;;  %v6475_v32 = vcombine.low %v550_v18, %v554_v19  ;;  %v470_v18 = vld [vmem:[%s8213_s10 + $0x210] sm:$0xff] }
 0x1bc   : > { %3815 = vmatprep.subr.bf16.mxu1 %v6810_v34  ;;  %v6484_v34 = vcombine.high %v558_v55, %v562_v29  ;;  %v474_v19 = vld [vmem:[%s8213_s10 + $0x230] sm:$0xff] }
 0x1bd   : > { %3775 = vmatpush1.bf16.msra.mxu0 %v6681_v41  ;;  %v6355_v41 = vcombine.low %v430_v26, %v434_v27  ;;  %v6396_v26 = vcombine.high %v470_v18, %v474_v19 }
 0x1be   : > { %3776 = vmatprep.subr.bf16.mxu0 %v6690_v43  ;;  %v6364_v43 = vcombine.high %v438_v35, %v442_v36 }
 0x1bf   : > { %3816 = vmatpush1.bf16.msra.mxu1 %v6809_v42  ;;  %v6483_v42 = vcombine.low %v558_v55, %v562_v29  ;;  %v478_v55 = vld [vmem:[%s8213_s10 + $0x250] sm:$0xff] }
 0x1c0   : > { %3817 = vmatprep.subr.bf16.mxu1 %v6818_v44  ;;  %v6492_v44 = vcombine.high %v566_v38, %v570_v39  ;;  %v482_v29 = vld [vmem:[%s8213_s10 + $0x270] sm:$0xff] }
 0x1c1   : > { %3777 = vmatpush1.bf16.msra.mxu0 %v6689_v23  ;;  %v6363_v23 = vcombine.low %v438_v35, %v442_v36  ;;  %v6404_v35 = vcombine.high %v478_v55, %v482_v29 }
 0x1c2   : > { %3778 = vmatprep.subr.bf16.mxu0 %v6698_v49  ;;  %v6372_v49 = vcombine.high %v446_v45, %v450_v20 }
 0x1c3   : > { %3818 = vmatpush1.bf16.msra.mxu1 %v6817_v48  ;;  %v6491_v48 = vcombine.low %v566_v38, %v570_v39  ;;  %v486_v38 = vld [vmem:[%s8213_s10 + $0x290] sm:$0xff] }
 0x1c4   : > { %3819 = vmatprep.subr.bf16.mxu1 %v6826_v50  ;;  %v6500_v50 = vcombine.high %v574_v46, %v578_v47  ;;  %v490_v39 = vld [vmem:[%s8213_s10 + $0x2b0] sm:$0xff] }
 0x1c5   : > { %3779 = vmatpush1.bf16.msra.mxu0 %v6697_v57  ;;  %v6371_v57 = vcombine.low %v446_v45, %v450_v20  ;;  %v6412_v45 = vcombine.high %v486_v38, %v490_v39 }
 0x1c6   : > { %3780 = vmatprep.subr.bf16.mxu0 %v6706_v61  ;;  %v6380_v61 = vcombine.high %v454_v51, %v458_v52 }
 0x1c7   : > { %3820 = vmatpush1.bf16.msra.mxu1 %v6825_v58  ;;  %v6499_v58 = vcombine.low %v574_v46, %v578_v47  ;;  %v494_v46 = vld [vmem:[%s8213_s10 + $0x2d0] sm:$0xff] }
 0x1c8   : > { %3821 = vmatprep.subr.bf16.mxu1 %v6834_v62  ;;  %v498_v47 = vld [vmem:[%s8213_s10 + $0x2f0] sm:$0xff] }
 0x1c9   : > { %3781 = vmatpush1.bf16.msra.mxu0 %v6705_v3  ;;  %v6420_v51 = vcombine.high %v494_v46, %v498_v47 }
 0x1ca   : > { %3832 = vmatprep.subr.bf16.mxu0 %v6332_v5  ;;  %v594_v5 = vld [vmem:[%s8213_s10 + $0x5f0] sm:$0xff] }
 0x1cb   : > { %3822 = vmatpush1.bf16.msra.mxu1 %v6833_v4  ;;  %v590_v4 = vld [vmem:[%s8213_s10 + $0x5d0] sm:$0xff] }
 0x1cc   : > { %3873 = vmatprep.subr.bf16.mxu1 %v6460_v6  ;;  %3783 = vmatmul.mubr.bf16.vlgmr.msra.gmra.mrb[12].mxu0 %v8410_v37  ;;  %v6516_v16 = vcombine.high %v590_v4, %v594_v5 }
 0x1cd   : > { %3833 = vmatpush1.bf16.msra.mxu0 %v6331_v11  ;;  %3864 = vmatprep.mubr.bf16.mxu0 %v8270_v59 }
 0x1ce   : > { %3824 = vmatmul.mubr.bf16.vlgmr.msra.gmra.mrb[12].mxu1 %v8416_v40  ;;  %3834 = vmatprep.subr.bf16.mxu0 %v6340_v13  ;;  %v6507_v13 = vcombine.low %v582_v53, %v586_v56  ;;  %v502_v53 = vld [vmem:[%s8213_s10 + $0x310] sm:$0xff] }
 0x1cf   : > { %3874 = vmatpush1.bf16.msra.mxu1 %v6459_v12  ;;  %3905 = vmatprep.mubr.bf16.mxu1 %v8274_v60  ;;  %v506_v56 = vld [vmem:[%s8213_s10 + $0x330] sm:$0xff] }
 0x1d0   : > { %3875 = vmatprep.subr.bf16.mxu1 %v6468_v14  ;;  %v6388_v14 = vcombine.high %v462_v0, %v466_v1 }
 0x1d1   : > { %3835 = vmatpush1.bf16.msra.mxu0 %v6339_v22  ;;  %v598_v22 = vld [vmem:[%s8213_s10 + $0x610] sm:$0xff] }
 0x1d2   : > { %3836 = vmatprep.subr.bf16.mxu0 %v6348_v25  ;;  %v6387_v25 = vcombine.low %v462_v0, %v466_v1  ;;  %v510_v1 = vld [vmem:[%s8213_s10 + $0x350] sm:$0xff] }
 0x1d3   : > { %3876 = vmatpush1.bf16.msra.mxu1 %v6467_v24  ;;  %v602_v24 = vld [vmem:[%s8213_s10 + $0x630] sm:$0xff] }
 0x1d4   : > { %3877 = vmatprep.subr.bf16.mxu1 %v6476_v54  ;;  %v6515_v54 = vcombine.low %v590_v4, %v594_v5  ;;  %v6524_v27 = vcombine.high %v598_v22, %v602_v24  ;;  %v642_v4 = vld [vmem:[%s8213_s10 + $0x770] sm:$0xff]  ;;  %v6427_v5 = vcombine.low %v502_v53, %v506_v56 }
 0x1d5   : > { %3837 = vmatpush1.bf16.msra.mxu0 %v6347_v31  ;;  %v606_v31 = vld [vmem:[%s8213_s10 + $0x650] sm:$0xff] }
 0x1d6   : > { %3838 = vmatprep.subr.bf16.mxu0 %v6356_v33  ;;  %v6395_v33 = vcombine.low %v470_v18, %v474_v19 }
 0x1d7   : > { %3878 = vmatpush1.bf16.msra.mxu1 %v6475_v32  ;;  %v610_v32 = vld [vmem:[%s8213_s10 + $0x670] sm:$0xff] }
 0x1d8   : > { %3879 = vmatprep.subr.bf16.mxu1 %v6484_v34  ;;  %v6523_v34 = vcombine.low %v598_v22, %v602_v24  ;;  %v6532_v36 = vcombine.high %v606_v31, %v610_v32  ;;  %v526_v22 = vld [vmem:[%s8213_s10 + $0x3d0] sm:$0xff] }
 0x1d9   : > { %3839 = vmatpush1.bf16.msra.mxu0 %v6355_v41  ;;  %v614_v41 = vld [vmem:[%s8213_s10 + $0x690] sm:$0xff] }
 0x1da   : > { %3840 = vmatprep.subr.bf16.mxu0 %v6364_v43  ;;  %v6403_v43 = vcombine.low %v478_v55, %v482_v29  ;;  %v530_v24 = vld [vmem:[%s8213_s10 + $0x3f0] sm:$0xff] }
 0x1db   : > { %3880 = vmatpush1.bf16.msra.mxu1 %v6483_v42  ;;  %v618_v42 = vld [vmem:[%s8213_s10 + $0x6b0] sm:$0xff]  ;;  %v6452_v55 = vcombine.high %v526_v22, %v530_v24 }
 0x1dc   : > { %3881 = vmatprep.subr.bf16.mxu1 %v6492_v44  ;;  %v6531_v44 = vcombine.low %v606_v31, %v610_v32  ;;  %v6540_v20 = vcombine.high %v614_v41, %v618_v42  ;;  %v662_v31 = vld [vmem:[%s8213_s10 + $0x810] sm:$0xff] }
 0x1dd   : > { %3841 = vmatpush1.bf16.msra.mxu0 %v6363_v23  ;;  %v622_v23 = vld [vmem:[%s8213_s10 + $0x6d0] sm:$0xff] }
 0x1de   : > { %3842 = vmatprep.subr.bf16.mxu0 %v6372_v49  ;;  %v6411_v49 = vcombine.low %v486_v38, %v490_v39  ;;  %v666_v32 = vld [vmem:[%s8213_s10 + $0x830] sm:$0xff] }
 0x1df   : > { %3882 = vmatpush1.bf16.msra.mxu1 %v6491_v48  ;;  %v3538_v62 = vpop.f32.mrb[0].mxu0  ;;  %v626_v48 = vld [vmem:[%s8213_s10 + $0x6f0] sm:$0xff]  ;;  %v6588_v38 = vcombine.high %v662_v31, %v666_v32 }
 0x1e0   : > { %3883 = vmatprep.subr.bf16.mxu1 %v6500_v50  ;;  %v3540_v3 = vpop.f32.mrb[1].mxu0  ;;  %v6539_v50 = vcombine.low %v614_v41, %v618_v42  ;;  %v6548_v52 = vcombine.high %v622_v23, %v626_v48  ;;  %v670_v41 = vld [vmem:[%s8213_s10 + $0x850] sm:$0xff] }
 0x1e1   : > { %v3579_v2 = vpop.f32.mrb[0].mxu1  ;;  %v3542_v8 = vpop.f32.mrb[2].mxu0  ;;  %3843 = vmatpush1.bf16.msra.mxu0 %v6371_v57  ;;  %v630_v57 = vld [vmem:[%s8213_s10 + $0x710] sm:$0xff] }
 0x1e2   : > { %v8582_v6 = vadd.f32 %v3579_v2, %v3538_v62  ;;  %v3581_v7 = vpop.f32.mrb[1].mxu1  ;;  %v3543_v12 = vpop.f32.mrb[3].mxu0  ;;  %3844 = vmatprep.subr.bf16.mxu0 %v6380_v61  ;;  %v6419_v61 = vcombine.low %v494_v46, %v498_v47  ;;  %v6547_v62 = vcombine.low %v622_v23, %v626_v48  ;;  %v514_v2 = vld [vmem:[%s8213_s10 + $0x370] sm:$0xff] }
 0x1e3   : > { %v8584_v10 = vadd.f32 %v3581_v7, %v3540_v3  ;;  %v3583_v11 = vpop.f32.mrb[2].mxu1  ;;  %3884 = vmatpush1.bf16.msra.mxu1 %v6499_v58  ;;  %v634_v58 = vld [vmem:[%s8213_s10 + $0x730] sm:$0xff]  ;;  %v6436_v8 = vcombine.high %v510_v1, %v514_v2 }
 0x1e4   : > { %v3584_v15 = vpop.f32.mrb[3].mxu1  ;;  %3885 = vmatprep.subr.bf16.mxu1 %v6508_v63  ;;  %v6428_v63 = vcombine.high %v502_v53, %v506_v56  ;;  %v6556_v0 = vcombine.high %v630_v57, %v634_v58  ;;  %v638_v3 = vld [vmem:[%s8213_s10 + $0x750] sm:$0xff]  ;;  %v6555_v7 = vcombine.low %v630_v57, %v634_v58 }
 0x1e5   : > { %3845 = vmatpush1.bf16.msra.mxu0 %v6379_v9  ;;  %v6564_v9 = vcombine.high %v638_v3, %v642_v4  ;;  %v518_v11 = vld [vmem:[%s8213_s10 + $0x390] sm:$0xff]  ;;  %v6435_v15 = vcombine.low %v510_v1, %v514_v2 }
 0x1e6   : > { %3846 = vmatprep.subr.bf16.mxu0 %v6388_v14  ;;  %v522_v12 = vld [vmem:[%s8213_s10 + $0x3b0] sm:$0xff] }
 0x1e7   : > { %3886 = vmatpush1.bf16.msra.mxu1 %v6507_v13  ;;  %v646_v13 = vld [vmem:[%s8213_s10 + $0x790] sm:$0xff]  ;;  %v6444_v18 = vcombine.high %v518_v11, %v522_v12 }
 0x1e8   : > { %3887 = vmatprep.subr.bf16.mxu1 %v6516_v16  ;;  %v650_v14 = vld [vmem:[%s8213_s10 + $0x7b0] sm:$0xff]  ;;  %v6563_v16 = vcombine.low %v638_v3, %v642_v4 }
 0x1e9   : > { %3847 = vmatpush1.bf16.msra.mxu0 %v6387_v25  ;;  %v6572_v19 = vcombine.high %v646_v13, %v650_v14  ;;  %v654_v25 = vld [vmem:[%s8213_s10 + $0x7d0] sm:$0xff] }
 0x1ea   : > { %3848 = vmatprep.subr.bf16.mxu0 %v6396_v26  ;;  %v6443_v26 = vcombine.low %v518_v11, %v522_v12  ;;  %v674_v42 = vld [vmem:[%s8213_s10 + $0x870] sm:$0xff] }
 0x1eb   : > { %3888 = vmatpush1.bf16.msra.mxu1 %v6515_v54  ;;  %v658_v54 = vld [vmem:[%s8213_s10 + $0x7f0] sm:$0xff]  ;;  %v6596_v46 = vcombine.high %v670_v41, %v674_v42 }
 0x1ec   : > { %3889 = vmatprep.subr.bf16.mxu1 %v6524_v27  ;;  %v6571_v27 = vcombine.low %v646_v13, %v650_v14  ;;  %v6580_v29 = vcombine.high %v654_v25, %v658_v54  ;;  %v678_v23 = vld [vmem:[%s8213_s10 + $0x890] sm:$0xff] }
 0x1ed   : > { %3849 = vmatpush1.bf16.msra.mxu0 %v6395_v33  ;;  %v790_v33 = vld [vmem:[%s8213_s10 + $0xc10] sm:$0xff] }
 0x1ee   : > { %3850 = vmatprep.subr.bf16.mxu0 %v6404_v35  ;;  %v6451_v35 = vcombine.low %v526_v22, %v530_v24  ;;  %v682_v48 = vld [vmem:[%s8213_s10 + $0x8b0] sm:$0xff] }
 0x1ef   : > { %3890 = vmatpush1.bf16.msra.mxu1 %v6523_v34  ;;  %v794_v34 = vld [vmem:[%s8213_s10 + $0xc30] sm:$0xff]  ;;  %v6604_v53 = vcombine.high %v678_v23, %v682_v48 }
 0x1f0   : > { %3891 = vmatprep.subr.bf16.mxu1 %v6532_v36  ;;  %v6579_v36 = vcombine.low %v654_v25, %v658_v54  ;;  %v6716_v39 = vcombine.high %v790_v33, %v794_v34  ;;  %v686_v57 = vld [vmem:[%s8213_s10 + $0x8d0] sm:$0xff] }
 0x1f1   : > { %3851 = vmatpush1.bf16.msra.mxu0 %v6403_v43  ;;  %v798_v43 = vld [vmem:[%s8213_s10 + $0xc50] sm:$0xff] }
 0x1f2   : > { %3852 = vmatprep.subr.bf16.mxu0 %v6412_v45  ;;  %v6587_v45 = vcombine.low %v662_v31, %v666_v32  ;;  %v690_v58 = vld [vmem:[%s8213_s10 + $0x8f0] sm:$0xff] }
 0x1f3   : > { %3892 = vmatpush1.bf16.msra.mxu1 %v6531_v44  ;;  %v802_v44 = vld [vmem:[%s8213_s10 + $0xc70] sm:$0xff]  ;;  %v6612_v1 = vcombine.high %v686_v57, %v690_v58 }
 0x1f4   : > { %3893 = vmatprep.subr.bf16.mxu1 %v6540_v20  ;;  %v6715_v20 = vcombine.low %v790_v33, %v794_v34  ;;  %v6724_v47 = vcombine.high %v798_v43, %v802_v44  ;;  %v694_v3 = vld [vmem:[%s8213_s10 + $0x910] sm:$0xff] }
 0x1f5   : > { %3853 = vmatpush1.bf16.msra.mxu0 %v6411_v49  ;;  %v806_v49 = vld [vmem:[%s8213_s10 + $0xc90] sm:$0xff] }
 0x1f6   : > { %3854 = vmatprep.subr.bf16.mxu0 %v6420_v51  ;;  %v6595_v51 = vcombine.low %v670_v41, %v674_v42  ;;  %v698_v4 = vld [vmem:[%s8213_s10 + $0x930] sm:$0xff] }
 0x1f7   : > { %3894 = vmatpush1.bf16.msra.mxu1 %v6539_v50  ;;  %v810_v50 = vld [vmem:[%s8213_s10 + $0xcb0] sm:$0xff]  ;;  %v6620_v11 = vcombine.high %v694_v3, %v698_v4 }
 0x1f8   : > { %3895 = vmatprep.subr.bf16.mxu1 %v6548_v52  ;;  %v6723_v52 = vcombine.low %v798_v43, %v802_v44  ;;  %v6732_v56 = vcombine.high %v806_v49, %v810_v50  ;;  %v702_v13 = vld [vmem:[%s8213_s10 + $0x950] sm:$0xff]  ;;  %v392_v43 = vld [vmem:[#allocation2] sm:$0xff] }
 0x1f9   : > { %3855 = vmatpush1.bf16.msra.mxu0 %v6419_v61  ;;  %v814_v61 = vld [vmem:[%s8213_s10 + $0xcd0] sm:$0xff] }
 0x1fa   : > { %3856 = vmatprep.subr.bf16.mxu0 %v6428_v63  ;;  %v6603_v63 = vcombine.low %v678_v23, %v682_v48  ;;  %v706_v14 = vld [vmem:[%s8213_s10 + $0x970] sm:$0xff]  ;;  %v393_v23 = vld [vmem:[#allocation2 + $0x8] sm:$0xff] }
 0x1fb   : > { %3896 = vmatpush1.bf16.msra.mxu1 %v6547_v62  ;;  %v818_v62 = vld [vmem:[%s8213_s10 + $0xcf0] sm:$0xff]  ;;  %v6628_v22 = vcombine.high %v702_v13, %v706_v14 }
 0x1fc   : > { %3897 = vmatprep.subr.bf16.mxu1 %v6556_v0  ;;  %v6731_v0 = vcombine.low %v806_v49, %v810_v50  ;;  %v6740_v2 = vcombine.high %v814_v61, %v818_v62  ;;  %v710_v25 = vld [vmem:[%s8213_s10 + $0x990] sm:$0xff] }
 0x1fd   : > { %3857 = vmatpush1.bf16.msra.mxu0 %v6427_v5  ;;  %v822_v5 = vld [vmem:[%s8213_s10 + $0xd10] sm:$0xff] }
 0x1fe   : > { %3858 = vmatprep.subr.bf16.mxu0 %v6436_v8  ;;  %v6611_v8 = vcombine.low %v686_v57, %v690_v58  ;;  %v714_v54 = vld [vmem:[%s8213_s10 + $0x9b0] sm:$0xff] }
 0x1ff   : > { %3898 = vmatpush1.bf16.msra.mxu1 %v6555_v7  ;;  %v826_v7 = vld [vmem:[%s8213_s10 + $0xd30] sm:$0xff]  ;;  %v6636_v31 = vcombine.high %v710_v25, %v714_v54 }
 0x200   : > { %3899 = vmatprep.subr.bf16.mxu1 %v6564_v9  ;;  %v6739_v9 = vcombine.low %v814_v61, %v818_v62  ;;  %v6748_v12 = vcombine.high %v822_v5, %v826_v7  ;;  %v718_v34 = vld [vmem:[%s8213_s10 + $0x9d0] sm:$0xff] }
 0x201   : > { %3859 = vmatpush1.bf16.msra.mxu0 %v6435_v15  ;;  %v830_v15 = vld [vmem:[%s8213_s10 + $0xd50] sm:$0xff] }
 0x202   : > { %3860 = vmatprep.subr.bf16.mxu0 %v6444_v18  ;;  %v6619_v18 = vcombine.low %v694_v3, %v698_v4  ;;  %v846_v41 = vld [vmem:[%s8213_s10 + $0xdd0] sm:$0xff] }
 0x203   : > { %3900 = vmatpush1.bf16.msra.mxu1 %v6563_v16  ;;  %v834_v16 = vld [vmem:[%s8213_s10 + $0xd70] sm:$0xff] }
 0x204   : > { %3901 = vmatprep.subr.bf16.mxu1 %v6572_v19  ;;  %v6747_v19 = vcombine.low %v822_v5, %v826_v7  ;;  %v6756_v24 = vcombine.high %v830_v15, %v834_v16  ;;  %v850_v42 = vld [vmem:[%s8213_s10 + $0xdf0] sm:$0xff] }
 0x205   : > { %3861 = vmatpush1.bf16.msra.mxu0 %v6443_v26  ;;  %v838_v26 = vld [vmem:[%s8213_s10 + $0xd90] sm:$0xff] }
 0x206   : > { %3862 = vmatprep.subr.bf16.mxu0 %v6452_v55  ;;  %v6627_v55 = vcombine.low %v702_v13, %v706_v14  ;;  %v854_v58 = vld [vmem:[%s8213_s10 + $0xe10] sm:$0xff] }
 0x207   : > { %3902 = vmatpush1.bf16.msra.mxu1 %v6571_v27  ;;  %v842_v27 = vld [vmem:[%s8213_s10 + $0xdb0] sm:$0xff] }
 0x208   : > { %3903 = vmatprep.subr.bf16.mxu1 %v6580_v29  ;;  %v6755_v29 = vcombine.low %v830_v15, %v834_v16  ;;  %v6764_v33 = vcombine.high %v838_v26, %v842_v27  ;;  %v6763_v49 = vcombine.low %v838_v26, %v842_v27  ;;  %v858_v61 = vld [vmem:[%s8213_s10 + $0xe30] sm:$0xff] }
 0x209   : > { %3863 = vmatpush1.bf16.msra.mxu0 %v6451_v35  ;;  %v722_v35 = vld [vmem:[%s8213_s10 + $0x9f0] sm:$0xff] }
 0x20a   : > { %3914 = vmatprep.subr.bf16.mxu0 %v6588_v38  ;;  %v6644_v50 = vcombine.high %v718_v34, %v722_v35  ;;  %v734_v3 = vld [vmem:[%s8213_s10 + $0xa50] sm:$0xff] }
 0x20b   : > { %3904 = vmatpush1.bf16.msra.mxu1 %v6579_v36  ;;  %v738_v4 = vld [vmem:[%s8213_s10 + $0xa70] sm:$0xff] }
 0x20c   : > { %3955 = vmatprep.subr.bf16.mxu1 %v6716_v39  ;;  %3865 = vmatmul.mubr.bf16.vlgmr.msra.gmra.mrb[16].mxu0 %v8320_v17  ;;  %v862_v5 = vld [vmem:[%s8213_s10 + $0xe50] sm:$0xff] }
 0x20d   : > { %3915 = vmatpush1.bf16.msra.mxu0 %v6587_v45  ;;  %3946 = vmatprep.mubr.bf16.mxu0 %v8338_v28  ;;  %v866_v7 = vld [vmem:[%s8213_s10 + $0xe70] sm:$0xff] }
 0x20e   : > { %3906 = vmatmul.mubr.bf16.vlgmr.msra.gmra.mrb[16].mxu1 %v8329_v21  ;;  %3916 = vmatprep.subr.bf16.mxu0 %v6596_v46  ;;  %v6635_v46 = vcombine.low %v710_v25, %v714_v54  ;;  %v742_v13 = vld [vmem:[%s8213_s10 + $0xa90] sm:$0xff] }
 0x20f   : > { %3956 = vmatpush1.bf16.msra.mxu1 %v6715_v20  ;;  %3987 = vmatprep.mubr.bf16.mxu1 %v8345_v30  ;;  %v746_v14 = vld [vmem:[%s8213_s10 + $0xab0] sm:$0xff] }
 0x210   : > { %3957 = vmatprep.subr.bf16.mxu1 %v6724_v47  ;;  %v870_v15 = vld [vmem:[%s8213_s10 + $0xe90] sm:$0xff] }
 0x211   : > { %3917 = vmatpush1.bf16.msra.mxu0 %v6595_v51  ;;  %v874_v16 = vld [vmem:[%s8213_s10 + $0xeb0] sm:$0xff] }
 0x212   : > { %3918 = vmatprep.subr.bf16.mxu0 %v6604_v53  ;;  %v726_v53 = vld [vmem:[%s8213_s10 + $0xa10] sm:$0xff] }
 0x213   : > { %3958 = vmatpush1.bf16.msra.mxu1 %v6723_v52  ;;  %v750_v25 = vld [vmem:[%s8213_s10 + $0xad0] sm:$0xff] }
 0x214   : > { %3959 = vmatprep.subr.bf16.mxu1 %v6732_v56  ;;  %v730_v56 = vld [vmem:[%s8213_s10 + $0xa30] sm:$0xff] }
 0x215   : > { %3919 = vmatpush1.bf16.msra.mxu0 %v6603_v63  ;;  %v6643_v63 = vcombine.low %v718_v34, %v722_v35  ;;  %v754_v54 = vld [vmem:[%s8213_s10 + $0xaf0] sm:$0xff] }
 0x216   : > { %3920 = vmatprep.subr.bf16.mxu0 %v6612_v1  ;;  %v6652_v1 = vcombine.high %v726_v53, %v730_v56  ;;  %v878_v26 = vld [vmem:[%s8213_s10 + $0xed0] sm:$0xff] }
 0x217   : > { %3960 = vmatpush1.bf16.msra.mxu1 %v6731_v0  ;;  %v6771_v0 = vcombine.low %v846_v41, %v850_v42  ;;  %v882_v27 = vld [vmem:[%s8213_s10 + $0xef0] sm:$0xff] }
 0x218   : > { %3961 = vmatprep.subr.bf16.mxu1 %v6740_v2  ;;  %v6780_v2 = vcombine.high %v854_v58, %v858_v61  ;;  %v762_v34 = vld [vmem:[%s8213_s10 + $0xb30] sm:$0xff] }
 0x219   : > { %3921 = vmatpush1.bf16.msra.mxu0 %v6611_v8  ;;  %v6651_v8 = vcombine.low %v726_v53, %v730_v56  ;;  %v886_v35 = vld [vmem:[%s8213_s10 + $0xf10] sm:$0xff] }
 0x21a   : > { %3922 = vmatprep.subr.bf16.mxu0 %v6620_v11  ;;  %v6660_v11 = vcombine.high %v734_v3, %v738_v4 }
 0x21b   : > { %3962 = vmatpush1.bf16.msra.mxu1 %v6739_v9  ;;  %v6779_v9 = vcombine.low %v854_v58, %v858_v61  ;;  %v786_v58 = vld [vmem:[%s8213_s10 + $0xbf0] sm:$0xff] }
 0x21c   : > { %3963 = vmatprep.subr.bf16.mxu1 %v6748_v12  ;;  %v6788_v12 = vcombine.high %v862_v5, %v866_v7  ;;  %v910_v61 = vld [vmem:[%s8213_s10 + $0xfd0] sm:$0xff] }
 0x21d   : > { %3923 = vmatpush1.bf16.msra.mxu0 %v6619_v18  ;;  %v6659_v18 = vcombine.low %v734_v3, %v738_v4  ;;  %v407_v3 = vld [vmem:[%s8213_s10 + $0x18] sm:$0xff] }
 0x21e   : > { %3924 = vmatprep.subr.bf16.mxu0 %v6628_v22  ;;  %v6668_v22 = vcombine.high %v742_v13, %v746_v14  ;;  %v411_v4 = vld [vmem:[%s8213_s10 + $0x38] sm:$0xff] }
 0x21f   : > { %3964 = vmatpush1.bf16.msra.mxu1 %v6747_v19  ;;  %v3620_v32 = vpop.f32.mrb[4].mxu0  ;;  %v6787_v19 = vcombine.low %v862_v5, %v866_v7  ;;  %v535_v5 = vld [vmem:[%s8213_s10 + $0x418] sm:$0xff] }
 0x220   : > { %3965 = vmatprep.subr.bf16.mxu1 %v6756_v24  ;;  %v3621_v36 = vadd.f32 %v3620_v32, %v8582_v6  ;;  %v3622_v39 = vpop.f32.mrb[5].mxu0  ;;  %v6796_v24 = vcombine.high %v870_v15, %v874_v16  ;;  %v6804_v32 = vcombine.high %v878_v26, %v882_v27  ;;  %v539_v7 = vld [vmem:[%s8213_s10 + $0x438] sm:$0xff] }
 0x221   : > { %v3661_v38 = vpop.f32.mrb[4].mxu1  ;;  %v3623_v44 = vadd.f32 %v3622_v39, %v8584_v10  ;;  %v3624_v20 = vpop.f32.mrb[6].mxu0  ;;  %3925 = vmatpush1.bf16.msra.mxu0 %v6627_v55  ;;  %v6772_v10 = vcombine.high %v846_v41, %v850_v42  ;;  %v6667_v55 = vcombine.low %v742_v13, %v746_v14  ;;  %v6803_v39 = vcombine.low %v878_v26, %v882_v27  ;;  %v415_v13 = vld [vmem:[%s8213_s10 + $0x58] sm:$0xff] }
 0x222   : > { %v3663_v45 = vpop.f32.mrb[5].mxu1  ;;  %v3662_v47 = vadd.f32 %v3661_v38, %v3621_v36  ;;  %v3625_v6 = vpop.f32.mrb[7].mxu0  ;;  %3926 = vmatprep.subr.bf16.mxu0 %v6636_v31  ;;  %v6676_v31 = vcombine.high %v750_v25, %v754_v54  ;;  %v890_v36 = vld [vmem:[%s8213_s10 + $0xf30] sm:$0xff]  ;;  %v6675_v38 = vcombine.low %v750_v25, %v754_v54  ;;  %v419_v14 = vld [vmem:[%s8213_s10 + $0x78] sm:$0xff] }
 0x223   : > { %v3665_v48 = vpop.f32.mrb[6].mxu1  ;;  %3966 = vmatpush1.bf16.msra.mxu1 %v6755_v29  ;;  %v3664_v51 = vadd.f32 %v3663_v45, %v3623_v44  ;;  %v6795_v29 = vcombine.low %v870_v15, %v874_v16  ;;  %v6812_v42 = vcombine.high %v886_v35, %v890_v36  ;;  %v770_v44 = vld [vmem:[%s8213_s10 + $0xb70] sm:$0xff]  ;;  %v543_v15 = vld [vmem:[%s8213_s10 + $0x458] sm:$0xff] }
 0x224   : > { %v3666_v52 = vpop.f32.mrb[7].mxu1  ;;  %3967 = vmatprep.subr.bf16.mxu1 %v6764_v33  ;;  %v4160_v57 = vadd.f32 %v3662_v47, %v392_v43  ;;  %v758_v33 = vld [vmem:[%s8213_s10 + $0xb10] sm:$0xff]  ;;  %v6811_v47 = vcombine.low %v886_v35, %v890_v36  ;;  %v547_v16 = vld [vmem:[%s8213_s10 + $0x478] sm:$0xff] }
 0x225   : > { %v4161_v62 = vadd.f32 %v3664_v51, %v393_v23  ;;  %3927 = vmatpush1.bf16.msra.mxu0 %v6635_v46  ;;  %v6684_v41 = vcombine.high %v758_v33, %v762_v34  ;;  %v766_v43 = vld [vmem:[%s8213_s10 + $0xb50] sm:$0xff]  ;;  %v6683_v46 = vcombine.low %v758_v33, %v762_v34  ;;  %v423_v25 = vld [vmem:[%s8213_s10 + $0x98] sm:$0xff] }
 0x226   : > { %4168 = vst [vmem:[#allocation2] sm:$0xff] %v4160_v57  ;;  %3928 = vmatprep.subr.bf16.mxu0 %v6644_v50  ;;  %v894_v45 = vld [vmem:[%s8213_s10 + $0xf50] sm:$0xff]  ;;  %v6692_v23 = vcombine.high %v766_v43, %v770_v44  ;;  %v6691_v52 = vcombine.low %v766_v43, %v770_v44  ;;  %v427_v54 = vld [vmem:[%s8213_s10 + $0xb8] sm:$0xff] }
 0x227   : > { %3968 = vmatpush1.bf16.msra.mxu1 %v6763_v49  ;;  %4169 = vst [vmem:[#allocation2 + $0x8] sm:$0xff] %v4161_v62  ;;  %v898_v20 = vld [vmem:[%s8213_s10 + $0xf70] sm:$0xff]  ;;  %v551_v26 = vld [vmem:[%s8213_s10 + $0x498] sm:$0xff] }
 0x228   : > { %3969 = vmatprep.subr.bf16.mxu1 %v6772_v10  ;;  %v6820_v48 = vcombine.high %v894_v45, %v898_v20  ;;  %v774_v6 = vld [vmem:[%s8213_s10 + $0xb90] sm:$0xff]  ;;  %v6819_v10 = vcombine.low %v894_v45, %v898_v20  ;;  %v555_v27 = vld [vmem:[%s8213_s10 + $0x4b8] sm:$0xff] }
 0x229   : > { %3929 = vmatpush1.bf16.msra.mxu0 %v6643_v63  ;;  %v778_v49 = vld [vmem:[%s8213_s10 + $0xbb0] sm:$0xff]  ;;  %v431_v33 = vld [vmem:[%s8213_s10 + $0xd8] sm:$0xff] }
 0x22a   : > { %3930 = vmatprep.subr.bf16.mxu0 %v6652_v1  ;;  %v902_v50 = vld [vmem:[%s8213_s10 + $0xf90] sm:$0xff]  ;;  %v6700_v53 = vcombine.high %v774_v6, %v778_v49  ;;  %v6699_v63 = vcombine.low %v774_v6, %v778_v49  ;;  %v435_v34 = vld [vmem:[%s8213_s10 + $0xf8] sm:$0xff] }
 0x22b   : > { %3970 = vmatpush1.bf16.msra.mxu1 %v6771_v0  ;;  %v906_v51 = vld [vmem:[%s8213_s10 + $0xfb0] sm:$0xff]  ;;  %v559_v35 = vld [vmem:[%s8213_s10 + $0x4d8] sm:$0xff]  ;;  %v6357_v20 = vcombine.low %v431_v33, %v435_v34 }
 0x22c   : > { %3971 = vmatprep.subr.bf16.mxu1 %v6780_v2  ;;  %v6828_v56 = vcombine.high %v902_v50, %v906_v51  ;;  %v782_v57 = vld [vmem:[%s8213_s10 + $0xbd0] sm:$0xff]  ;;  %v6827_v0 = vcombine.low %v902_v50, %v906_v51  ;;  %v563_v36 = vld [vmem:[%s8213_s10 + $0x4f8] sm:$0xff] }
 0x22d   : > { %3931 = vmatpush1.bf16.msra.mxu0 %v6651_v8  ;;  %v914_v62 = vld [vmem:[%s8213_s10 + $0xff0] sm:$0xff]  ;;  %v6708_v1 = vcombine.high %v782_v57, %v786_v58  ;;  %v6707_v8 = vcombine.low %v782_v57, %v786_v58  ;;  %v439_v43 = vld [vmem:[%s8213_s10 + $0x118] sm:$0xff] }
 0x22e   : > { %3932 = vmatprep.subr.bf16.mxu0 %v6660_v11  ;;  %v6836_v2 = vcombine.high %v910_v61, %v914_v62  ;;  %v6334_v11 = vcombine.high %v407_v3, %v411_v4  ;;  %v443_v44 = vld [vmem:[%s8213_s10 + $0x138] sm:$0xff] }
 0x22f   : > { %3972 = vmatpush1.bf16.msra.mxu1 %v6779_v9  ;;  %v6835_v9 = vcombine.low %v910_v61, %v914_v62  ;;  %v567_v45 = vld [vmem:[%s8213_s10 + $0x518] sm:$0xff]  ;;  %v6365_v50 = vcombine.low %v439_v43, %v443_v44 }
 0x230   : > { %3973 = vmatprep.subr.bf16.mxu1 %v6788_v12  ;;  %v6462_v12 = vcombine.high %v535_v5, %v539_v7  ;;  %v575_v6 = vld [vmem:[%s8213_s10 + $0x558] sm:$0xff] }
 0x231   : > { %3933 = vmatpush1.bf16.msra.mxu0 %v6659_v18  ;;  %v6333_v18 = vcombine.low %v407_v3, %v411_v4  ;;  %v579_v49 = vld [vmem:[%s8213_s10 + $0x578] sm:$0xff] }
 0x232   : > { %3934 = vmatprep.subr.bf16.mxu0 %v6668_v22  ;;  %v6342_v22 = vcombine.high %v415_v13, %v419_v14  ;;  %v583_v57 = vld [vmem:[%s8213_s10 + $0x598] sm:$0xff]  ;;  %v6501_v62 = vcombine.low %v575_v6, %v579_v49 }
 0x233   : > { %3974 = vmatpush1.bf16.msra.mxu1 %v6787_v19  ;;  %v6461_v19 = vcombine.low %v535_v5, %v539_v7  ;;  %v587_v58 = vld [vmem:[%s8213_s10 + $0x5b8] sm:$0xff] }
 0x234   : > { %3975 = vmatprep.subr.bf16.mxu1 %v6796_v24  ;;  %v6470_v24 = vcombine.high %v543_v15, %v547_v16  ;;  %v467_v3 = vld [vmem:[%s8213_s10 + $0x1f8] sm:$0xff] }
 0x235   : > { %3935 = vmatpush1.bf16.msra.mxu0 %v6667_v55  ;;  %v6341_v55 = vcombine.low %v415_v13, %v419_v14  ;;  %v591_v7 = vld [vmem:[%s8213_s10 + $0x5d8] sm:$0xff] }
 0x236   : > { %3936 = vmatprep.subr.bf16.mxu0 %v6676_v31  ;;  %v6350_v31 = vcombine.high %v423_v25, %v427_v54 }
 0x237   : > { %3976 = vmatpush1.bf16.msra.mxu1 %v6795_v29  ;;  %v6469_v29 = vcombine.low %v543_v15, %v547_v16 }
 0x238   : > { %3977 = vmatprep.subr.bf16.mxu1 %v6804_v32  ;;  %v6478_v32 = vcombine.high %v551_v26, %v555_v27 }
 0x239   : > { %3937 = vmatpush1.bf16.msra.mxu0 %v6675_v38  ;;  %v6349_v38 = vcombine.low %v423_v25, %v427_v54  ;;  %v471_v25 = vld [vmem:[%s8213_s10 + $0x218] sm:$0xff] }
 0x23a   : > { %3938 = vmatprep.subr.bf16.mxu0 %v6684_v41  ;;  %v6358_v41 = vcombine.high %v431_v33, %v435_v34  ;;  %v475_v54 = vld [vmem:[%s8213_s10 + $0x238] sm:$0xff] }
 0x23b   : > { %3978 = vmatpush1.bf16.msra.mxu1 %v6803_v39  ;;  %v6477_v39 = vcombine.low %v551_v26, %v555_v27  ;;  %v599_v26 = vld [vmem:[%s8213_s10 + $0x618] sm:$0xff] }
 0x23c   : > { %3979 = vmatprep.subr.bf16.mxu1 %v6812_v42  ;;  %v6486_v42 = vcombine.high %v559_v35, %v563_v36  ;;  %v603_v27 = vld [vmem:[%s8213_s10 + $0x638] sm:$0xff] }
 0x23d   : > { %3939 = vmatpush1.bf16.msra.mxu0 %v6683_v46  ;;  %v6366_v46 = vcombine.high %v439_v43, %v443_v44  ;;  %v479_v33 = vld [vmem:[%s8213_s10 + $0x258] sm:$0xff] }
 0x23e   : > { %3940 = vmatprep.subr.bf16.mxu0 %v6692_v23  ;;  %v447_v23 = vld [vmem:[%s8213_s10 + $0x158] sm:$0xff] }
 0x23f   : > { %3980 = vmatpush1.bf16.msra.mxu1 %v6811_v47  ;;  %v483_v34 = vld [vmem:[%s8213_s10 + $0x278] sm:$0xff] }
 0x240   : > { %3981 = vmatprep.subr.bf16.mxu1 %v6820_v48  ;;  %v451_v48 = vld [vmem:[%s8213_s10 + $0x178] sm:$0xff] }
 0x241   : > { %3941 = vmatpush1.bf16.msra.mxu0 %v6691_v52  ;;  %v6374_v52 = vcombine.high %v447_v23, %v451_v48  ;;  %v6373_v61 = vcombine.low %v447_v23, %v451_v48  ;;  %v487_v43 = vld [vmem:[%s8213_s10 + $0x298] sm:$0xff] }
 0x242   : > { %3942 = vmatprep.subr.bf16.mxu0 %v6700_v53  ;;  %v455_v53 = vld [vmem:[%s8213_s10 + $0x198] sm:$0xff] }
 0x243   : > { %3982 = vmatpush1.bf16.msra.mxu1 %v6819_v10  ;;  %v6502_v10 = vcombine.high %v575_v6, %v579_v49  ;;  %v491_v44 = vld [vmem:[%s8213_s10 + $0x2b8] sm:$0xff] }
 0x244   : > { %3983 = vmatprep.subr.bf16.mxu1 %v6828_v56  ;;  %v459_v56 = vld [vmem:[%s8213_s10 + $0x1b8] sm:$0xff] }
 0x245   : > { %3943 = vmatpush1.bf16.msra.mxu0 %v6699_v63  ;;  %v6382_v63 = vcombine.high %v455_v53, %v459_v56  ;;  %v6381_v13 = vcombine.low %v455_v53, %v459_v56  ;;  %v495_v23 = vld [vmem:[%s8213_s10 + $0x2d8] sm:$0xff] }
 0x246   : > { %3944 = vmatprep.subr.bf16.mxu0 %v6708_v1  ;;  %v6510_v1 = vcombine.high %v583_v57, %v587_v58  ;;  %v499_v48 = vld [vmem:[%s8213_s10 + $0x2f8] sm:$0xff] }
 0x247   : > { %3984 = vmatpush1.bf16.msra.mxu1 %v6827_v0  ;;  %v623_v6 = vld [vmem:[%s8213_s10 + $0x6d8] sm:$0xff] }
 0x248   : > { %3985 = vmatprep.subr.bf16.mxu1 %v6836_v2  ;;  %v463_v2 = vld [vmem:[%s8213_s10 + $0x1d8] sm:$0xff] }
 0x249   : > { %3945 = vmatpush1.bf16.msra.mxu0 %v6707_v8  ;;  %v595_v8 = vld [vmem:[%s8213_s10 + $0x5f8] sm:$0xff] }
 0x24a   : > { %3996 = vmatprep.subr.bf16.mxu0 %v6334_v11  ;;  %v627_v49 = vld [vmem:[%s8213_s10 + $0x6f8] sm:$0xff] }
 0x24b   : > { %3986 = vmatpush1.bf16.msra.mxu1 %v6835_v9  ;;  %v503_v53 = vld [vmem:[%s8213_s10 + $0x318] sm:$0xff] }
 0x24c   : > { %4037 = vmatprep.subr.bf16.mxu1 %v6462_v12  ;;  %3947 = vmatmul.mubr.bf16.vlgmr.msra.gmra.mrb[20].mxu0 %v8410_v37  ;;  %v507_v56 = vld [vmem:[%s8213_s10 + $0x338] sm:$0xff] }
 0x24d   : > { %3997 = vmatpush1.bf16.msra.mxu0 %v6333_v18  ;;  %4028 = vmatprep.mubr.bf16.mxu0 %v8270_v59  ;;  %v571_v59 = vld [vmem:[%s8213_s10 + $0x538] sm:$0xff]  ;;  %v6509_v18 = vcombine.low %v583_v57, %v587_v58 }
 0x24e   : > { %3988 = vmatmul.mubr.bf16.vlgmr.msra.gmra.mrb[20].mxu1 %v8416_v40  ;;  %3998 = vmatprep.subr.bf16.mxu0 %v6342_v22  ;;  %v6494_v47 = vcombine.high %v567_v45, %v571_v59  ;;  %v6493_v51 = vcombine.low %v567_v45, %v571_v59  ;;  %v615_v45 = vld [vmem:[%s8213_s10 + $0x698] sm:$0xff] }
 0x24f   : > { %4038 = vmatpush1.bf16.msra.mxu1 %v6461_v19  ;;  %4069 = vmatprep.mubr.bf16.mxu1 %v8274_v60  ;;  %v6485_v60 = vcombine.low %v559_v35, %v563_v36  ;;  %v6390_v19 = vcombine.high %v463_v2, %v467_v3  ;;  %v607_v35 = vld [vmem:[%s8213_s10 + $0x658] sm:$0xff] }
 0x250   : > { %4039 = vmatprep.subr.bf16.mxu1 %v6470_v24  ;;  %v6518_v24 = vcombine.high %v591_v7, %v595_v8  ;;  %v611_v36 = vld [vmem:[%s8213_s10 + $0x678] sm:$0xff] }
 0x251   : > { %3999 = vmatpush1.bf16.msra.mxu0 %v6341_v55  ;;  %v6389_v55 = vcombine.low %v463_v2, %v467_v3  ;;  %v619_v59 = vld [vmem:[%s8213_s10 + $0x6b8] sm:$0xff] }
 0x252   : > { %4000 = vmatprep.subr.bf16.mxu0 %v6350_v31  ;;  %v6398_v31 = vcombine.high %v471_v25, %v475_v54  ;;  %v631_v57 = vld [vmem:[%s8213_s10 + $0x718] sm:$0xff] }
 0x253   : > { %4040 = vmatpush1.bf16.msra.mxu1 %v6469_v29  ;;  %v6517_v29 = vcombine.low %v591_v7, %v595_v8  ;;  %v635_v58 = vld [vmem:[%s8213_s10 + $0x738] sm:$0xff] }
 0x254   : > { %4041 = vmatprep.subr.bf16.mxu1 %v6478_v32  ;;  %v6526_v32 = vcombine.high %v599_v26, %v603_v27  ;;  %v515_v2 = vld [vmem:[%s8213_s10 + $0x378] sm:$0xff]  ;;  %v6557_v7 = vcombine.low %v631_v57, %v635_v58 }
 0x255   : > { %4001 = vmatpush1.bf16.msra.mxu0 %v6349_v38  ;;  %v6397_v38 = vcombine.low %v471_v25, %v475_v54  ;;  %v639_v3 = vld [vmem:[%s8213_s10 + $0x758] sm:$0xff] }
 0x256   : > { %4002 = vmatprep.subr.bf16.mxu0 %v6358_v41  ;;  %v6406_v41 = vcombine.high %v479_v33, %v483_v34  ;;  %v527_v25 = vld [vmem:[%s8213_s10 + $0x3d8] sm:$0xff] }
 0x257   : > { %4042 = vmatpush1.bf16.msra.mxu1 %v6477_v39  ;;  %v6525_v39 = vcombine.low %v599_v26, %v603_v27  ;;  %v531_v54 = vld [vmem:[%s8213_s10 + $0x3f8] sm:$0xff] }
 0x258   : > { %4043 = vmatprep.subr.bf16.mxu1 %v6486_v42  ;;  %v6534_v42 = vcombine.high %v607_v35, %v611_v36  ;;  %v655_v26 = vld [vmem:[%s8213_s10 + $0x7d8] sm:$0xff] }
 0x259   : > { %4003 = vmatpush1.bf16.msra.mxu0 %v6357_v20  ;;  %v6405_v20 = vcombine.low %v479_v33, %v483_v34  ;;  %v659_v27 = vld [vmem:[%s8213_s10 + $0x7f8] sm:$0xff] }
 0x25a   : > { %4004 = vmatprep.subr.bf16.mxu0 %v6366_v46  ;;  %v6414_v46 = vcombine.high %v487_v43, %v491_v44  ;;  %v663_v33 = vld [vmem:[%s8213_s10 + $0x818] sm:$0xff] }
 0x25b   : > { %4044 = vmatpush1.bf16.msra.mxu1 %v6485_v60  ;;  %v6533_v60 = vcombine.low %v607_v35, %v611_v36  ;;  %v667_v34 = vld [vmem:[%s8213_s10 + $0x838] sm:$0xff] }
 0x25c   : > { %4045 = vmatprep.subr.bf16.mxu1 %v6494_v47  ;;  %v6542_v47 = vcombine.high %v615_v45, %v619_v59  ;;  %v791_v35 = vld [vmem:[%s8213_s10 + $0xc18] sm:$0xff] }
 0x25d   : > { %4005 = vmatpush1.bf16.msra.mxu0 %v6365_v50  ;;  %v6413_v50 = vcombine.low %v487_v43, %v491_v44  ;;  %v795_v36 = vld [vmem:[%s8213_s10 + $0xc38] sm:$0xff] }
 0x25e   : > { %4006 = vmatprep.subr.bf16.mxu0 %v6374_v52  ;;  %v6422_v52 = vcombine.high %v495_v23, %v499_v48  ;;  %v671_v43 = vld [vmem:[%s8213_s10 + $0x858] sm:$0xff] }
 0x25f   : > { %4046 = vmatpush1.bf16.msra.mxu1 %v6493_v51  ;;  %v3702_v0 = vpop.f32.mrb[8].mxu0  ;;  %v6541_v51 = vcombine.low %v615_v45, %v619_v59  ;;  %v675_v44 = vld [vmem:[%s8213_s10 + $0x878] sm:$0xff] }
 0x260   : > { %4047 = vmatprep.subr.bf16.mxu1 %v6502_v10  ;;  %v3704_v5 = vpop.f32.mrb[9].mxu0  ;;  %v6550_v10 = vcombine.high %v623_v6, %v627_v49  ;;  %v799_v45 = vld [vmem:[%s8213_s10 + $0xc58] sm:$0xff] }
 0x261   : > { %v3743_v4 = vpop.f32.mrb[8].mxu1  ;;  %v3706_v12 = vpop.f32.mrb[10].mxu0  ;;  %4007 = vmatpush1.bf16.msra.mxu0 %v6373_v61  ;;  %v6421_v61 = vcombine.low %v495_v23, %v499_v48  ;;  %v803_v59 = vld [vmem:[%s8213_s10 + $0xc78] sm:$0xff] }
 0x262   : > { %v8724_v9 = vadd.f32 %v3743_v4, %v3702_v0  ;;  %v3745_v11 = vpop.f32.mrb[9].mxu1  ;;  %v3707_v16 = vpop.f32.mrb[11].mxu0  ;;  %4008 = vmatprep.subr.bf16.mxu0 %v6382_v63  ;;  %v6430_v63 = vcombine.high %v503_v53, %v507_v56  ;;  %v6558_v0 = vcombine.high %v631_v57, %v635_v58  ;;  %v643_v4 = vld [vmem:[%s8213_s10 + $0x778] sm:$0xff] }
 0x263   : > { %v8726_v14 = vadd.f32 %v3745_v11, %v3704_v5  ;;  %v3747_v15 = vpop.f32.mrb[10].mxu1  ;;  %4048 = vmatpush1.bf16.msra.mxu1 %v6501_v62  ;;  %v6549_v62 = vcombine.low %v623_v6, %v627_v49  ;;  %v6429_v5 = vcombine.low %v503_v53, %v507_v56  ;;  %v6566_v11 = vcombine.high %v639_v3, %v643_v4  ;;  %v519_v12 = vld [vmem:[%s8213_s10 + $0x398] sm:$0xff] }
 0x264   : > { %v3748_v22 = vpop.f32.mrb[11].mxu1  ;;  %4049 = vmatprep.subr.bf16.mxu1 %v6510_v1  ;;  %v511_v1 = vld [vmem:[%s8213_s10 + $0x358] sm:$0xff] }
 0x265   : > { %4009 = vmatpush1.bf16.msra.mxu0 %v6381_v13  ;;  %v6438_v8 = vcombine.high %v511_v1, %v515_v2  ;;  %v523_v13 = vld [vmem:[%s8213_s10 + $0x3b8] sm:$0xff] }
 0x266   : > { %4010 = vmatprep.subr.bf16.mxu0 %v6390_v19  ;;  %v647_v15 = vld [vmem:[%s8213_s10 + $0x798] sm:$0xff]  ;;  %v6565_v19 = vcombine.low %v639_v3, %v643_v4  ;;  %v6446_v22 = vcombine.high %v519_v12, %v523_v13 }
 0x267   : > { %4050 = vmatpush1.bf16.msra.mxu1 %v6509_v18  ;;  %v651_v16 = vld [vmem:[%s8213_s10 + $0x7b8] sm:$0xff]  ;;  %v6437_v18 = vcombine.low %v511_v1, %v515_v2 }
 0x268   : > { %4051 = vmatprep.subr.bf16.mxu1 %v6518_v24  ;;  %v6574_v24 = vcombine.high %v647_v15, %v651_v16  ;;  %v679_v23 = vld [vmem:[%s8213_s10 + $0x898] sm:$0xff] }
 0x269   : > { %4011 = vmatpush1.bf16.msra.mxu0 %v6389_v55  ;;  %v6445_v55 = vcombine.low %v519_v12, %v523_v13  ;;  %v683_v48 = vld [vmem:[%s8213_s10 + $0x8b8] sm:$0xff] }
 0x26a   : > { %4012 = vmatprep.subr.bf16.mxu0 %v6398_v31  ;;  %v6454_v31 = vcombine.high %v527_v25, %v531_v54  ;;  %v807_v6 = vld [vmem:[%s8213_s10 + $0xc98] sm:$0xff] }
 0x26b   : > { %4052 = vmatpush1.bf16.msra.mxu1 %v6517_v29  ;;  %v6573_v29 = vcombine.low %v647_v15, %v651_v16  ;;  %v811_v49 = vld [vmem:[%s8213_s10 + $0xcb8] sm:$0xff] }
 0x26c   : > { %4053 = vmatprep.subr.bf16.mxu1 %v6526_v32  ;;  %v6582_v32 = vcombine.high %v655_v26, %v659_v27  ;;  %v687_v53 = vld [vmem:[%s8213_s10 + $0x8d8] sm:$0xff]  ;;  %v6733_v58 = vcombine.low %v807_v6, %v811_v49 }
 0x26d   : > { %4013 = vmatpush1.bf16.msra.mxu0 %v6397_v38  ;;  %v6453_v38 = vcombine.low %v527_v25, %v531_v54  ;;  %v691_v56 = vld [vmem:[%s8213_s10 + $0x8f8] sm:$0xff] }
 0x26e   : > { %4014 = vmatprep.subr.bf16.mxu0 %v6406_v41  ;;  %v6590_v41 = vcombine.high %v663_v33, %v667_v34  ;;  %v819_v57 = vld [vmem:[%s8213_s10 + $0xcf8] sm:$0xff]  ;;  %v6613_v2 = vcombine.low %v687_v53, %v691_v56 }
 0x26f   : > { %4054 = vmatpush1.bf16.msra.mxu1 %v6525_v39  ;;  %v6581_v39 = vcombine.low %v655_v26, %v659_v27  ;;  %v823_v1 = vld [vmem:[%s8213_s10 + $0xd18] sm:$0xff] }
 0x270   : > { %4055 = vmatprep.subr.bf16.mxu1 %v6534_v42  ;;  %v6718_v42 = vcombine.high %v791_v35, %v795_v36 }
 0x271   : > { %4015 = vmatpush1.bf16.msra.mxu0 %v6405_v20  ;;  %v6589_v20 = vcombine.low %v663_v33, %v667_v34 }
 0x272   : > { %4016 = vmatprep.subr.bf16.mxu0 %v6414_v46  ;;  %v6598_v46 = vcombine.high %v671_v43, %v675_v44 }
 0x273   : > { %4056 = vmatpush1.bf16.msra.mxu1 %v6533_v60  ;;  %v6717_v60 = vcombine.low %v791_v35, %v795_v36  ;;  %v847_v35 = vld [vmem:[%s8213_s10 + $0xdd8] sm:$0xff] }
 0x274   : > { %4057 = vmatprep.subr.bf16.mxu1 %v6542_v47  ;;  %v6726_v47 = vcombine.high %v799_v45, %v803_v59  ;;  %v851_v36 = vld [vmem:[%s8213_s10 + $0xdf8] sm:$0xff] }
 0x275   : > { %4017 = vmatpush1.bf16.msra.mxu0 %v6413_v50  ;;  %v6597_v50 = vcombine.low %v671_v43, %v675_v44 }
 0x276   : > { %4018 = vmatprep.subr.bf16.mxu0 %v6422_v52  ;;  %v6606_v52 = vcombine.high %v679_v23, %v683_v48 }
 0x277   : > { %4058 = vmatpush1.bf16.msra.mxu1 %v6541_v51  ;;  %v6725_v51 = vcombine.low %v799_v45, %v803_v59  ;;  %v395_v45 = vld [vmem:[#allocation2 + $0x18] sm:$0xff] }
 0x278   : > { %4059 = vmatprep.subr.bf16.mxu1 %v6550_v10  ;;  %v6734_v10 = vcombine.high %v807_v6, %v811_v49  ;;  %v855_v49 = vld [vmem:[%s8213_s10 + $0xe18] sm:$0xff] }
 0x279   : > { %4019 = vmatpush1.bf16.msra.mxu0 %v6421_v61  ;;  %v6614_v61 = vcombine.high %v687_v53, %v691_v56 }
 0x27a   : > { %4020 = vmatprep.subr.bf16.mxu0 %v6430_v63  ;;  %v695_v63 = vld [vmem:[%s8213_s10 + $0x918] sm:$0xff] }
 0x27b   : > { %4060 = vmatpush1.bf16.msra.mxu1 %v6549_v62 }
 0x27c   : > { %4061 = vmatprep.subr.bf16.mxu1 %v6558_v0  ;;  %v699_v0 = vld [vmem:[%s8213_s10 + $0x938] sm:$0xff] }
 0x27d   : > { %4021 = vmatpush1.bf16.msra.mxu0 %v6429_v5  ;;  %v6622_v3 = vcombine.high %v695_v63, %v699_v0  ;;  %v703_v5 = vld [vmem:[%s8213_s10 + $0x958] sm:$0xff]  ;;  %v6621_v12 = vcombine.low %v695_v63, %v699_v0 }
 0x27e   : > { %4022 = vmatprep.subr.bf16.mxu0 %v6438_v8  ;;  %v831_v8 = vld [vmem:[%s8213_s10 + $0xd58] sm:$0xff] }
 0x27f   : > { %4062 = vmatpush1.bf16.msra.mxu1 %v6557_v7  ;;  %v707_v7 = vld [vmem:[%s8213_s10 + $0x978] sm:$0xff] }
 0x280   : > { %4063 = vmatprep.subr.bf16.mxu1 %v6566_v11  ;;  %v835_v11 = vld [vmem:[%s8213_s10 + $0xd78] sm:$0xff]  ;;  %v6630_v15 = vcombine.high %v703_v5, %v707_v7  ;;  %v6629_v25 = vcombine.low %v703_v5, %v707_v7 }
 0x281   : > { %4023 = vmatpush1.bf16.msra.mxu0 %v6437_v18  ;;  %v6758_v16 = vcombine.high %v831_v8, %v835_v11  ;;  %v711_v18 = vld [vmem:[%s8213_s10 + $0x998] sm:$0xff]  ;;  %v6757_v54 = vcombine.low %v831_v8, %v835_v11 }
 0x282   : > { %4024 = vmatprep.subr.bf16.mxu0 %v6446_v22  ;;  %v839_v22 = vld [vmem:[%s8213_s10 + $0xd98] sm:$0xff] }
 0x283   : > { %4064 = vmatpush1.bf16.msra.mxu1 %v6565_v19  ;;  %v715_v19 = vld [vmem:[%s8213_s10 + $0x9b8] sm:$0xff] }
 0x284   : > { %4065 = vmatprep.subr.bf16.mxu1 %v6574_v24  ;;  %v843_v24 = vld [vmem:[%s8213_s10 + $0xdb8] sm:$0xff]  ;;  %v6638_v26 = vcombine.high %v711_v18, %v715_v19  ;;  %v6637_v43 = vcombine.low %v711_v18, %v715_v19 }
 0x285   : > { %4025 = vmatpush1.bf16.msra.mxu0 %v6445_v55  ;;  %v6766_v55 = vcombine.high %v839_v22, %v843_v24  ;;  %v751_v8 = vld [vmem:[%s8213_s10 + $0xad8] sm:$0xff] }
 0x286   : > { %4026 = vmatprep.subr.bf16.mxu0 %v6454_v31  ;;  %v723_v31 = vld [vmem:[%s8213_s10 + $0x9f8] sm:$0xff] }
 0x287   : > { %4066 = vmatpush1.bf16.msra.mxu1 %v6573_v29  ;;  %v719_v29 = vld [vmem:[%s8213_s10 + $0x9d8] sm:$0xff] }
 0x288   : > { %4067 = vmatprep.subr.bf16.mxu1 %v6582_v32  ;;  %v755_v11 = vld [vmem:[%s8213_s10 + $0xaf8] sm:$0xff] }
 0x289   : > { %4027 = vmatpush1.bf16.msra.mxu0 %v6453_v38  ;;  %v394_v38 = vld [vmem:[#allocation2 + $0x10] sm:$0xff]  ;;  %v6678_v18 = vcombine.high %v751_v8, %v755_v11 }
 0x28a   : > { %4078 = vmatprep.subr.bf16.mxu0 %v6590_v41 }
 0x28b   : > { %4068 = vmatpush1.bf16.msra.mxu1 %v6581_v39 }
 0x28c   : > { %4119 = vmatprep.subr.bf16.mxu1 %v6718_v42  ;;  %4029 = vmatmul.mubr.bf16.vlgmr.msra.gmra.mrb[24].mxu0 %v8320_v17  ;;  %v815_v17 = vld [vmem:[%s8213_s10 + $0xcd8] sm:$0xff] }
 0x28d   : > { %4079 = vmatpush1.bf16.msra.mxu0 %v6589_v20  ;;  %4110 = vmatprep.mubr.bf16.mxu0 %v8338_v28  ;;  %v6742_v62 = vcombine.high %v815_v17, %v819_v57  ;;  %v827_v28 = vld [vmem:[%s8213_s10 + $0xd38] sm:$0xff]  ;;  %v6765_v20 = vcombine.low %v839_v22, %v843_v24 }
 0x28e   : > { %4070 = vmatmul.mubr.bf16.vlgmr.msra.gmra.mrb[24].mxu1 %v8329_v21  ;;  %4080 = vmatprep.subr.bf16.mxu0 %v6598_v46  ;;  %v6605_v21 = vcombine.low %v679_v23, %v683_v48  ;;  %v6750_v4 = vcombine.high %v823_v1, %v827_v28  ;;  %v6749_v13 = vcombine.low %v823_v1, %v827_v28  ;;  %v727_v23 = vld [vmem:[%s8213_s10 + $0xa18] sm:$0xff] }
 0x28f   : > { %4120 = vmatpush1.bf16.msra.mxu1 %v6717_v60  ;;  %4151 = vmatprep.mubr.bf16.mxu1 %v8345_v30  ;;  %v6741_v30 = vcombine.low %v815_v17, %v819_v57  ;;  %v6646_v60 = vcombine.high %v719_v29, %v723_v31  ;;  %v731_v48 = vld [vmem:[%s8213_s10 + $0xa38] sm:$0xff] }
 0x290   : > { %4121 = vmatprep.subr.bf16.mxu1 %v6726_v47  ;;  %v6654_v53 = vcombine.high %v727_v23, %v731_v48  ;;  %v735_v17 = vld [vmem:[%s8213_s10 + $0xa58] sm:$0xff] }
 0x291   : > { %4081 = vmatpush1.bf16.msra.mxu0 %v6597_v50  ;;  %v859_v50 = vld [vmem:[%s8213_s10 + $0xe38] sm:$0xff] }
 0x292   : > { %4082 = vmatprep.subr.bf16.mxu0 %v6606_v52  ;;  %v6645_v52 = vcombine.low %v719_v29, %v723_v31  ;;  %v6782_v56 = vcombine.high %v855_v49, %v859_v50  ;;  %v739_v57 = vld [vmem:[%s8213_s10 + $0xa78] sm:$0xff] }
 0x293   : > { %4122 = vmatpush1.bf16.msra.mxu1 %v6725_v51  ;;  %v6662_v63 = vcombine.high %v735_v17, %v739_v57  ;;  %v743_v1 = vld [vmem:[%s8213_s10 + $0xa98] sm:$0xff] }
 0x294   : > { %4123 = vmatprep.subr.bf16.mxu1 %v6734_v10  ;;  %v6773_v10 = vcombine.low %v847_v35, %v851_v36  ;;  %v747_v28 = vld [vmem:[%s8213_s10 + $0xab8] sm:$0xff] }
 0x295   : > { %4083 = vmatpush1.bf16.msra.mxu0 %v6605_v21  ;;  %v863_v21 = vld [vmem:[%s8213_s10 + $0xe58] sm:$0xff]  ;;  %v6670_v5 = vcombine.high %v743_v1, %v747_v28 }
 0x296   : > { %4084 = vmatprep.subr.bf16.mxu0 %v6614_v61  ;;  %v6653_v61 = vcombine.low %v727_v23, %v731_v48  ;;  %v759_v22 = vld [vmem:[%s8213_s10 + $0xb18] sm:$0xff] }
 0x297   : > { %4124 = vmatpush1.bf16.msra.mxu1 %v6733_v58  ;;  %v867_v58 = vld [vmem:[%s8213_s10 + $0xe78] sm:$0xff] }
 0x298   : > { %4125 = vmatprep.subr.bf16.mxu1 %v6742_v62  ;;  %v6781_v62 = vcombine.low %v855_v49, %v859_v50  ;;  %v6790_v0 = vcombine.high %v863_v21, %v867_v58  ;;  %v763_v24 = vld [vmem:[%s8213_s10 + $0xb38] sm:$0xff] }
 0x299   : > { %4085 = vmatpush1.bf16.msra.mxu0 %v6613_v2  ;;  %v871_v2 = vld [vmem:[%s8213_s10 + $0xe98] sm:$0xff] }
 0x29a   : > { %4086 = vmatprep.subr.bf16.mxu0 %v6622_v3  ;;  %v6661_v3 = vcombine.low %v735_v17, %v739_v57  ;;  %v767_v31 = vld [vmem:[%s8213_s10 + $0xb58] sm:$0xff] }
 0x29b   : > { %4126 = vmatpush1.bf16.msra.mxu1 %v6741_v30  ;;  %v875_v30 = vld [vmem:[%s8213_s10 + $0xeb8] sm:$0xff] }
 0x29c   : > { %4127 = vmatprep.subr.bf16.mxu1 %v6750_v4  ;;  %v6789_v4 = vcombine.low %v863_v21, %v867_v58  ;;  %v6798_v7 = vcombine.high %v871_v2, %v875_v30 }
 0x29d   : > { %4087 = vmatpush1.bf16.msra.mxu0 %v6621_v12  ;;  %v879_v12 = vld [vmem:[%s8213_s10 + $0xed8] sm:$0xff] }
 0x29e   : > { %4088 = vmatprep.subr.bf16.mxu0 %v6630_v15  ;;  %v6669_v15 = vcombine.low %v743_v1, %v747_v28 }
 0x29f   : > { %4128 = vmatpush1.bf16.msra.mxu1 %v6749_v13  ;;  %v3784_v27 = vpop.f32.mrb[12].mxu0  ;;  %v883_v13 = vld [vmem:[%s8213_s10 + $0xef8] sm:$0xff] }
 0x2a0   : > { %4129 = vmatprep.subr.bf16.mxu1 %v6758_v16  ;;  %v3785_v32 = vadd.f32 %v3784_v27, %v8724_v9  ;;  %v3786_v34 = vpop.f32.mrb[13].mxu0  ;;  %v6797_v16 = vcombine.low %v871_v2, %v875_v30  ;;  %v6806_v19 = vcombine.high %v879_v12, %v883_v13  ;;  %v6805_v27 = vcombine.low %v879_v12, %v883_v13  ;;  %v396_v2 = vld [vmem:[#allocation2 + $0x20] sm:$0xff] }
 0x2a1   : > { %v3825_v33 = vpop.f32.mrb[12].mxu1  ;;  %v3787_v39 = vadd.f32 %v3786_v34, %v8726_v14  ;;  %v3788_v42 = vpop.f32.mrb[14].mxu0  ;;  %4089 = vmatpush1.bf16.msra.mxu0 %v6629_v25  ;;  %v6774_v14 = vcombine.high %v847_v35, %v851_v36  ;;  %v887_v25 = vld [vmem:[%s8213_s10 + $0xf18] sm:$0xff]  ;;  %v6685_v35 = vcombine.low %v759_v22, %v763_v24 }
 0x2a2   : > { %v3827_v41 = vpop.f32.mrb[13].mxu1  ;;  %v3826_v44 = vadd.f32 %v3825_v33, %v3785_v32  ;;  %v3789_v9 = vpop.f32.mrb[15].mxu0  ;;  %4090 = vmatprep.subr.bf16.mxu0 %v6638_v26  ;;  %v6677_v26 = vcombine.low %v751_v8, %v755_v11  ;;  %v771_v32 = vld [vmem:[%s8213_s10 + $0xb78] sm:$0xff] }
 0x2a3   : > { %v3829_v59 = vpop.f32.mrb[14].mxu1  ;;  %4130 = vmatpush1.bf16.msra.mxu1 %v6757_v54  ;;  %v3828_v46 = vadd.f32 %v3827_v41, %v3787_v39  ;;  %v891_v54 = vld [vmem:[%s8213_s10 + $0xf38] sm:$0xff] }
 0x2a4   : > { %v3830_v47 = vpop.f32.mrb[15].mxu1  ;;  %4131 = vmatprep.subr.bf16.mxu1 %v6766_v55  ;;  %v4162_v6 = vadd.f32 %v3826_v44, %v394_v38  ;;  %v6686_v55 = vcombine.high %v759_v22, %v763_v24  ;;  %v6814_v29 = vcombine.high %v887_v25, %v891_v54  ;;  %v895_v33 = vld [vmem:[%s8213_s10 + $0xf58] sm:$0xff]  ;;  %v6813_v36 = vcombine.low %v887_v25, %v891_v54 }
 0x2a5   : > { %v4163_v51 = vadd.f32 %v3828_v46, %v395_v45  ;;  %4091 = vmatpush1.bf16.msra.mxu0 %v6637_v43  ;;  %v899_v34 = vld [vmem:[%s8213_s10 + $0xf78] sm:$0xff]  ;;  %v6694_v38 = vcombine.high %v767_v31, %v771_v32  ;;  %v6693_v45 = vcombine.low %v767_v31, %v771_v32 }
 0x2a6   : > { %4170 = vst [vmem:[#allocation2 + $0x10] sm:$0xff] %v4162_v6  ;;  %4092 = vmatprep.subr.bf16.mxu0 %v6646_v60  ;;  %v6822_v39 = vcombine.high %v895_v33, %v899_v34  ;;  %v775_v41 = vld [vmem:[%s8213_s10 + $0xb98] sm:$0xff]  ;;  %v6821_v59 = vcombine.low %v895_v33, %v899_v34  ;;  %v398_v33 = vld [vmem:[#allocation2 + $0x30] sm:$0xff] }
 0x2a7   : > { %4132 = vmatpush1.bf16.msra.mxu1 %v6765_v20  ;;  %4171 = vst [vmem:[#allocation2 + $0x18] sm:$0xff] %v4163_v51  ;;  %v779_v42 = vld [vmem:[%s8213_s10 + $0xbb8] sm:$0xff] }
 0x2a8   : > { %4133 = vmatprep.subr.bf16.mxu1 %v6774_v14  ;;  %v903_v43 = vld [vmem:[%s8213_s10 + $0xf98] sm:$0xff]  ;;  %v6702_v9 = vcombine.high %v775_v41, %v779_v42  ;;  %v6701_v23 = vcombine.low %v775_v41, %v779_v42 }
 0x2a9   : > { %4093 = vmatpush1.bf16.msra.mxu0 %v6645_v52  ;;  %v907_v44 = vld [vmem:[%s8213_s10 + $0xfb8] sm:$0xff] }
 0x2aa   : > { %4094 = vmatprep.subr.bf16.mxu0 %v6654_v53  ;;  %v6830_v20 = vcombine.high %v903_v43, %v907_v44  ;;  %v783_v60 = vld [vmem:[%s8213_s10 + $0xbd8] sm:$0xff]  ;;  %v6829_v48 = vcombine.low %v903_v43, %v907_v44 }
 0x2ab   : > { %4134 = vmatpush1.bf16.msra.mxu1 %v6773_v10  ;;  %v787_v46 = vld [vmem:[%s8213_s10 + $0xbf8] sm:$0xff] }
 0x2ac   : > { %4135 = vmatprep.subr.bf16.mxu1 %v6782_v56  ;;  %v911_v47 = vld [vmem:[%s8213_s10 + $0xfd8] sm:$0xff]  ;;  %v6710_v6 = vcombine.high %v783_v60, %v787_v46  ;;  %v6709_v50 = vcombine.low %v783_v60, %v787_v46  ;;  %v7257_v46 = vld [vmem:[#allocation11 + $0x8] ss:$16 sps:$4 sm:$0xff] (!%p6839_p8)  }
 0x2ad   : > { %4095 = vmatpush1.bf16.msra.mxu0 %v6653_v61  ;;  %v915_v14 = vld [vmem:[%s8213_s10 + $0xff8] sm:$0xff] }
 0x2ae   : > { %4096 = vmatprep.subr.bf16.mxu0 %v6662_v63  ;;  %v6838_v49 = vcombine.high %v911_v47, %v915_v14  ;;  %v6837_v51 = vcombine.low %v911_v47, %v915_v14  ;;  %v7256_v60 = vld [vmem:[#allocation11] ss:$16 sps:$4 sm:$0xff] (!%p6839_p8)   ;;  %v7258_v47 = vld [vmem:[#allocation11 + $0x24] ss:$16 sps:$4 sm:$0xff] (!%p6839_p8)   ;;  %v7260_v14 = vld [vmem:[#allocation11 + $0x2c] ss:$16 sps:$4 sm:$0xff] (!%p6839_p8)  }
 0x2af   : > { %4136 = vmatpush1.bf16.msra.mxu1 %v6781_v62 }
 0x2b0   : > { %4137 = vmatprep.subr.bf16.mxu1 %v6790_v0 }
 0x2b1   : > { %4097 = vmatpush1.bf16.msra.mxu0 %v6661_v3 }
 0x2b2   : > { %4098 = vmatprep.subr.bf16.mxu0 %v6670_v5 }
 0x2b3   : > { %4138 = vmatpush1.bf16.msra.mxu1 %v6789_v4 }
 0x2b4   : > { %4139 = vmatprep.subr.bf16.mxu1 %v6798_v7 }
 0x2b5   : > { %4099 = vmatpush1.bf16.msra.mxu0 %v6669_v15 }
 0x2b6   : > { %4100 = vmatprep.subr.bf16.mxu0 %v6678_v18 }
 0x2b7   : > { %4140 = vmatpush1.bf16.msra.mxu1 %v6797_v16 }
 0x2b8   : > { %4141 = vmatprep.subr.bf16.mxu1 %v6806_v19 }
 0x2b9   : > { %4101 = vmatpush1.bf16.msra.mxu0 %v6677_v26 }
 0x2ba   : > { %4102 = vmatprep.subr.bf16.mxu0 %v6686_v55 }
 0x2bb   : > { %4142 = vmatpush1.bf16.msra.mxu1 %v6805_v27 }
 0x2bc   : > { %4143 = vmatprep.subr.bf16.mxu1 %v6814_v29 }
 0x2bd   : > { %4103 = vmatpush1.bf16.msra.mxu0 %v6685_v35 }
 0x2be   : > { %4104 = vmatprep.subr.bf16.mxu0 %v6694_v38 }
 0x2bf   : > { %4144 = vmatpush1.bf16.msra.mxu1 %v6813_v36 }
 0x2c0   : > { %4145 = vmatprep.subr.bf16.mxu1 %v6822_v39  ;;  %v399_v39 = vld [vmem:[#allocation2 + $0x38] sm:$0xff] }
 0x2c1   : > { %4105 = vmatpush1.bf16.msra.mxu0 %v6693_v45 }
 0x2c2   : > { %4106 = vmatprep.subr.bf16.mxu0 %v6702_v9  ;;  %v7252_v9 = vld [vmem:[#allocation11 + $0x4] ss:$16 sps:$4 sm:$0xff] (!%p6839_p8)  }
 0x2c3   : > { %4146 = vmatpush1.bf16.msra.mxu1 %v6821_v59 }
 0x2c4   : > { %4147 = vmatprep.subr.bf16.mxu1 %v6830_v20  ;;  %v7254_v20 = vld [vmem:[#allocation11 + $0xc] ss:$16 sps:$4 sm:$0xff] (!%p6839_p8)  }
 0x2c5   : > { %4107 = vmatpush1.bf16.msra.mxu0 %v6701_v23  ;;  %v7262_v23 = vld [vmem:[#allocation11 + $0x20] ss:$16 sps:$4 sm:$0xff] (!%p6839_p8)  }
 0x2c6   : > { %4108 = vmatprep.subr.bf16.mxu0 %v6710_v6  ;;  %v7264_v6 = vld [vmem:[#allocation11 + $0x44] ss:$16 sps:$4 sm:$0xff] (!%p6839_p8)  }
 0x2c7   : > { %4148 = vmatpush1.bf16.msra.mxu1 %v6829_v48  ;;  %v7263_v48 = vld [vmem:[#allocation11 + $0x28] ss:$16 sps:$4 sm:$0xff] (!%p6839_p8)  }
 0x2c8   : > { %4149 = vmatprep.subr.bf16.mxu1 %v6838_v49  ;;  %v7266_v49 = vld [vmem:[#allocation11 + $0x4c] ss:$16 sps:$4 sm:$0xff] (!%p6839_p8)  }
 0x2c9   : > { %4109 = vmatpush1.bf16.msra.mxu0 %v6709_v50  ;;  %v7268_v50 = vld [vmem:[#allocation11 + $0x40] ss:$16 sps:$4 sm:$0xff] (!%p6839_p8)  }
 0x2ca   : > { %5828 = vmatprep.subr.bf16.mxu0 (!%p6839_p8), %v7252_v9  ;;  %v7330_v9 = vld [vmem:[#allocation11 + $0x1a4] ss:$16 sps:$4 sm:$0xff] (!%p6839_p8)  }
 0x2cb   : > { %4150 = vmatpush1.bf16.msra.mxu1 %v6837_v51  ;;  %v7269_v51 = vld [vmem:[#allocation11 + $0x48] ss:$16 sps:$4 sm:$0xff] (!%p6839_p8)  }
 0x2cc   : > { %4111 = vmatmul.mubr.bf16.vlgmr.msra.gmra.mrb[28].mxu0 %v8410_v37  ;;  %5992 = vmatprep.subr.bf16.mxu1 (!%p6839_p8), %v7254_v20  ;;  %v7332_v20 = vld [vmem:[#allocation11 + $0x1ac] ss:$16 sps:$4 sm:$0xff] (!%p6839_p8)  }
 0x2cd   : > { %5829 = vmatpush1.bf16.msra.mxu0 (!%p6839_p8), %v7256_v60 }
 0x2ce   : > { %4152 = vmatmul.mubr.bf16.vlgmr.msra.gmra.mrb[28].mxu1 %v8416_v40  ;;  %v397_v40 = vld [vmem:[#allocation2 + $0x28] sm:$0xff]  ;;  %5830 = vmatprep.subr.bf16.mxu0 (!%p6839_p8), %v7258_v47 }
 0x2cf   : > { %5993 = vmatpush1.bf16.msra.mxu1 (!%p6839_p8), %v7257_v46  ;;  %v7334_v46 = vld [vmem:[#allocation11 + $0x1a0] ss:$16 sps:$4 sm:$0xff] (!%p6839_p8)  }
 0x2d0   : > { %5994 = vmatprep.subr.bf16.mxu1 (!%p6839_p8), %v7260_v14  ;;  %v7335_v14 = vld [vmem:[#allocation11 + $0x1a8] ss:$16 sps:$4 sm:$0xff] (!%p6839_p8)  }
 0x2d1   : > { %5831 = vmatpush1.bf16.msra.mxu0 (!%p6839_p8), %v7262_v23 }
 0x2d2   : > { %5832 = vmatprep.subr.bf16.mxu0 (!%p6839_p8), %v7264_v6  ;;  %v7338_v6 = vld [vmem:[#allocation11 + $0x1cc] ss:$16 sps:$4 sm:$0xff] (!%p6839_p8)  }
 0x2d3   : > { %5995 = vmatpush1.bf16.msra.mxu1 (!%p6839_p8), %v7263_v48  ;;  %v7336_v48 = vld [vmem:[#allocation11 + $0x1c4] ss:$16 sps:$4 sm:$0xff] (!%p6839_p8)  }
 0x2d4   : > { %5996 = vmatprep.subr.bf16.mxu1 (!%p6839_p8), %v7266_v49  ;;  %v7340_v49 = vld [vmem:[#allocation11 + $0x1c0] ss:$16 sps:$4 sm:$0xff] (!%p6839_p8)  }
 0x2d5   : > { %5833 = vmatpush1.bf16.msra.mxu0 (!%p6839_p8), %v7268_v50  ;;  %v7341_v50 = vld [vmem:[#allocation11 + $0x1c8] ss:$16 sps:$4 sm:$0xff] (!%p6839_p8)  }
 0x2d7   : > { %5997 = vmatpush1.bf16.msra.mxu1 (!%p6839_p8), %v7269_v51 }
 0x2df   : > { %v3866_v52 = vpop.f32.mrb[16].mxu0 }
 0x2e0   : > { %v3868_v53 = vpop.f32.mrb[17].mxu0 }
 0x2e1   : > { %v3907_v10 = vpop.f32.mrb[16].mxu1  ;;  %v3870_v57 = vpop.f32.mrb[18].mxu0 }
 0x2e2   : > { %v3908_v56 = vadd.f32 %v3907_v10, %v3866_v52  ;;  %v3909_v17 = vpop.f32.mrb[17].mxu1  ;;  %v3871_v61 = vpop.f32.mrb[19].mxu0  ;;  %v7270_v52 = vld [vmem:[#allocation11 + $0x64] ss:$16 sps:$4 sm:$0xff] (!%p6839_p8)   ;;  %v7272_v10 = vld [vmem:[#allocation11 + $0x6c] ss:$16 sps:$4 sm:$0xff] (!%p6839_p8)  }
 0x2e3   : > { %v3910_v21 = vadd.f32 %v3909_v17, %v3868_v53  ;;  %v3911_v58 = vpop.f32.mrb[18].mxu1  ;;  %v7274_v53 = vld [vmem:[#allocation11 + $0x60] ss:$16 sps:$4 sm:$0xff] (!%p6839_p8)   ;;  %v7276_v17 = vld [vmem:[#allocation11 + $0x84] ss:$16 sps:$4 sm:$0xff] (!%p6839_p8)   ;;  %5834 = vmatprep.subr.bf16.mxu0 (!%p6839_p8), %v7270_v52  ;;  %5998 = vmatprep.subr.bf16.mxu1 (!%p6839_p8), %v7272_v10 }
 0x2e4   : > { %v3912_v62 = vpop.f32.mrb[19].mxu1  ;;  %v7278_v57 = vld [vmem:[#allocation11 + $0x8c] ss:$16 sps:$4 sm:$0xff] (!%p6839_p8)   ;;  %v7281_v58 = vld [vmem:[#allocation11 + $0x88] ss:$16 sps:$4 sm:$0xff] (!%p6839_p8)   ;;  %5835 = vmatpush1.bf16.msra.mxu0 (!%p6839_p8), %v7274_v53  ;;  %v4246_v52 = vld [vmem:[#allocation9] sm:$0xff] (!%p6839_p8) }
 0x2e5   : > { %v7282_v61 = vld [vmem:[#allocation11 + $0xa4] ss:$16 sps:$4 sm:$0xff] (!%p6839_p8)   ;;  %5836 = vmatprep.subr.bf16.mxu0 (!%p6839_p8), %v7276_v17  ;;  %v7284_v62 = vld [vmem:[#allocation11 + $0xac] ss:$16 sps:$4 sm:$0xff] (!%p6839_p8)  }
 0x2e6   : > { %v7342_v10 = vld [vmem:[#allocation11 + $0x1e4] ss:$16 sps:$4 sm:$0xff] (!%p6839_p8)   ;;  %v7344_v53 = vld [vmem:[#allocation11 + $0x1ec] ss:$16 sps:$4 sm:$0xff] (!%p6839_p8)  }
 0x31f   : > { %v3948_v63 = vpop.f32.mrb[20].mxu0 }
 0x320   : > { %v3949_v0 = vadd.f32 %v3948_v63, %v3908_v56  ;;  %v3950_v28 = vpop.f32.mrb[21].mxu0  ;;  %v7275_v56 = vld [vmem:[#allocation11 + $0x68] ss:$16 sps:$4 sm:$0xff] (!%p6839_p8)   ;;  %v7286_v63 = vld [vmem:[#allocation11 + $0xa0] ss:$16 sps:$4 sm:$0xff] (!%p6839_p8)  }
 0x321   : > { %v3989_v1 = vpop.f32.mrb[20].mxu1  ;;  %v3951_v30 = vadd.f32 %v3950_v28, %v3910_v21  ;;  %v3952_v37 = vpop.f32.mrb[22].mxu0  ;;  %v7280_v21 = vld [vmem:[#allocation11 + $0x80] ss:$16 sps:$4 sm:$0xff] (!%p6839_p8)   ;;  %5999 = vmatpush1.bf16.msra.mxu1 (!%p6839_p8), %v7275_v56  ;;  %v7290_v28 = vld [vmem:[#allocation11 + $0xcc] ss:$16 sps:$4 sm:$0xff] (!%p6839_p8)  }
 0x322   : > { %v3991_v3 = vpop.f32.mrb[21].mxu1  ;;  %v3990_v4 = vadd.f32 %v3989_v1, %v3949_v0  ;;  %v3953_v7 = vpop.f32.mrb[23].mxu0  ;;  %6000 = vmatprep.subr.bf16.mxu1 (!%p6839_p8), %v7278_v57  ;;  %5837 = vmatpush1.bf16.msra.mxu0 (!%p6839_p8), %v7280_v21  ;;  %v7287_v0 = vld [vmem:[#allocation11 + $0xa8] ss:$16 sps:$4 sm:$0xff] (!%p6839_p8)   ;;  %v7288_v1 = vld [vmem:[#allocation11 + $0xc4] ss:$16 sps:$4 sm:$0xff] (!%p6839_p8)  }
 0x323   : > { %v3993_v5 = vpop.f32.mrb[22].mxu1  ;;  %v3992_v8 = vadd.f32 %v3991_v3, %v3951_v30  ;;  %5838 = vmatprep.subr.bf16.mxu0 (!%p6839_p8), %v7282_v61  ;;  %v7293_v30 = vld [vmem:[#allocation11 + $0xc8] ss:$16 sps:$4 sm:$0xff] (!%p6839_p8)   ;;  %v7294_v3 = vld [vmem:[#allocation11 + $0xe4] ss:$16 sps:$4 sm:$0xff] (!%p6839_p8)  }
 0x324   : > { %v3994_v11 = vpop.f32.mrb[23].mxu1  ;;  %v4164_v12 = vadd.f32 %v3990_v4, %v396_v2  ;;  %v7292_v2 = vld [vmem:[#allocation11 + $0xc0] ss:$16 sps:$4 sm:$0xff] (!%p6839_p8)   ;;  %v7296_v37 = vld [vmem:[#allocation11 + $0xec] ss:$16 sps:$4 sm:$0xff] (!%p6839_p8)  }
 0x325   : > { %v4165_v13 = vadd.f32 %v3992_v8, %v397_v40  ;;  %6001 = vmatpush1.bf16.msra.mxu1 (!%p6839_p8), %v7281_v58  ;;  %v7298_v4 = vld [vmem:[#allocation11 + $0xe0] ss:$16 sps:$4 sm:$0xff] (!%p6839_p8)   ;;  %v7299_v40 = vld [vmem:[#allocation11 + $0xe8] ss:$16 sps:$4 sm:$0xff] (!%p6839_p8)   ;;  %v7300_v5 = vld [vmem:[#allocation11 + $0x104] ss:$16 sps:$4 sm:$0xff] (!%p6839_p8)  }
 0x326   : > { %4172 = vst [vmem:[#allocation2 + $0x20] sm:$0xff] %v4164_v12  ;;  %6002 = vmatprep.subr.bf16.mxu1 (!%p6839_p8), %v7284_v62  ;;  %5839 = vmatpush1.bf16.msra.mxu0 (!%p6839_p8), %v7286_v63  ;;  %v7302_v7 = vld [vmem:[#allocation11 + $0x10c] ss:$16 sps:$4 sm:$0xff] (!%p6839_p8)   ;;  %v7304_v8 = vld [vmem:[#allocation11 + $0x100] ss:$16 sps:$4 sm:$0xff] (!%p6839_p8)  }
 0x327   : > { %4173 = vst [vmem:[#allocation2 + $0x28] sm:$0xff] %v4165_v13  ;;  %5840 = vmatprep.subr.bf16.mxu0 (!%p6839_p8), %v7288_v1  ;;  %v7305_v11 = vld [vmem:[#allocation11 + $0x108] ss:$16 sps:$4 sm:$0xff] (!%p6839_p8)   ;;  %v7306_v12 = vld [vmem:[#allocation11 + $0x124] ss:$16 sps:$4 sm:$0xff] (!%p6839_p8)   ;;  %v4190_v13 = vlaneseq (!%p6839_p8) }
 0x328   : > { %v7346_v56 = vld [vmem:[#allocation11 + $0x1e0] ss:$16 sps:$4 sm:$0xff] (!%p6839_p8)   ;;  %v7347_v57 = vld [vmem:[#allocation11 + $0x1e8] ss:$16 sps:$4 sm:$0xff] (!%p6839_p8)   ;;  %v7350_v21 = vld [vmem:[#allocation11 + $0x204] ss:$16 sps:$4 sm:$0xff] (!%p6839_p8)  }
 0x329   : > { %6003 = vmatpush1.bf16.msra.mxu1 (!%p6839_p8), %v7287_v0  ;;  %v7353_v58 = vld [vmem:[#allocation11 + $0x20c] ss:$16 sps:$4 sm:$0xff] (!%p6839_p8)   ;;  %v7348_v61 = vld [vmem:[#allocation11 + $0x200] ss:$16 sps:$4 sm:$0xff] (!%p6839_p8)   ;;  %v7351_v63 = vld [vmem:[#allocation11 + $0x208] ss:$16 sps:$4 sm:$0xff] (!%p6839_p8)  }
 0x32a   : > { %6004 = vmatprep.subr.bf16.mxu1 (!%p6839_p8), %v7290_v28  ;;  %5841 = vmatpush1.bf16.msra.mxu0 (!%p6839_p8), %v7292_v2  ;;  %v7356_v0 = vld [vmem:[#allocation11 + $0x224] ss:$16 sps:$4 sm:$0xff] (!%p6839_p8)   ;;  %v7359_v1 = vld [vmem:[#allocation11 + $0x22c] ss:$16 sps:$4 sm:$0xff] (!%p6839_p8)   ;;  %v7354_v28 = vld [vmem:[#allocation11 + $0x220] ss:$16 sps:$4 sm:$0xff] (!%p6839_p8)  }
 0x32b   : > { %5842 = vmatprep.subr.bf16.mxu0 (!%p6839_p8), %v7294_v3  ;;  %v7357_v2 = vld [vmem:[#allocation11 + $0x228] ss:$16 sps:$4 sm:$0xff] (!%p6839_p8)   ;;  %v7365_v3 = vld [vmem:[#allocation11 + $0x24c] ss:$16 sps:$4 sm:$0xff] (!%p6839_p8)  }
 0x32d   : > { %6005 = vmatpush1.bf16.msra.mxu1 (!%p6839_p8), %v7293_v30  ;;  %v7362_v30 = vld [vmem:[#allocation11 + $0x244] ss:$16 sps:$4 sm:$0xff] (!%p6839_p8)  }
 0x32e   : > { %6006 = vmatprep.subr.bf16.mxu1 (!%p6839_p8), %v7296_v37  ;;  %5843 = vmatpush1.bf16.msra.mxu0 (!%p6839_p8), %v7298_v4  ;;  %v7360_v37 = vld [vmem:[#allocation11 + $0x240] ss:$16 sps:$4 sm:$0xff] (!%p6839_p8)   ;;  %v7363_v4 = vld [vmem:[#allocation11 + $0x248] ss:$16 sps:$4 sm:$0xff] (!%p6839_p8)  }
 0x32f   : > { %5844 = vmatprep.subr.bf16.mxu0 (!%p6839_p8), %v7300_v5  ;;  %v7371_v5 = vld [vmem:[#allocation11 + $0x26c] ss:$16 sps:$4 sm:$0xff] (!%p6839_p8)  }
 0x331   : > { %6007 = vmatpush1.bf16.msra.mxu1 (!%p6839_p8), %v7299_v40  ;;  %v7368_v40 = vld [vmem:[#allocation11 + $0x264] ss:$16 sps:$4 sm:$0xff] (!%p6839_p8)  }
 0x332   : > { %6008 = vmatprep.subr.bf16.mxu1 (!%p6839_p8), %v7302_v7  ;;  %5845 = vmatpush1.bf16.msra.mxu0 (!%p6839_p8), %v7304_v8  ;;  %v7366_v7 = vld [vmem:[#allocation11 + $0x260] ss:$16 sps:$4 sm:$0xff] (!%p6839_p8)   ;;  %v7369_v8 = vld [vmem:[#allocation11 + $0x268] ss:$16 sps:$4 sm:$0xff] (!%p6839_p8)  }
 0x333   : > { %5846 = vmatprep.subr.bf16.mxu0 (!%p6839_p8), %v7306_v12  ;;  %v7377_v12 = vld [vmem:[#allocation11 + $0x28c] ss:$16 sps:$4 sm:$0xff] (!%p6839_p8)  }
 0x335   : > { %6009 = vmatpush1.bf16.msra.mxu1 (!%p6839_p8), %v7305_v11  ;;  %v7374_v11 = vld [vmem:[#allocation11 + $0x284] ss:$16 sps:$4 sm:$0xff] (!%p6839_p8)  }
 0x35f   : > { %v4030_v15 = vpop.f32.mrb[24].mxu0 }
 0x360   : > { %v4032_v18 = vpop.f32.mrb[25].mxu0 }
 0x361   : > { %v4071_v16 = vpop.f32.mrb[24].mxu1  ;;  %v4034_v24 = vpop.f32.mrb[26].mxu0 }
 0x362   : > { %v4072_v19 = vadd.f32 %v4071_v16, %v4030_v15  ;;  %v4073_v22 = vpop.f32.mrb[25].mxu1  ;;  %v4035_v26 = vpop.f32.mrb[27].mxu0  ;;  %v7308_v15 = vld [vmem:[#allocation11 + $0x12c] ss:$16 sps:$4 sm:$0xff] (!%p6839_p8)   ;;  %v7310_v16 = vld [vmem:[#allocation11 + $0x120] ss:$16 sps:$4 sm:$0xff] (!%p6839_p8)  }
 0x363   : > { %v4074_v25 = vadd.f32 %v4073_v22, %v4032_v18  ;;  %v4075_v54 = vpop.f32.mrb[26].mxu1  ;;  %v7311_v18 = vld [vmem:[#allocation11 + $0x128] ss:$16 sps:$4 sm:$0xff] (!%p6839_p8)   ;;  %v8833_v22 = vshrl.u32 (!%p6839_p8), %v4190_v13, 7  ;;  %6010 = vmatprep.subr.bf16.mxu1 (!%p6839_p8), %v7308_v15  ;;  %v7314_v24 = vld [vmem:[#allocation11 + $0x14c] ss:$16 sps:$4 sm:$0xff] (!%p6839_p8)   ;;  %5847 = vmatpush1.bf16.msra.mxu0 (!%p6839_p8), %v7310_v16 }
 0x364   : > { %v4076_v27 = vpop.f32.mrb[27].mxu1  ;;  %v7317_v54 = vld [vmem:[#allocation11 + $0x148] ss:$16 sps:$4 sm:$0xff] (!%p6839_p8)   ;;  %6011 = vmatpush1.bf16.msra.mxu1 (!%p6839_p8), %v7311_v18  ;;  %v7318_v26 = vld [vmem:[#allocation11 + $0x164] ss:$16 sps:$4 sm:$0xff] (!%p6839_p8)  }
 0x365   : > { %v4196_v27 = vsub.s32 (!%p6839_p8), 1, %v8833_v22  ;;  %6012 = vmatprep.subr.bf16.mxu1 (!%p6839_p8), %v7314_v24  ;;  %v7372_v13 = vld [vmem:[#allocation11 + $0x280] ss:$16 sps:$4 sm:$0xff] (!%p6839_p8)   ;;  %v7375_v15 = vld [vmem:[#allocation11 + $0x288] ss:$16 sps:$4 sm:$0xff] (!%p6839_p8)   ;;  %v4204_v16 = vsub.s32 (!%p6839_p8), 3, %v8833_v22 }
 0x366   : > { %v7380_v18 = vld [vmem:[#allocation11 + $0x2a4] ss:$16 sps:$4 sm:$0xff] (!%p6839_p8)   ;;  %v7378_v24 = vld [vmem:[#allocation11 + $0x2a0] ss:$16 sps:$4 sm:$0xff] (!%p6839_p8)  }
 0x368   : > { %6013 = vmatpush1.bf16.msra.mxu1 (!%p6839_p8), %v7317_v54 }
 0x39f   : > { %v4112_v55 = vpop.f32.mrb[28].mxu0 }
 0x3a0   : > { %v4113_v29 = vadd.f32 %v4112_v55, %v4072_v19  ;;  %v4114_v32 = vpop.f32.mrb[29].mxu0  ;;  %v7312_v19 = vld [vmem:[#allocation11 + $0x144] ss:$16 sps:$4 sm:$0xff] (!%p6839_p8)   ;;  %v7320_v55 = vld [vmem:[#allocation11 + $0x16c] ss:$16 sps:$4 sm:$0xff] (!%p6839_p8)  }
 0x3a1   : > { %v4153_v31 = vpop.f32.mrb[28].mxu1  ;;  %v4115_v34 = vadd.f32 %v4114_v32, %v4074_v25  ;;  %v4116_v36 = vpop.f32.mrb[30].mxu0  ;;  %4179 = sbr.rel (%p6839_p8) target bundleno = 1361 (0x551), region = 76  ;;  %v7316_v25 = vld [vmem:[#allocation11 + $0x140] ss:$16 sps:$4 sm:$0xff] (!%p6839_p8)   ;;  %5848 = vmatprep.subr.bf16.mxu0 (!%p6839_p8), %v7312_v19  ;;  %v8836_v32 = vld [vmem:[#allocation8] sm:$0xff] (!%p6839_p8)  ;;  %6014 = vmatprep.subr.bf16.mxu1 (!%p6839_p8), %v7320_v55 }
 0x3a2   : > { %v4155_v35 = vpop.f32.mrb[29].mxu1  ;;  %v4154_v38 = vadd.f32 %v4153_v31, %v4113_v29  ;;  %v4117_v42 = vpop.f32.mrb[31].mxu0  ;;  %v7322_v29 = vld [vmem:[#allocation11 + $0x160] ss:$16 sps:$4 sm:$0xff] (!%p6839_p8)   ;;  %5849 = vmatpush1.bf16.msra.mxu0 (!%p6839_p8), %v7316_v25  ;;  %v4197_v36 = vrot.slane (!%p6839_p8), %v8836_v32, %v4196_v27  ;;  %v7383_v19 = vld [vmem:[#allocation11 + $0x2ac] ss:$16 sps:$4 sm:$0xff] (!%p6839_p8)   ;;  %v4205_v54 = vrot.slane (!%p6839_p8), %v8836_v32, %v4204_v16 }
 0x3a3   : > { %v4157_v41 = vpop.f32.mrb[30].mxu1  ;;  %v4156_v43 = vadd.f32 %v4155_v35, %v4115_v34  ;;  %v4181_v31 = vld [vmem:[#allocation2 + $0x8] sm:$0xff] (!%p6839_p8)  ;;  %v7323_v34 = vld [vmem:[#allocation11 + $0x168] ss:$16 sps:$4 sm:$0xff] (!%p6839_p8)   ;;  %5850 = vmatprep.subr.bf16.mxu0 (!%p6839_p8), %v7318_v26  ;;  %v7389_v55 = vld [vmem:[#allocation11 + $0x2cc] ss:$16 sps:$4 sm:$0xff] (!%p6839_p8)  }
 0x3a4   : > { %v4158_v44 = vpop.f32.mrb[31].mxu1  ;;  %v4166_v45 = vadd.f32 %v4154_v38, %v398_v33  ;;  %v4192_v33 = vsub.s32 (!%p6839_p8), 0, %v8833_v22  ;;  %v7324_v35 = vld [vmem:[#allocation11 + $0x184] ss:$16 sps:$4 sm:$0xff] (!%p6839_p8)   ;;  %v7326_v38 = vld [vmem:[#allocation11 + $0x18c] ss:$16 sps:$4 sm:$0xff] (!%p6839_p8)   ;;  %v4231_v42 = vadd.f32 (!%p6839_p8), %v4197_v36, %v4181_v31  ;;  %6015 = vmatpush1.bf16.msra.mxu1 (!%p6839_p8), %v7323_v34 }
 0x3a5   : > { %v4167_v59 = vadd.f32 %v4156_v43, %v399_v39  ;;  %v7328_v39 = vld [vmem:[#allocation11 + $0x180] ss:$16 sps:$4 sm:$0xff] (!%p6839_p8)   ;;  %v7329_v41 = vld [vmem:[#allocation11 + $0x188] ss:$16 sps:$4 sm:$0xff] (!%p6839_p8)   ;;  %6016 = vmatprep.subr.bf16.mxu1 (!%p6839_p8), %v7326_v38  ;;  %v7386_v26 = vld [vmem:[#allocation11 + $0x2c4] ss:$16 sps:$4 sm:$0xff] (!%p6839_p8)  }
 0x3a6   : > { %4174 = vst [vmem:[#allocation2 + $0x30] sm:$0xff] %v4166_v45  ;;  %v4247_v43 = vld [vmem:[#allocation9 + $0x8] sm:$0xff] (!%p6839_p8)  ;;  %v4193_v44 = vrot.slane (!%p6839_p8), %v8836_v32, %v4192_v33  ;;  %5851 = vmatpush1.bf16.msra.mxu0 (!%p6839_p8), %v7322_v29  ;;  %v4239_v45 = vmax.f32 (!%p6839_p8), %v4231_v42, 0.0  ;;  %v7384_v29 = vld [vmem:[#allocation11 + $0x2c0] ss:$16 sps:$4 sm:$0xff] (!%p6839_p8)  }
 0x3a7   : > { %4175 = vst [vmem:[#allocation2 + $0x38] sm:$0xff] %v4167_v59  ;;  %v4180_v59 = vld [vmem:[#allocation2] sm:$0xff] (!%p6839_p8)  ;;  %5852 = vmatprep.subr.bf16.mxu0 (!%p6839_p8), %v7324_v35  ;;  %v4183_v34 = vld [vmem:[#allocation2 + $0x18] sm:$0xff] (!%p6839_p8) }
 0x3a8   : > { %v4255_v60 = vmul.f32 %v4247_v43, %v4239_v45  ;;  %v4230_v47 = vadd.f32 %v4193_v44, %v4180_v59  ;;  %6017 = vmatpush1.bf16.msra.mxu1 %v7329_v41  ;;  %v7381_v25 = vld [vmem:[#allocation11 + $0x2a8] ss:$16 sps:$4 sm:$0xff]   ;;  %v7392_v35 = vld [vmem:[#allocation11 + $0x2e4] ss:$16 sps:$4 sm:$0xff]   ;;  %v7395_v36 = vld [vmem:[#allocation11 + $0x2ec] ss:$16 sps:$4 sm:$0xff]   ;;  %v4233_v38 = vadd.f32 %v4205_v54, %v4183_v34 }
 0x3a9   : > { %6018 = vmatprep.subr.bf16.mxu1 %v7332_v20  ;;  %v7387_v31 = vld [vmem:[#allocation11 + $0x2c8] ss:$16 sps:$4 sm:$0xff]   ;;  %v7390_v42 = vld [vmem:[#allocation11 + $0x2e0] ss:$16 sps:$4 sm:$0xff]   ;;  %v7398_v45 = vld [vmem:[#allocation11 + $0x304] ss:$16 sps:$4 sm:$0xff]  }
 0x3aa   : > { %5853 = vmatpush1.bf16.msra.mxu0 %v7328_v39  ;;  %v4263_v23 = vpack.c.bf16 %v4255_v60, %v4255_v60  ;;  %v4238_v51 = vmax.f32 %v4230_v47, 0.0  ;;  %v4249_v39 = vld [vmem:[#allocation9 + $0x18] sm:$0xff]  ;;  %v4241_v41 = vmax.f32 %v4233_v38, 0.0  ;;  %v7396_v20 = vld [vmem:[#allocation11 + $0x300] ss:$16 sps:$4 sm:$0xff]  }
 0x3ab   : > { %5854 = vmatprep.subr.bf16.mxu0 %v7330_v9  ;;  %v7393_v43 = vld [vmem:[#allocation11 + $0x2e8] ss:$16 sps:$4 sm:$0xff]   ;;  %v7401_v59 = vld [vmem:[#allocation11 + $0x30c] ss:$16 sps:$4 sm:$0xff]  }
 0x3ac   : > { %5860 = vmatprep.mubr.bf16.mxu0 %v4263_v23  ;;  %6024 = vmatprep.mubr.bf16.mxu1 %v4263_v23  ;;  %v4254_v17 = vmul.f32 %v4246_v52, %v4238_v51  ;;  %v4257_v44 = vmul.f32 %v4249_v39, %v4241_v41  ;;  %v7399_v60 = vld [vmem:[#allocation11 + $0x308] ss:$16 sps:$4 sm:$0xff]   ;;  %v7407_v47 = vld [vmem:[#allocation11 + $0x32c] ss:$16 sps:$4 sm:$0xff]   ;;  %v7416_v51 = vld [vmem:[#allocation11 + $0x364] ss:$16 sps:$4 sm:$0xff]  }
 0x3ad   : > { %6019 = vmatpush1.bf16.msra.mxu1 %v7335_v14  ;;  %v7402_v14 = vld [vmem:[#allocation11 + $0x320] ss:$16 sps:$4 sm:$0xff]   ;;  %v7405_v23 = vld [vmem:[#allocation11 + $0x328] ss:$16 sps:$4 sm:$0xff]   ;;  %v7419_v52 = vld [vmem:[#allocation11 + $0x36c] ss:$16 sps:$4 sm:$0xff]  }
 0x3ae   : > { %5855 = vmatpush1.bf16.msra.mxu0 %v7334_v46  ;;  %6020 = vmatprep.subr.bf16.mxu1 %v7338_v6  ;;  %v4262_v62 = vpack.c.bf16 %v4254_v17, %v4254_v17  ;;  %v4265_v9 = vpack.c.bf16 %v4257_v44, %v4257_v44  ;;  %v7404_v46 = vld [vmem:[#allocation11 + $0x324] ss:$16 sps:$4 sm:$0xff]   ;;  %v7413_v6 = vld [vmem:[#allocation11 + $0x34c] ss:$16 sps:$4 sm:$0xff]   ;;  %v7447_v54 = vld [vmem:[#allocation11 + $0x408] ss:$16 sps:$4 sm:$0xff]  }
 0x3af   : > { %5856 = vmatprep.subr.bf16.mxu0 %v7336_v48  ;;  %v7410_v48 = vld [vmem:[#allocation11 + $0x344] ss:$16 sps:$4 sm:$0xff]   ;;  %v7453_v34 = vld [vmem:[#allocation11 + $0x428] ss:$16 sps:$4 sm:$0xff]   ;;  %v7461_v38 = vld [vmem:[#allocation11 + $0x44c] ss:$16 sps:$4 sm:$0xff]  }
 0x3b0   : > { %v7422_v17 = vld [vmem:[#allocation11 + $0x384] ss:$16 sps:$4 sm:$0xff]   ;;  %v4251_v41 = vld [vmem:[#allocation9 + $0x28] sm:$0xff] }
 0x3b1   : > { %6021 = vmatpush1.bf16.msra.mxu1 %v7341_v50  ;;  %v7411_v50 = vld [vmem:[#allocation11 + $0x348] ss:$16 sps:$4 sm:$0xff]  }
 0x3b2   : > { %5857 = vmatpush1.bf16.msra.mxu0 %v7340_v49  ;;  %6022 = vmatprep.subr.bf16.mxu1 %v7344_v53  ;;  %v7408_v49 = vld [vmem:[#allocation11 + $0x340] ss:$16 sps:$4 sm:$0xff]   ;;  %v4200_v53 = vsub.s32 2, %v8833_v22  ;;  %v7459_v44 = vld [vmem:[#allocation11 + $0x448] ss:$16 sps:$4 sm:$0xff]  }
 0x3b3   : > { %5858 = vmatprep.subr.bf16.mxu0 %v7342_v10  ;;  %v7414_v10 = vld [vmem:[#allocation11 + $0x360] ss:$16 sps:$4 sm:$0xff]  }
 0x3b5   : > { %6023 = vmatpush1.bf16.msra.mxu1 %v7347_v57  ;;  %v7425_v57 = vld [vmem:[#allocation11 + $0x38c] ss:$16 sps:$4 sm:$0xff]  }
 0x3b6   : > { %5859 = vmatpush1.bf16.msra.mxu0 %v7346_v56  ;;  %6033 = vmatprep.subr.bf16.mxu1 %v7353_v58  ;;  %v7417_v56 = vld [vmem:[#allocation11 + $0x368] ss:$16 sps:$4 sm:$0xff]  }
 0x3b7   : > { %5869 = vmatprep.subr.bf16.mxu0 %v7350_v21  ;;  %v7420_v21 = vld [vmem:[#allocation11 + $0x380] ss:$16 sps:$4 sm:$0xff]   ;;  %v7423_v58 = vld [vmem:[#allocation11 + $0x388] ss:$16 sps:$4 sm:$0xff]  }
 0x3b8   : > { %6025 = vmatmul.mubr.bf16.vlgmr.msra.gmra.mrb[0].mxu1 %v4262_v62 }
 0x3b9   : > { %5861 = vmatmul.mubr.bf16.vlgmr.msra.gmra.mrb[0].mxu0 %v4262_v62  ;;  %6034 = vmatpush1.bf16.msra.mxu1 %v7351_v63  ;;  %v4182_v62 = vld [vmem:[#allocation2 + $0x10] sm:$0xff]  ;;  %v7428_v63 = vld [vmem:[#allocation11 + $0x3a4] ss:$16 sps:$4 sm:$0xff]  }
 0x3ba   : > { %5870 = vmatpush1.bf16.msra.mxu0 %v7348_v61  ;;  %6035 = vmatprep.subr.bf16.mxu1 %v7359_v1  ;;  %v4201_v61 = vrot.slane %v8836_v32, %v4200_v53  ;;  %v7426_v1 = vld [vmem:[#allocation11 + $0x3a0] ss:$16 sps:$4 sm:$0xff]  }
 0x3bb   : > { %5871 = vmatprep.subr.bf16.mxu0 %v7356_v0  ;;  %5901 = vmatprep.mubr.bf16.mxu0 %v4265_v9  ;;  %v7431_v0 = vld [vmem:[#allocation11 + $0x3ac] ss:$16 sps:$4 sm:$0xff]  }
 0x3bc   : > { %6065 = vmatprep.mubr.bf16.mxu1 %v4265_v9  ;;  %v7467_v9 = vld [vmem:[#allocation11 + $0x46c] ss:$16 sps:$4 sm:$0xff]  }
 0x3bd   : > { %6036 = vmatpush1.bf16.msra.mxu1 %v7357_v2  ;;  %v7429_v2 = vld [vmem:[#allocation11 + $0x3a8] ss:$16 sps:$4 sm:$0xff]  }
 0x3be   : > { %5872 = vmatpush1.bf16.msra.mxu0 %v7354_v28  ;;  %6037 = vmatprep.subr.bf16.mxu1 %v7365_v3  ;;  %v4232_v28 = vadd.f32 %v4201_v61, %v4182_v62  ;;  %v7437_v3 = vld [vmem:[#allocation11 + $0x3cc] ss:$16 sps:$4 sm:$0xff]   ;;  %v7489_v61 = vld [vmem:[#allocation11 + $0x4e8] ss:$16 sps:$4 sm:$0xff]   ;;  %v7494_v62 = vld [vmem:[#allocation11 + $0x504] ss:$16 sps:$4 sm:$0xff]  }
 0x3bf   : > { %5873 = vmatprep.subr.bf16.mxu0 %v7362_v30  ;;  %v7434_v30 = vld [vmem:[#allocation11 + $0x3c4] ss:$16 sps:$4 sm:$0xff]  }
 0x3c1   : > { %6038 = vmatpush1.bf16.msra.mxu1 %v7363_v4  ;;  %v7435_v4 = vld [vmem:[#allocation11 + $0x3c8] ss:$16 sps:$4 sm:$0xff]  }
 0x3c2   : > { %5874 = vmatpush1.bf16.msra.mxu0 %v7360_v37  ;;  %6039 = vmatprep.subr.bf16.mxu1 %v7371_v5  ;;  %v7432_v37 = vld [vmem:[#allocation11 + $0x3c0] ss:$16 sps:$4 sm:$0xff]  }
 0x3c3   : > { %5875 = vmatprep.subr.bf16.mxu0 %v7368_v40  ;;  %v4240_v40 = vmax.f32 %v4232_v28, 0.0  ;;  %v4248_v5 = vld [vmem:[#allocation9 + $0x10] sm:$0xff] }
 0x3c4   : > { %v7500_v28 = vld [vmem:[#allocation11 + $0x524] ss:$16 sps:$4 sm:$0xff]  }
 0x3c5   : > { %6040 = vmatpush1.bf16.msra.mxu1 %v7369_v8  ;;  %v7443_v8 = vld [vmem:[#allocation11 + $0x3ec] ss:$16 sps:$4 sm:$0xff]  }
 0x3c6   : > { %5876 = vmatpush1.bf16.msra.mxu0 %v7366_v7  ;;  %6041 = vmatprep.subr.bf16.mxu1 %v7377_v12  ;;  %v7440_v7 = vld [vmem:[#allocation11 + $0x3e4] ss:$16 sps:$4 sm:$0xff]   ;;  %v4256_v12 = vmul.f32 %v4248_v5, %v4240_v40  ;;  %v7504_v40 = vld [vmem:[#allocation11 + $0x540] ss:$16 sps:$4 sm:$0xff]   ;;  %v7507_v5 = vld [vmem:[#allocation11 + $0x548] ss:$16 sps:$4 sm:$0xff]  }
 0x3c7   : > { %5877 = vmatprep.subr.bf16.mxu0 %v7374_v11  ;;  %v7438_v11 = vld [vmem:[#allocation11 + $0x3e0] ss:$16 sps:$4 sm:$0xff]  }
 0x3c9   : > { %6042 = vmatpush1.bf16.msra.mxu1 %v7375_v15  ;;  %v4212_v15 = vsub.s32 5, %v8833_v22 }
 0x3ca   : > { %5878 = vmatpush1.bf16.msra.mxu0 %v7372_v13  ;;  %6043 = vmatprep.subr.bf16.mxu1 %v7383_v19  ;;  %v7441_v13 = vld [vmem:[#allocation11 + $0x3e8] ss:$16 sps:$4 sm:$0xff]   ;;  %v7449_v19 = vld [vmem:[#allocation11 + $0x40c] ss:$16 sps:$4 sm:$0xff]  }
 0x3cb   : > { %5879 = vmatprep.subr.bf16.mxu0 %v7380_v18  ;;  %v7446_v18 = vld [vmem:[#allocation11 + $0x404] ss:$16 sps:$4 sm:$0xff]  }
 0x3cd   : > { %6044 = vmatpush1.bf16.msra.mxu1 %v7381_v25  ;;  %v4264_v25 = vpack.c.bf16 %v4256_v12, %v4256_v12  ;;  %v4208_v12 = vsub.s32 4, %v8833_v22 }
 0x3ce   : > { %5880 = vmatpush1.bf16.msra.mxu0 %v7378_v24  ;;  %6045 = vmatprep.subr.bf16.mxu1 %v7389_v55  ;;  %v7444_v24 = vld [vmem:[#allocation11 + $0x400] ss:$16 sps:$4 sm:$0xff]   ;;  %v7452_v55 = vld [vmem:[#allocation11 + $0x424] ss:$16 sps:$4 sm:$0xff]  }
 0x3cf   : > { %5881 = vmatprep.subr.bf16.mxu0 %v7386_v26  ;;  %v4213_v26 = vrot.slane %v8836_v32, %v4212_v15  ;;  %v7518_v15 = vld [vmem:[#allocation11 + $0x584] ss:$16 sps:$4 sm:$0xff]  }
 0x3d1   : > { %6046 = vmatpush1.bf16.msra.mxu1 %v7387_v31  ;;  %v7450_v31 = vld [vmem:[#allocation11 + $0x420] ss:$16 sps:$4 sm:$0xff]  }
 0x3d2   : > { %5882 = vmatpush1.bf16.msra.mxu0 %v7384_v29  ;;  %6047 = vmatprep.subr.bf16.mxu1 %v7395_v36  ;;  %v7455_v29 = vld [vmem:[#allocation11 + $0x42c] ss:$16 sps:$4 sm:$0xff]   ;;  %v7458_v36 = vld [vmem:[#allocation11 + $0x444] ss:$16 sps:$4 sm:$0xff]  }
 0x3d3   : > { %5883 = vmatprep.subr.bf16.mxu0 %v7392_v35  ;;  %v4185_v35 = vld [vmem:[#allocation2 + $0x28] sm:$0xff] }
 0x3d4   : > { %v4235_v39 = vadd.f32 %v4213_v26, %v4185_v35  ;;  %v4184_v26 = vld [vmem:[#allocation2 + $0x20] sm:$0xff] }
 0x3d5   : > { %6048 = vmatpush1.bf16.msra.mxu1 %v7393_v43  ;;  %v7456_v43 = vld [vmem:[#allocation11 + $0x440] ss:$16 sps:$4 sm:$0xff]  }
 0x3d6   : > { %5884 = vmatpush1.bf16.msra.mxu0 %v7390_v42  ;;  %6049 = vmatprep.subr.bf16.mxu1 %v7401_v59  ;;  %v4243_v42 = vmax.f32 %v4235_v39, 0.0  ;;  %v7464_v59 = vld [vmem:[#allocation11 + $0x464] ss:$16 sps:$4 sm:$0xff]   ;;  %v7525_v39 = vld [vmem:[#allocation11 + $0x5a8] ss:$16 sps:$4 sm:$0xff]  }
 0x3d7   : > { %5885 = vmatprep.subr.bf16.mxu0 %v7398_v45 }
 0x3d8   : > { %v4259_v45 = vmul.f32 %v4251_v41, %v4243_v42  ;;  %v7533_v41 = vld [vmem:[#allocation11 + $0x5cc] ss:$16 sps:$4 sm:$0xff]  }
 0x3d9   : > { %6050 = vmatpush1.bf16.msra.mxu1 %v7399_v60  ;;  %v7462_v60 = vld [vmem:[#allocation11 + $0x460] ss:$16 sps:$4 sm:$0xff]  }
 0x3da   : > { %5886 = vmatpush1.bf16.msra.mxu0 %v7396_v20  ;;  %6051 = vmatprep.subr.bf16.mxu1 %v7407_v47  ;;  %v4267_v20 = vpack.c.bf16 %v4259_v45, %v4259_v45  ;;  %v7470_v47 = vld [vmem:[#allocation11 + $0x484] ss:$16 sps:$4 sm:$0xff]   ;;  %v7531_v45 = vld [vmem:[#allocation11 + $0x5c8] ss:$16 sps:$4 sm:$0xff]  }
 0x3db   : > { %5887 = vmatprep.subr.bf16.mxu0 %v7404_v46  ;;  %v7465_v46 = vld [vmem:[#allocation11 + $0x468] ss:$16 sps:$4 sm:$0xff]  }
 0x3dd   : > { %6052 = vmatpush1.bf16.msra.mxu1 %v7405_v23  ;;  %v7468_v23 = vld [vmem:[#allocation11 + $0x480] ss:$16 sps:$4 sm:$0xff]  }
 0x3de   : > { %5888 = vmatpush1.bf16.msra.mxu0 %v7402_v14  ;;  %6053 = vmatprep.subr.bf16.mxu1 %v7413_v6  ;;  %v7473_v14 = vld [vmem:[#allocation11 + $0x48c] ss:$16 sps:$4 sm:$0xff]   ;;  %v7476_v6 = vld [vmem:[#allocation11 + $0x4a4] ss:$16 sps:$4 sm:$0xff]  }
 0x3df   : > { %5889 = vmatprep.subr.bf16.mxu0 %v7410_v48  ;;  %v7471_v48 = vld [vmem:[#allocation11 + $0x488] ss:$16 sps:$4 sm:$0xff]  }
 0x3e1   : > { %6054 = vmatpush1.bf16.msra.mxu1 %v7411_v50  ;;  %v7474_v50 = vld [vmem:[#allocation11 + $0x4a0] ss:$16 sps:$4 sm:$0xff]  }
 0x3e2   : > { %5890 = vmatpush1.bf16.msra.mxu0 %v7408_v49  ;;  %6055 = vmatprep.subr.bf16.mxu1 %v7419_v52  ;;  %v7479_v49 = vld [vmem:[#allocation11 + $0x4ac] ss:$16 sps:$4 sm:$0xff]   ;;  %v7482_v52 = vld [vmem:[#allocation11 + $0x4c4] ss:$16 sps:$4 sm:$0xff]  }
 0x3e3   : > { %5891 = vmatprep.subr.bf16.mxu0 %v7416_v51  ;;  %v7477_v51 = vld [vmem:[#allocation11 + $0x4a8] ss:$16 sps:$4 sm:$0xff]  }
 0x3e5   : > { %6056 = vmatpush1.bf16.msra.mxu1 %v7417_v56  ;;  %v7480_v56 = vld [vmem:[#allocation11 + $0x4c0] ss:$16 sps:$4 sm:$0xff]  }
 0x3e6   : > { %5892 = vmatpush1.bf16.msra.mxu0 %v7414_v10  ;;  %6057 = vmatprep.subr.bf16.mxu1 %v7425_v57  ;;  %v7485_v10 = vld [vmem:[#allocation11 + $0x4cc] ss:$16 sps:$4 sm:$0xff]   ;;  %v7488_v57 = vld [vmem:[#allocation11 + $0x4e4] ss:$16 sps:$4 sm:$0xff]  }
 0x3e7   : > { %5893 = vmatprep.subr.bf16.mxu0 %v7422_v17  ;;  %v7483_v17 = vld [vmem:[#allocation11 + $0x4c8] ss:$16 sps:$4 sm:$0xff]  }
 0x3e9   : > { %6058 = vmatpush1.bf16.msra.mxu1 %v7423_v58  ;;  %v7486_v58 = vld [vmem:[#allocation11 + $0x4e0] ss:$16 sps:$4 sm:$0xff]  }
 0x3ea   : > { %5894 = vmatpush1.bf16.msra.mxu0 %v7420_v21  ;;  %6059 = vmatprep.subr.bf16.mxu1 %v7431_v0  ;;  %v7491_v21 = vld [vmem:[#allocation11 + $0x4ec] ss:$16 sps:$4 sm:$0xff]   ;;  %v7492_v0 = vld [vmem:[#allocation11 + $0x500] ss:$16 sps:$4 sm:$0xff]  }
 0x3eb   : > { %5895 = vmatprep.subr.bf16.mxu0 %v7428_v63  ;;  %v7497_v63 = vld [vmem:[#allocation11 + $0x50c] ss:$16 sps:$4 sm:$0xff]  }
 0x3ed   : > { %6060 = vmatpush1.bf16.msra.mxu1 %v7429_v2  ;;  %v7503_v2 = vld [vmem:[#allocation11 + $0x52c] ss:$16 sps:$4 sm:$0xff]  }
 0x3ee   : > { %5896 = vmatpush1.bf16.msra.mxu0 %v7426_v1  ;;  %6061 = vmatprep.subr.bf16.mxu1 %v7437_v3  ;;  %v7495_v1 = vld [vmem:[#allocation11 + $0x508] ss:$16 sps:$4 sm:$0xff]  }
 0x3ef   : > { %5897 = vmatprep.subr.bf16.mxu0 %v7434_v30  ;;  %v7498_v30 = vld [vmem:[#allocation11 + $0x520] ss:$16 sps:$4 sm:$0xff]   ;;  %v7501_v3 = vld [vmem:[#allocation11 + $0x528] ss:$16 sps:$4 sm:$0xff]  }
 0x3f1   : > { %6062 = vmatpush1.bf16.msra.mxu1 %v7435_v4  ;;  %v7509_v4 = vld [vmem:[#allocation11 + $0x54c] ss:$16 sps:$4 sm:$0xff]  }
 0x3f2   : > { %5898 = vmatpush1.bf16.msra.mxu0 %v7432_v37  ;;  %6063 = vmatprep.subr.bf16.mxu1 %v7443_v8  ;;  %v7506_v37 = vld [vmem:[#allocation11 + $0x544] ss:$16 sps:$4 sm:$0xff]   ;;  %v7515_v8 = vld [vmem:[#allocation11 + $0x56c] ss:$16 sps:$4 sm:$0xff]  }
 0x3f3   : > { %5899 = vmatprep.subr.bf16.mxu0 %v7440_v7  ;;  %v7512_v7 = vld [vmem:[#allocation11 + $0x564] ss:$16 sps:$4 sm:$0xff]  }
 0x3f5   : > { %6064 = vmatpush1.bf16.msra.mxu1 %v7441_v13  ;;  %v7513_v13 = vld [vmem:[#allocation11 + $0x568] ss:$16 sps:$4 sm:$0xff]  }
 0x3f6   : > { %5900 = vmatpush1.bf16.msra.mxu0 %v7438_v11  ;;  %6074 = vmatprep.subr.bf16.mxu1 %v7449_v19  ;;  %v7510_v11 = vld [vmem:[#allocation11 + $0x560] ss:$16 sps:$4 sm:$0xff]   ;;  %v4220_v19 = vsub.s32 7, %v8833_v22 }
 0x3f7   : > { %5910 = vmatprep.subr.bf16.mxu0 %v7446_v18  ;;  %v7521_v18 = vld [vmem:[#allocation11 + $0x58c] ss:$16 sps:$4 sm:$0xff]  }
 0x3f8   : > { %6066 = vmatmul.mubr.bf16.vlgmr.msra.gmra.mrb[0].mxu1 %v4264_v25 }
 0x3f9   : > { %5902 = vmatmul.mubr.bf16.vlgmr.msra.gmra.mrb[0].mxu0 %v4264_v25  ;;  %6075 = vmatpush1.bf16.msra.mxu1 %v7447_v54  ;;  %v7516_v25 = vld [vmem:[#allocation11 + $0x580] ss:$16 sps:$4 sm:$0xff]   ;;  %v7519_v54 = vld [vmem:[#allocation11 + $0x588] ss:$16 sps:$4 sm:$0xff]  }
 0x3fa   : > { %5911 = vmatpush1.bf16.msra.mxu0 %v7444_v24  ;;  %6076 = vmatprep.subr.bf16.mxu1 %v7455_v29  ;;  %v4209_v24 = vrot.slane %v8836_v32, %v4208_v12  ;;  %v7527_v29 = vld [vmem:[#allocation11 + $0x5ac] ss:$16 sps:$4 sm:$0xff]   ;;  %v7530_v32 = vld [vmem:[#allocation11 + $0x5c4] ss:$16 sps:$4 sm:$0xff]  }
 0x3fb   : > { %5912 = vmatprep.subr.bf16.mxu0 %v7452_v55  ;;  %5942 = vmatprep.mubr.bf16.mxu0 %v4267_v20  ;;  %v7524_v55 = vld [vmem:[#allocation11 + $0x5a4] ss:$16 sps:$4 sm:$0xff]   ;;  %v7581_v12 = vld [vmem:[#allocation11 + $0x6cc] ss:$16 sps:$4 sm:$0xff]  }
 0x3fc   : > { %6106 = vmatprep.mubr.bf16.mxu1 %v4267_v20  ;;  %v4234_v35 = vadd.f32 %v4209_v24, %v4184_v26  ;;  %v7539_v20 = vld [vmem:[#allocation11 + $0x5ec] ss:$16 sps:$4 sm:$0xff]   ;;  %v7582_v24 = vld [vmem:[#allocation11 + $0x6e0] ss:$16 sps:$4 sm:$0xff]  }
 0x3fd   : > { %6077 = vmatpush1.bf16.msra.mxu1 %v7453_v34  ;;  %v7593_v26 = vld [vmem:[#allocation11 + $0x70c] ss:$16 sps:$4 sm:$0xff]  }
 0x3fe   : > { %5913 = vmatpush1.bf16.msra.mxu0 %v7450_v31  ;;  %6078 = vmatprep.subr.bf16.mxu1 %v7461_v38  ;;  %v8858_v31 = vld [vmem:[#allocation8] sm:$0xff]  ;;  %v7522_v38 = vld [vmem:[#allocation11 + $0x5a0] ss:$16 sps:$4 sm:$0xff]  }
 0x3ff   : > { %5914 = vmatprep.subr.bf16.mxu0 %v7458_v36  ;;  %v4221_v34 = vrot.slane %v8858_v31, %v4220_v19  ;;  %v4187_v36 = vld [vmem:[#allocation2 + $0x38] sm:$0xff]  ;;  %v7587_v19 = vld [vmem:[#allocation11 + $0x6ec] ss:$16 sps:$4 sm:$0xff]  }
 0x401   : > { %6079 = vmatpush1.bf16.msra.mxu1 %v7459_v44  ;;  %v4237_v42 = vadd.f32 %v4221_v34, %v4187_v36  ;;  %v7528_v44 = vld [vmem:[#allocation11 + $0x5c0] ss:$16 sps:$4 sm:$0xff]   ;;  %v7596_v34 = vld [vmem:[#allocation11 + $0x724] ss:$16 sps:$4 sm:$0xff]  }
 0x402   : > { %5915 = vmatpush1.bf16.msra.mxu0 %v7456_v43  ;;  %6080 = vmatprep.subr.bf16.mxu1 %v7467_v9  ;;  %v4242_v43 = vmax.f32 %v4234_v35, 0.0  ;;  %v7536_v9 = vld [vmem:[#allocation11 + $0x5e4] ss:$16 sps:$4 sm:$0xff]   ;;  %v7599_v35 = vld [vmem:[#allocation11 + $0x72c] ss:$16 sps:$4 sm:$0xff]  }
 0x403   : > { %5916 = vmatprep.subr.bf16.mxu0 %v7464_v59  ;;  %v4250_v59 = vld [vmem:[#allocation9 + $0x20] sm:$0xff] }
 0x404   : > { %v7594_v36 = vld [vmem:[#allocation11 + $0x720] ss:$16 sps:$4 sm:$0xff]  }
 0x405   : > { %6081 = vmatpush1.bf16.msra.mxu1 %v7465_v46  ;;  %v4258_v46 = vmul.f32 %v4250_v59, %v4242_v43  ;;  %v7608_v43 = vld [vmem:[#allocation11 + $0x764] ss:$16 sps:$4 sm:$0xff]   ;;  %v7606_v59 = vld [vmem:[#allocation11 + $0x760] ss:$16 sps:$4 sm:$0xff]  }
 0x406   : > { %5917 = vmatpush1.bf16.msra.mxu0 %v7462_v60  ;;  %6082 = vmatprep.subr.bf16.mxu1 %v7473_v14  ;;  %v4245_v60 = vmax.f32 %v4237_v42, 0.0  ;;  %v7534_v14 = vld [vmem:[#allocation11 + $0x5e0] ss:$16 sps:$4 sm:$0xff]   ;;  %v7603_v42 = vld [vmem:[#allocation11 + $0x748] ss:$16 sps:$4 sm:$0xff]  }
 0x407   : > { %5918 = vmatprep.subr.bf16.mxu0 %v7470_v47  ;;  %v4253_v47 = vld [vmem:[#allocation9 + $0x38] sm:$0xff] }
 0x409   : > { %6083 = vmatpush1.bf16.msra.mxu1 %v7471_v48  ;;  %v7542_v48 = vld [vmem:[#allocation11 + $0x604] ss:$16 sps:$4 sm:$0xff]  }
 0x40a   : > { %5919 = vmatpush1.bf16.msra.mxu0 %v7468_v23  ;;  %6084 = vmatprep.subr.bf16.mxu1 %v7479_v49  ;;  %v7537_v23 = vld [vmem:[#allocation11 + $0x5e8] ss:$16 sps:$4 sm:$0xff]   ;;  %v4261_v49 = vmul.f32 %v4253_v47, %v4245_v60  ;;  %v7617_v60 = vld [vmem:[#allocation11 + $0x78c] ss:$16 sps:$4 sm:$0xff]   ;;  %v7612_v47 = vld [vmem:[#allocation11 + $0x780] ss:$16 sps:$4 sm:$0xff]  }
 0x40b   : > { %5920 = vmatprep.subr.bf16.mxu0 %v7476_v6  ;;  %v7545_v6 = vld [vmem:[#allocation11 + $0x60c] ss:$16 sps:$4 sm:$0xff]  }
 0x40d   : > { %6085 = vmatpush1.bf16.msra.mxu1 %v7477_v51  ;;  %v7540_v51 = vld [vmem:[#allocation11 + $0x600] ss:$16 sps:$4 sm:$0xff]  }
 0x40e   : > { %5921 = vmatpush1.bf16.msra.mxu0 %v7474_v50  ;;  %6086 = vmatprep.subr.bf16.mxu1 %v7485_v10  ;;  %v4266_v50 = vpack.c.bf16 %v4258_v46, %v4258_v46  ;;  %v7548_v10 = vld [vmem:[#allocation11 + $0x624] ss:$16 sps:$4 sm:$0xff]  }
 0x40f   : > { %5922 = vmatprep.subr.bf16.mxu0 %v7482_v52  ;;  %v7543_v52 = vld [vmem:[#allocation11 + $0x608] ss:$16 sps:$4 sm:$0xff]  }
 0x411   : > { %6087 = vmatpush1.bf16.msra.mxu1 %v7483_v17  ;;  %v4269_v17 = vpack.c.bf16 %v4261_v49, %v4261_v49 }
 0x412   : > { %5923 = vmatpush1.bf16.msra.mxu0 %v7480_v56  ;;  %6088 = vmatprep.subr.bf16.mxu1 %v7491_v21  ;;  %v7551_v56 = vld [vmem:[#allocation11 + $0x62c] ss:$16 sps:$4 sm:$0xff]   ;;  %v7549_v21 = vld [vmem:[#allocation11 + $0x628] ss:$16 sps:$4 sm:$0xff]  }
 0x413   : > { %5924 = vmatprep.subr.bf16.mxu0 %v7488_v57  ;;  %v7546_v57 = vld [vmem:[#allocation11 + $0x620] ss:$16 sps:$4 sm:$0xff]  }
 0x415   : > { %6089 = vmatpush1.bf16.msra.mxu1 %v7489_v61  ;;  %v7557_v61 = vld [vmem:[#allocation11 + $0x64c] ss:$16 sps:$4 sm:$0xff]  }
 0x416   : > { %5925 = vmatpush1.bf16.msra.mxu0 %v7486_v58  ;;  %6090 = vmatprep.subr.bf16.mxu1 %v7497_v63  ;;  %v7554_v58 = vld [vmem:[#allocation11 + $0x644] ss:$16 sps:$4 sm:$0xff]   ;;  %v7555_v63 = vld [vmem:[#allocation11 + $0x648] ss:$16 sps:$4 sm:$0xff]  }
 0x417   : > { %5926 = vmatprep.subr.bf16.mxu0 %v7494_v62  ;;  %v7552_v62 = vld [vmem:[#allocation11 + $0x640] ss:$16 sps:$4 sm:$0xff]  }
 0x419   : > { %6091 = vmatpush1.bf16.msra.mxu1 %v7495_v1  ;;  %v7563_v1 = vld [vmem:[#allocation11 + $0x66c] ss:$16 sps:$4 sm:$0xff]  }
 0x41a   : > { %5927 = vmatpush1.bf16.msra.mxu0 %v7492_v0  ;;  %6092 = vmatprep.subr.bf16.mxu1 %v7503_v2  ;;  %v7560_v0 = vld [vmem:[#allocation11 + $0x664] ss:$16 sps:$4 sm:$0xff]   ;;  %v7561_v2 = vld [vmem:[#allocation11 + $0x668] ss:$16 sps:$4 sm:$0xff]  }
 0x41b   : > { %5928 = vmatprep.subr.bf16.mxu0 %v7500_v28  ;;  %v7558_v28 = vld [vmem:[#allocation11 + $0x660] ss:$16 sps:$4 sm:$0xff]  }
 0x41d   : > { %6093 = vmatpush1.bf16.msra.mxu1 %v7501_v3  ;;  %v7569_v3 = vld [vmem:[#allocation11 + $0x68c] ss:$16 sps:$4 sm:$0xff]  }
 0x41e   : > { %5929 = vmatpush1.bf16.msra.mxu0 %v7498_v30  ;;  %6094 = vmatprep.subr.bf16.mxu1 %v7509_v4  ;;  %v7566_v30 = vld [vmem:[#allocation11 + $0x684] ss:$16 sps:$4 sm:$0xff]   ;;  %v7567_v4 = vld [vmem:[#allocation11 + $0x688] ss:$16 sps:$4 sm:$0xff]  }
 0x41f   : > { %5930 = vmatprep.subr.bf16.mxu0 %v7506_v37  ;;  %v7564_v37 = vld [vmem:[#allocation11 + $0x680] ss:$16 sps:$4 sm:$0xff]  }
 0x421   : > { %6095 = vmatpush1.bf16.msra.mxu1 %v7507_v5  ;;  %v7575_v5 = vld [vmem:[#allocation11 + $0x6ac] ss:$16 sps:$4 sm:$0xff]  }
 0x422   : > { %5931 = vmatpush1.bf16.msra.mxu0 %v7504_v40  ;;  %6096 = vmatprep.subr.bf16.mxu1 %v7515_v8  ;;  %v7572_v40 = vld [vmem:[#allocation11 + $0x6a4] ss:$16 sps:$4 sm:$0xff]   ;;  %v7573_v8 = vld [vmem:[#allocation11 + $0x6a8] ss:$16 sps:$4 sm:$0xff]  }
 0x423   : > { %5932 = vmatprep.subr.bf16.mxu0 %v7512_v7  ;;  %v7570_v7 = vld [vmem:[#allocation11 + $0x6a0] ss:$16 sps:$4 sm:$0xff]  }
 0x425   : > { %6097 = vmatpush1.bf16.msra.mxu1 %v7513_v13  ;;  %v7576_v13 = vld [vmem:[#allocation11 + $0x6c0] ss:$16 sps:$4 sm:$0xff]  }
 0x426   : > { %5933 = vmatpush1.bf16.msra.mxu0 %v7510_v11  ;;  %6098 = vmatprep.subr.bf16.mxu1 %v7521_v18  ;;  %v7578_v11 = vld [vmem:[#allocation11 + $0x6c4] ss:$16 sps:$4 sm:$0xff]  }
 0x427   : > { %5934 = vmatprep.subr.bf16.mxu0 %v7518_v15  ;;  %v7579_v15 = vld [vmem:[#allocation11 + $0x6c8] ss:$16 sps:$4 sm:$0xff]   ;;  %v7584_v18 = vld [vmem:[#allocation11 + $0x6e4] ss:$16 sps:$4 sm:$0xff]  }
 0x429   : > { %6099 = vmatpush1.bf16.msra.mxu1 %v7519_v54  ;;  %v7590_v54 = vld [vmem:[#allocation11 + $0x704] ss:$16 sps:$4 sm:$0xff]  }
 0x42a   : > { %5935 = vmatpush1.bf16.msra.mxu0 %v7516_v25  ;;  %6100 = vmatprep.subr.bf16.mxu1 %v7527_v29  ;;  %v7585_v25 = vld [vmem:[#allocation11 + $0x6e8] ss:$16 sps:$4 sm:$0xff]  }
 0x42b   : > { %5936 = vmatprep.subr.bf16.mxu0 %v7524_v55  ;;  %v7588_v55 = vld [vmem:[#allocation11 + $0x700] ss:$16 sps:$4 sm:$0xff]   ;;  %v7591_v29 = vld [vmem:[#allocation11 + $0x708] ss:$16 sps:$4 sm:$0xff]  }
 0x42d   : > { %6101 = vmatpush1.bf16.msra.mxu1 %v7525_v39  ;;  %v7602_v39 = vld [vmem:[#allocation11 + $0x744] ss:$16 sps:$4 sm:$0xff]  }
 0x42e   : > { %5937 = vmatpush1.bf16.msra.mxu0 %v7522_v38  ;;  %6102 = vmatprep.subr.bf16.mxu1 %v7533_v41  ;;  %v7597_v38 = vld [vmem:[#allocation11 + $0x728] ss:$16 sps:$4 sm:$0xff]   ;;  %v7600_v41 = vld [vmem:[#allocation11 + $0x740] ss:$16 sps:$4 sm:$0xff]  }
 0x42f   : > { %5938 = vmatprep.subr.bf16.mxu0 %v7530_v32  ;;  %v7605_v32 = vld [vmem:[#allocation11 + $0x74c] ss:$16 sps:$4 sm:$0xff]  }
 0x431   : > { %6103 = vmatpush1.bf16.msra.mxu1 %v7531_v45  ;;  %v4216_v45 = vsub.s32 6, %v8833_v22 }
 0x432   : > { %5939 = vmatpush1.bf16.msra.mxu0 %v7528_v44  ;;  %6104 = vmatprep.subr.bf16.mxu1 %v7539_v20  ;;  %v7611_v44 = vld [vmem:[#allocation11 + $0x76c] ss:$16 sps:$4 sm:$0xff]   ;;  %v7614_v20 = vld [vmem:[#allocation11 + $0x784] ss:$16 sps:$4 sm:$0xff]  }
 0x433   : > { %5940 = vmatprep.subr.bf16.mxu0 %v7536_v9  ;;  %v7609_v9 = vld [vmem:[#allocation11 + $0x768] ss:$16 sps:$4 sm:$0xff]   ;;  %v4217_v46 = vrot.slane %v8858_v31, %v4216_v45  ;;  %v7624_v31 = vld [vmem:[#allocation11 + $0x7c0] ss:$16 sps:$4 sm:$0xff]  }
 0x435   : > { %6105 = vmatpush1.bf16.msra.mxu1 %v7537_v23  ;;  %v4186_v23 = vld [vmem:[#allocation2 + $0x30] sm:$0xff] }
 0x436   : > { %5941 = vmatpush1.bf16.msra.mxu0 %v7534_v14  ;;  %6115 = vmatprep.subr.bf16.mxu1 %v7545_v6  ;;  %v7615_v14 = vld [vmem:[#allocation11 + $0x788] ss:$16 sps:$4 sm:$0xff]   ;;  %v7623_v6 = vld [vmem:[#allocation11 + $0x7ac] ss:$16 sps:$4 sm:$0xff]   ;;  %v4236_v49 = vadd.f32 %v4217_v46, %v4186_v23 }
 0x437   : > { %5951 = vmatprep.subr.bf16.mxu0 %v7542_v48  ;;  %v7620_v48 = vld [vmem:[#allocation11 + $0x7a4] ss:$16 sps:$4 sm:$0xff]  }
 0x438   : > { %6107 = vmatmul.mubr.bf16.vlgmr.msra.gmra.mrb[0].mxu1 %v4266_v50 }
 0x439   : > { %5943 = vmatmul.mubr.bf16.vlgmr.msra.gmra.mrb[0].mxu0 %v4266_v50  ;;  %6116 = vmatpush1.bf16.msra.mxu1 %v7543_v52  ;;  %v7618_v50 = vld [vmem:[#allocation11 + $0x7a0] ss:$16 sps:$4 sm:$0xff]   ;;  %v7626_v52 = vld [vmem:[#allocation11 + $0x7c4] ss:$16 sps:$4 sm:$0xff]  }
 0x43a   : > { %5952 = vmatpush1.bf16.msra.mxu0 %v7540_v51  ;;  %6117 = vmatprep.subr.bf16.mxu1 %v7551_v56  ;;  %v7621_v51 = vld [vmem:[#allocation11 + $0x7a8] ss:$16 sps:$4 sm:$0xff]   ;;  %v4244_v56 = vmax.f32 %v4236_v49, 0.0 }
 0x43b   : > { %5953 = vmatprep.subr.bf16.mxu0 %v7548_v10  ;;  %5983 = vmatprep.mubr.bf16.mxu0 %v4269_v17  ;;  %v7629_v10 = vld [vmem:[#allocation11 + $0x7cc] ss:$16 sps:$4 sm:$0xff]  }
 0x43c   : > { %6147 = vmatprep.mubr.bf16.mxu1 %v4269_v17  ;;  %v7627_v17 = vld [vmem:[#allocation11 + $0x7c8] ss:$16 sps:$4 sm:$0xff]  }
 0x43d   : > { %6118 = vmatpush1.bf16.msra.mxu1 %v7549_v21  ;;  %v7632_v21 = vld [vmem:[#allocation11 + $0x7e4] ss:$16 sps:$4 sm:$0xff]  }
 0x43e   : > { %5954 = vmatpush1.bf16.msra.mxu0 %v7546_v57  ;;  %6119 = vmatprep.subr.bf16.mxu1 %v7557_v61  ;;  %v4252_v57 = vld [vmem:[#allocation9 + $0x30] sm:$0xff] }
 0x43f   : > { %5955 = vmatprep.subr.bf16.mxu0 %v7554_v58  ;;  %v7635_v58 = vld [vmem:[#allocation11 + $0x7ec] ss:$16 sps:$4 sm:$0xff]   ;;  %v4260_v61 = vmul.f32 %v4252_v57, %v4244_v56 }
 0x441   : > { %6120 = vmatpush1.bf16.msra.mxu1 %v7555_v63  ;;  %v7633_v63 = vld [vmem:[#allocation11 + $0x7e8] ss:$16 sps:$4 sm:$0xff]  }
 0x442   : > { %5956 = vmatpush1.bf16.msra.mxu0 %v7552_v62  ;;  %6121 = vmatprep.subr.bf16.mxu1 %v7563_v1  ;;  %v7630_v62 = vld [vmem:[#allocation11 + $0x7e0] ss:$16 sps:$4 sm:$0xff]  }
 0x443   : > { %5957 = vmatprep.subr.bf16.mxu0 %v7560_v0  ;;  %v4268_v0 = vpack.c.bf16 %v4260_v61, %v4260_v61  ;;  %v4526_v1 = vld [vmem:[#allocation12] sm:$0xf] }
 0x445   : > { %6122 = vmatpush1.bf16.msra.mxu1 %v7561_v2  ;;  %v4539_v2 = vrot.slane %v4526_v1, %v4200_v53 }
 0x446   : > { %5958 = vmatpush1.bf16.msra.mxu0 %v7558_v28  ;;  %6123 = vmatprep.subr.bf16.mxu1 %v7569_v3  ;;  %v4531_v28 = vrot.slane %v4526_v1, %v4192_v33  ;;  %v4543_v3 = vrot.slane %v4526_v1, %v4204_v16 }
 0x447   : > { %5959 = vmatprep.subr.bf16.mxu0 %v7566_v30  ;;  %v4535_v30 = vrot.slane %v4526_v1, %v4196_v27 }
 0x449   : > { %6124 = vmatpush1.bf16.msra.mxu1 %v7567_v4 }
 0x44a   : > { %5960 = vmatpush1.bf16.msra.mxu0 %v7564_v37  ;;  %6125 = vmatprep.subr.bf16.mxu1 %v7575_v5 }
 0x44b   : > { %5961 = vmatprep.subr.bf16.mxu0 %v7572_v40 }
 0x44d   : > { %6126 = vmatpush1.bf16.msra.mxu1 %v7573_v8 }
 0x44e   : > { %5962 = vmatpush1.bf16.msra.mxu0 %v7570_v7  ;;  %6127 = vmatprep.subr.bf16.mxu1 %v7581_v12 }
 0x44f   : > { %5963 = vmatprep.subr.bf16.mxu0 %v7578_v11 }
 0x451   : > { %6128 = vmatpush1.bf16.msra.mxu1 %v7579_v15 }
 0x452   : > { %5964 = vmatpush1.bf16.msra.mxu0 %v7576_v13  ;;  %6129 = vmatprep.subr.bf16.mxu1 %v7587_v19 }
 0x453   : > { %5965 = vmatprep.subr.bf16.mxu0 %v7584_v18 }
 0x455   : > { %6130 = vmatpush1.bf16.msra.mxu1 %v7585_v25 }
 0x456   : > { %5966 = vmatpush1.bf16.msra.mxu0 %v7582_v24  ;;  %6131 = vmatprep.subr.bf16.mxu1 %v7593_v26 }
 0x457   : > { %5967 = vmatprep.subr.bf16.mxu0 %v7590_v54 }
 0x459   : > { %6132 = vmatpush1.bf16.msra.mxu1 %v7591_v29 }
 0x45a   : > { %5968 = vmatpush1.bf16.msra.mxu0 %v7588_v55  ;;  %6133 = vmatprep.subr.bf16.mxu1 %v7599_v35 }
 0x45b   : > { %5969 = vmatprep.subr.bf16.mxu0 %v7596_v34 }
 0x45d   : > { %6134 = vmatpush1.bf16.msra.mxu1 %v7597_v38 }
 0x45e   : > { %5970 = vmatpush1.bf16.msra.mxu0 %v7594_v36  ;;  %6135 = vmatprep.subr.bf16.mxu1 %v7605_v32 }
 0x45f   : > { %5971 = vmatprep.subr.bf16.mxu0 %v7602_v39 }
 0x461   : > { %6136 = vmatpush1.bf16.msra.mxu1 %v7603_v42 }
 0x462   : > { %5972 = vmatpush1.bf16.msra.mxu0 %v7600_v41  ;;  %6137 = vmatprep.subr.bf16.mxu1 %v7611_v44 }
 0x463   : > { %5973 = vmatprep.subr.bf16.mxu0 %v7608_v43 }
 0x465   : > { %6138 = vmatpush1.bf16.msra.mxu1 %v7609_v9 }
 0x466   : > { %5974 = vmatpush1.bf16.msra.mxu0 %v7606_v59  ;;  %6139 = vmatprep.subr.bf16.mxu1 %v7617_v60 }
 0x467   : > { %5975 = vmatprep.subr.bf16.mxu0 %v7614_v20 }
 0x469   : > { %6140 = vmatpush1.bf16.msra.mxu1 %v7615_v14 }
 0x46a   : > { %5976 = vmatpush1.bf16.msra.mxu0 %v7612_v47  ;;  %6141 = vmatprep.subr.bf16.mxu1 %v7623_v6 }
 0x46b   : > { %5977 = vmatprep.subr.bf16.mxu0 %v7620_v48 }
 0x46d   : > { %6142 = vmatpush1.bf16.msra.mxu1 %v7621_v51 }
 0x46e   : > { %5978 = vmatpush1.bf16.msra.mxu0 %v7618_v50  ;;  %6143 = vmatprep.subr.bf16.mxu1 %v7629_v10 }
 0x46f   : > { %5979 = vmatprep.subr.bf16.mxu0 %v7626_v52 }
 0x471   : > { %6144 = vmatpush1.bf16.msra.mxu1 %v7627_v17 }
 0x472   : > { %5980 = vmatpush1.bf16.msra.mxu0 %v7624_v31  ;;  %6145 = vmatprep.subr.bf16.mxu1 %v7635_v58 }
 0x473   : > { %5981 = vmatprep.subr.bf16.mxu0 %v7632_v21 }
 0x475   : > { %6146 = vmatpush1.bf16.msra.mxu1 %v7633_v63 }
 0x476   : > { %5982 = vmatpush1.bf16.msra.mxu0 %v7630_v62 }
 0x478   : > { %6148 = vmatmul.mubr.bf16.vlgmr.msra.gmra.mrb[0].mxu1 %v4268_v0 }
 0x479   : > { %5984 = vmatmul.mubr.bf16.vlgmr.msra.gmra.mrb[0].mxu0 %v4268_v0 }
 0x54b   : > { %v6149_v4 = vpop.f32.mrb[0].mxu1 }
 0x54c   : > { %v5985_v37 = vpop.f32.mrb[0].mxu0  ;;  %v7105_v5 = vadd.f32 %v6149_v4, %v4539_v2  ;;  %v6151_v8 = vpop.f32.mrb[1].mxu1 }
 0x54d   : > { %v7103_v40 = vadd.f32 %v5985_v37, %v4531_v28  ;;  %v5987_v7 = vpop.f32.mrb[1].mxu0  ;;  %v7106_v12 = vadd.f32 %v6151_v8, %v4543_v3  ;;  %v6153_v15 = vpop.f32.mrb[2].mxu1 }
 0x54e   : > { %v7104_v11 = vadd.f32 %v5987_v7, %v4535_v30  ;;  %v5989_v13 = vpop.f32.mrb[2].mxu0  ;;  %6158 = vst [vmem:[#allocation14 + $0x10] sm:$0xff] %v7105_v5  ;;  %v6154_v53 = vpop.f32.mrb[3].mxu1 }
 0x54f   : > { %6156 = vst [vmem:[#allocation14] sm:$0xff] %v7103_v40  ;;  %v5990_v33 = vpop.f32.mrb[3].mxu0  ;;  %6159 = vst [vmem:[#allocation14 + $0x18] sm:$0xff] %v7106_v12 }
 0x550   : > { %6157 = vst [vmem:[#allocation14 + $0x8] sm:$0xff] %v7104_v11 }
 0x551 PF: > { %p7184_p4 = scmp.eq.s32.totalorder %s7985_s27, 2  ;;  %s7918_s24 = smov [#allocation14]  }
 0x552   : > { %s6170_s28 = sshll.u32 %s7918_s24, 4  ;;  %s6171_s28 = int_to_ptr.vmem [resolvable:$true] %s6170_s28 }
 0x553   : > { %s7809_s19 = scalar_lea.vmem %s6171_s28, 512  ;;  %p7816_p11 = scmp.lt.s32.totalorder %s6171_s28, %s6171_s28 }
 0x554   : > { %p7810_p9 = scmp.ne.s32.totalorder %s6171_s28, %s7809_s19  ;;  %p7817_p0 = scmp.lt.s32.totalorder %s7809_s19, %s7809_s19 }
 0x556   : > { %p7811_p3 = pnand %p7810_p9, %p7184_p4  ;;  %p7818_p12 = por %p7817_p0, %p7816_p11 }
 0x558   : > { %p7812_p5 = pneg %p7811_p3 }
 0x55a   : > { %p7819_p1 = pnand %p7818_p12, %p7812_p5 }
 0x55c   : > { %7822 = shalt.err (!%p7819_p1)
}
 0x55d   : > { %s7823_s20 = scalar_lea.hbm %s8918_s6, 512 }
 0x55e   : > { %p7824_p13 = scmp.ne.s32.totalorder %s8918_s6, %s7823_s20  ;;  %p7829_p6 = scmp.lt.u32.totalorder %s7823_s20, %s8918_s6 }
 0x560   : > { %p7825_p2 = pnand %p7824_p13, %p7184_p4 }
 0x562   : > { %p7826_p7 = pneg %p7825_p2 }
 0x564   : > { %p7831_p10 = pnand %p7829_p6, %p7826_p7 }
 0x566   : > { %7834 = shalt.err (!%p7831_p10)
}
 0x567   : > { %7152 = dma.vmem_to_hbm [thread:$0]  (%p7184_p4), %s6171_s28, 512, %s8918_s6, [#allocation5]  }
 0x568   : > { %7880 = dma.done.wait (%p7184_p4), [#allocation5], 512  }
 0x569   : > { %7882 = vsyncadd (%p7184_p4), [#allocation5], 4294966784 }
 0x56a PF: > { %s25_s26 = sadd.s32 1, %s7905_s26   ;;  %s8937_s21 = smov %s7889_s22 }
 0x56b   : > { %p22_p8 = scmp.ge.s32.totalorder %s25_s26, 5   ;;  %s8938_s22 = smov %s7893_s23 }
 0x56c   : > { %s8939_s23 = smov %s8121_s7  ;;  %s8940_s24 = smov %s7901_s25 }
 0x56d   : > { %s8941_s25 = smov %s8943_s17  ;;  %24 = sbr.rel (!%p22_p8) target bundleno = 11 (0xb), region = 120 }
 0x574   :  { %6183 = vsyncpa [#allocation4], 1 }
 0x575   :  { %6185 = vsyncpa [#allocation4 + $0x1], 1 }
 0x576   :  { %6186 = vsyncpa [#allocation7], 1 }
 0x577   :  { %6188 = vsyncpa [#allocation7 + $0x1], 1 }
 0x578   :  { %6189 = vsyncpa [#allocation10], 1 }
 0x579   :  { %6190 = vsyncpa [#allocation13], 1 }
 0x57a   :  { %6191 = vsyncpa [#allocation5], 1 }
 0x57b   :  { %6193 = vsyncpa [#allocation5 + $0x1], 1 }

</bundles_post_ra>
